<compile_context>
chip_gen: v5e
topology: v5e:2x2
jax: 0.10.0
libtpu: 0.0.40
codegen_flags: <defaults>
</compile_context>

<pallas_src>
import functools

import jax
import jax.numpy as jnp
import numpy as np
from jax import lax
from jax.experimental import pallas as pl
from jax.experimental.pallas import tpu as pltpu


# ----------------------------------------------------------------------------- fused kernel
def fused_res_block_kernel(x_ref, w1_ref, b1_ref, w2_ref, b2_ref, o_ref,
                           xp_ref, h1p_ref, cols_ref, *, dilation, matmul_dtype):
    """Fused ResBlock forward for one batch element (NHWC layout, channels on lanes).

    x_ref   : (1, H, W, C)        input tile (unpadded; halo built in VMEM)
    w1_ref  : (9*C, C)            conv1 weights, HWIO flattened, BN1 scale folded in
    b1_ref  : (1, C)              folded BN1 bias
    w2_ref  : (9*C, C)            conv2 weights, BN2 scale folded in
    b2_ref  : (1, C)              folded BN2 bias
    o_ref   : (1, H, W, C)        output tile
    xp_ref  : (H+2d, W+2d, C) f32 VMEM scratch, zero-padded conv1 input
    h1p_ref : (H+2,  W+2,  C) f32 VMEM scratch, zero-padded conv1 output
    cols_ref: (H*W, 9*C)      f32 VMEM scratch, im2col matrix (reused for both convs)
    """
    d = dilation
    H, W, C = o_ref.shape[1], o_ref.shape[2], o_ref.shape[3]

    def zero_halo(ref, pad):
        # Zero only the halo strips; the interior is fully overwritten every grid step,
        # so this avoids an extra full-buffer write pass.
        hh, ww, cc = ref.shape
        ref[0:pad, :, :] = jnp.zeros((pad, ww, cc), jnp.float32)
        ref[hh - pad:hh, :, :] = jnp.zeros((pad, ww, cc), jnp.float32)
        ref[:, 0:pad, :] = jnp.zeros((hh, pad, cc), jnp.float32)
        ref[:, ww - pad:ww, :] = jnp.zeros((hh, pad, cc), jnp.float32)

    def im2col(src_ref, dil):
        # Pack the 9 conv taps along K so the conv becomes ONE MXU matmul with K = 9*C.
        for k in range(9):
            kh, kw = k // 3, k % 3
            patch = src_ref[kh * dil:kh * dil + H, kw * dil:kw * dil + W, :]
            cols_ref[:, k * C:(k + 1) * C] = patch.reshape(H * W, C)
        return cols_ref[...]

    # ---- conv1 (dilation=d, padding=d) + folded BN1 + ReLU ------------------------------
    zero_halo(xp_ref, d)
    xp_ref[d:d + H, d:d + W, :] = x_ref[0].astype(jnp.float32)
    cols1 = im2col(xp_ref, d).astype(matmul_dtype)
    h1 = jnp.dot(cols1, w1_ref[...].astype(matmul_dtype),
                 preferred_element_type=jnp.float32)
    h1 = jnp.maximum(h1 + b1_ref[...], 0.0)                     # (H*W, C) f32, stays in VMEM

    # ---- conv2 (dilation=1, padding=1) + folded BN2 + residual + ReLU --------------------
    zero_halo(h1p_ref, 1)
    h1p_ref[1:1 + H, 1:1 + W, :] = h1.reshape(H, W, C)
    cols2 = im2col(h1p_ref, 1).astype(matmul_dtype)
    y = jnp.dot(cols2, w2_ref[...].astype(matmul_dtype),
                preferred_element_type=jnp.float32)
    y = y + b2_ref[...] + x_ref[0].reshape(H * W, C).astype(jnp.float32)
    o_ref[0] = jnp.maximum(y, 0.0).reshape(H, W, C).astype(o_ref.dtype)


# ----------------------------------------------------------------------------- wrapper
def res_block_forward(x_nchw, params, *, matmul_dtype=jnp.float32):
    """ResBlock forward. x_nchw: (N, C, H, W) float32. Returns (N, C, H, W)."""
    d = int(params["dilation"])
    x = jnp.transpose(x_nchw, (0, 2, 3, 1))  # NCHW -> NHWC (channels on lanes)
    N, H, W, C = x.shape

    # Fold eval-mode BN into the conv weights (per-output-channel scale) + a bias.
    eps = 1e-3
    scale1 = params["bn1_gamma"] / jnp.sqrt(params["bn1_var"] + eps)            # (C,)
    bias1 = (params["bn1_beta"] - params["bn1_mean"] * scale1).reshape(1, C)
    scale2 = params["bn2_gamma"] / jnp.sqrt(params["bn2_var"] + eps)
    bias2 = (params["bn2_beta"] - params["bn2_mean"] * scale2).reshape(1, C)
    w1f = (params["w1"] * scale1[None, None, None, :]).reshape(9 * C, C)        # HWIO -> (9C, C)
    w2f = (params["w2"] * scale2[None, None, None, :]).reshape(9 * C, C)

    Hp1, Wp1 = H + 2 * d, W + 2 * d
    kernel = functools.partial(fused_res_block_kernel, dilation=d,
                               matmul_dtype=matmul_dtype)

    y = pl.pallas_call(
        kernel,
        out_shape=jax.ShapeDtypeStruct((N, H, W, C), x.dtype),
        grid=(N,),
        in_specs=[
            pl.BlockSpec((1, H, W, C), lambda n: (n, 0, 0, 0)),   # x (also the residual)
            pl.BlockSpec((9 * C, C), lambda n: (0, 0)),           # folded conv1 weights
            pl.BlockSpec((1, C), lambda n: (0, 0)),               # folded BN1 bias
            pl.BlockSpec((9 * C, C), lambda n: (0, 0)),           # folded conv2 weights
            pl.BlockSpec((1, C), lambda n: (0, 0)),               # folded BN2 bias
        ],
        out_specs=pl.BlockSpec((1, H, W, C), lambda n: (n, 0, 0, 0)),
        scratch_shapes=[
            pltpu.VMEM((Hp1, Wp1, C), jnp.float32),               # padded conv1 input
            pltpu.VMEM((H + 2, W + 2, C), jnp.float32),           # padded conv1 output (h1)
            pltpu.VMEM((H * W, 9 * C), jnp.float32),              # im2col matrix (reused)
        ],
        compiler_params=pltpu.CompilerParams(dimension_semantics=("parallel",)),
    )(x, w1f, bias1, w2f, bias2)

    return jnp.transpose(y, (0, 3, 1, 2))  # NHWC -> NCHW


# ----------------------------------------------------------------------------- reference
def res_block_reference(x_nchw, params):
    """Pure-JAX reference (lax.conv) used to validate the kernel output."""
    d = int(params["dilation"])
    eps = 1e-3
    x = jnp.transpose(x_nchw, (0, 2, 3, 1))
    dn = ("NHWC", "HWIO", "NHWC")

    def conv(inp, w, dil):
        return lax.conv_general_dilated(
            inp, w, window_strides=(1, 1), padding=((dil, dil), (dil, dil)),
            rhs_dilation=(dil, dil), dimension_numbers=dn)

    def bn(inp, g, b, m, v):
        return (inp - m) / jnp.sqrt(v + eps) * g + b

    h = conv(x, params["w1"], d)
    h = bn(h, params["bn1_gamma"], params["bn1_beta"], params["bn1_mean"], params["bn1_var"])
    h = jnp.maximum(h, 0.0)
    h = conv(h, params["w2"], 1)
    h = bn(h, params["bn2_gamma"], params["bn2_beta"], params["bn2_mean"], params["bn2_var"])
    y = jnp.maximum(h + x, 0.0)
    return jnp.transpose(y, (0, 3, 1, 2))


# ----------------------------------------------------------------------------- main
def make_params(key, channels, dilation):
    ks = jax.random.split(key, 8)
    C = channels
    return {
        "dilation": dilation,
        # Conv2d(C, C, 3, bias=False) weights; stored HWIO for the NHWC kernel.
        "w1": 0.1 * jax.random.normal(ks[0], (3, 3, C, C), jnp.float32),
        "w2": 0.1 * jax.random.normal(ks[1], (3, 3, C, C), jnp.float32),
        # BatchNorm2d(C, eps=1e-3) parameters + running stats (eval mode).
        "bn1_gamma": 1.0 + 0.1 * jax.random.normal(ks[2], (C,), jnp.float32),
        "bn1_beta": 0.1 * jax.random.normal(ks[3], (C,), jnp.float32),
        "bn1_mean": 0.05 * jax.random.normal(ks[4], (C,), jnp.float32),
        "bn1_var": 1.0 + 0.1 * jnp.abs(jax.random.normal(ks[5], (C,), jnp.float32)),
        "bn2_gamma": 1.0 + 0.1 * jax.random.normal(ks[6], (C,), jnp.float32),
        "bn2_beta": 0.1 * jax.random.normal(ks[7], (C,), jnp.float32),
        "bn2_mean": jnp.linspace(-0.05, 0.05, C, dtype=jnp.float32),
        "bn2_var": 1.0 + jnp.linspace(0.0, 0.2, C, dtype=jnp.float32),
    }


if __name__ == "__main__":
    key = jax.random.PRNGKey(0)
    k_x, k_p = jax.random.split(key)

    N, C, H, W = 2, 4, 16, 16
    x = jax.random.normal(k_x, (N, C, H, W), jnp.float32)

    for dilation in (1, 2):
        params = make_params(k_p, C, dilation)
        ref = jax.block_until_ready(res_block_reference(x, params))

        # f32 matmul path (exact vs. reference)
        out = jax.block_until_ready(res_block_forward(x, params))
        assert out.shape == (N, C, H, W), out.shape
        np.testing.assert_allclose(np.asarray(out), np.asarray(ref), rtol=1e-4, atol=1e-4)

        # bf16 matmul operands with f32 accumulation (v6e/v7x MXU path), looser tolerance.
        out_bf16 = jax.block_until_ready(
            res_block_forward(x, params, matmul_dtype=jnp.bfloat16))
        np.testing.assert_allclose(np.asarray(out_bf16), np.asarray(ref), rtol=3e-2, atol=3e-2)

    print("KERNEL_OK")
</pallas_src>

<mosaic_0001>
module attributes {stable_mosaic.version = 11 : i64} {
  func.func @fused_res_block_kernel(%arg0: i32, %arg1: memref<1x16x16x4xf32, #tpu.memory_space<vmem>>, %arg2: memref<36x4xf32, #tpu.memory_space<vmem>>, %arg3: memref<1x4xf32, #tpu.memory_space<vmem>>, %arg4: memref<36x4xf32, #tpu.memory_space<vmem>>, %arg5: memref<1x4xf32, #tpu.memory_space<vmem>>, %arg6: memref<1x16x16x4xf32, #tpu.memory_space<vmem>>, %arg7: memref<18x18x4xf32, #tpu.memory_space<vmem>>, %arg8: memref<18x18x4xf32, #tpu.memory_space<vmem>>, %arg9: memref<256x36xf32, #tpu.memory_space<vmem>>) attributes {dimension_semantics = [#tpu.dimension_semantics<parallel>], iteration_bounds = array<i64: 2>, scalar_prefetch = 0 : i64, scratch_operands = 3 : i64, tpu.core_type = #tpu.core_type<tc>, window_params = [{transform_indices = @transform_0, window_bounds = array<i64: 1, 16, 16, 4>}, {pipeline_mode = #tpu.pipeline_mode<synchronous>, transform_indices = @transform_1, window_bounds = array<i64: 36, 4>}, {pipeline_mode = #tpu.pipeline_mode<synchronous>, transform_indices = @transform_2, window_bounds = array<i64: 1, 4>}, {pipeline_mode = #tpu.pipeline_mode<synchronous>, transform_indices = @transform_3, window_bounds = array<i64: 36, 4>}, {pipeline_mode = #tpu.pipeline_mode<synchronous>, transform_indices = @transform_4, window_bounds = array<i64: 1, 4>}, {transform_indices = @transform_5, window_bounds = array<i64: 1, 16, 16, 4>}]} {
    %cst = arith.constant 0.000000e+00 : f32
    %0 = vector.broadcast %cst : f32 to vector<1x18x4xf32>
    %c0 = arith.constant 0 : index
    %c0_0 = arith.constant 0 : index
    %c0_1 = arith.constant 0 : index
    %1 = vector.load %arg7[%c0, %c0_0, %c0_1] : memref<18x18x4xf32, #tpu.memory_space<vmem>>, vector<1x18x4xf32>
    tpu.vector_store %arg7[%c0, %c0_0, %c0_1], %0 {strides = array<i32>} : memref<18x18x4xf32, #tpu.memory_space<vmem>>, vector<1x18x4xf32>,
    %cst_2 = arith.constant 0.000000e+00 : f32
    %2 = vector.broadcast %cst_2 : f32 to vector<1x18x4xf32>
    %c17 = arith.constant 17 : index
    %c0_3 = arith.constant 0 : index
    %c0_4 = arith.constant 0 : index
    %3 = vector.load %arg7[%c17, %c0_3, %c0_4] : memref<18x18x4xf32, #tpu.memory_space<vmem>>, vector<1x18x4xf32>
    tpu.vector_store %arg7[%c17, %c0_3, %c0_4], %2 {strides = array<i32>} : memref<18x18x4xf32, #tpu.memory_space<vmem>>, vector<1x18x4xf32>,
    %cst_5 = arith.constant 0.000000e+00 : f32
    %4 = vector.broadcast %cst_5 : f32 to vector<18x1x4xf32>
    %c0_6 = arith.constant 0 : index
    %c0_7 = arith.constant 0 : index
    %c0_8 = arith.constant 0 : index
    %5 = vector.load %arg7[%c0_6, %c0_7, %c0_8] : memref<18x18x4xf32, #tpu.memory_space<vmem>>, vector<18x1x4xf32>
    tpu.vector_store %arg7[%c0_6, %c0_7, %c0_8], %4 {strides = array<i32>} : memref<18x18x4xf32, #tpu.memory_space<vmem>>, vector<18x1x4xf32>,
    %cst_9 = arith.constant 0.000000e+00 : f32
    %6 = vector.broadcast %cst_9 : f32 to vector<18x1x4xf32>
    %c0_10 = arith.constant 0 : index
    %c17_11 = arith.constant 17 : index
    %c0_12 = arith.constant 0 : index
    %7 = vector.load %arg7[%c0_10, %c17_11, %c0_12] : memref<18x18x4xf32, #tpu.memory_space<vmem>>, vector<18x1x4xf32>
    tpu.vector_store %arg7[%c0_10, %c17_11, %c0_12], %6 {strides = array<i32>} : memref<18x18x4xf32, #tpu.memory_space<vmem>>, vector<18x1x4xf32>,
    %c0_13 = arith.constant 0 : index
    %c0_14 = arith.constant 0 : index
    %c0_15 = arith.constant 0 : index
    %c0_16 = arith.constant 0 : index
    %8 = vector.load %arg1[%c0_13, %c0_14, %c0_15, %c0_16] : memref<1x16x16x4xf32, #tpu.memory_space<vmem>>, vector<1x16x16x4xf32>
    %9 = vector.shape_cast %8 : vector<1x16x16x4xf32> to vector<16x16x4xf32>
    %c1 = arith.constant 1 : index
    %c1_17 = arith.constant 1 : index
    %c0_18 = arith.constant 0 : index
    %10 = vector.load %arg7[%c1, %c1_17, %c0_18] : memref<18x18x4xf32, #tpu.memory_space<vmem>>, vector<16x16x4xf32>
    tpu.vector_store %arg7[%c1, %c1_17, %c0_18], %9 {strides = array<i32>} : memref<18x18x4xf32, #tpu.memory_space<vmem>>, vector<16x16x4xf32>,
    %c0_19 = arith.constant 0 : index
    %c0_20 = arith.constant 0 : index
    %c0_21 = arith.constant 0 : index
    %11 = vector.load %arg7[%c0_19, %c0_20, %c0_21] : memref<18x18x4xf32, #tpu.memory_space<vmem>>, vector<16x16x4xf32>
    %12 = vector.shape_cast %11 : vector<16x16x4xf32> to vector<256x4xf32>
    %c0_22 = arith.constant 0 : index
    %c0_23 = arith.constant 0 : index
    %13 = vector.load %arg9[%c0_22, %c0_23] : memref<256x36xf32, #tpu.memory_space<vmem>>, vector<256x4xf32>
    tpu.vector_store %arg9[%c0_22, %c0_23], %12 {strides = array<i32>} : memref<256x36xf32, #tpu.memory_space<vmem>>, vector<256x4xf32>,
    %c0_24 = arith.constant 0 : index
    %c1_25 = arith.constant 1 : index
    %c0_26 = arith.constant 0 : index
    %14 = vector.load %arg7[%c0_24, %c1_25, %c0_26] : memref<18x18x4xf32, #tpu.memory_space<vmem>>, vector<16x16x4xf32>
    %15 = vector.shape_cast %14 : vector<16x16x4xf32> to vector<256x4xf32>
    %c0_27 = arith.constant 0 : index
    %c4 = arith.constant 4 : index
    %16 = vector.load %arg9[%c0_27, %c4] : memref<256x36xf32, #tpu.memory_space<vmem>>, vector<256x4xf32>
    tpu.vector_store %arg9[%c0_27, %c4], %15 {strides = array<i32>} : memref<256x36xf32, #tpu.memory_space<vmem>>, vector<256x4xf32>,
    %c0_28 = arith.constant 0 : index
    %c2 = arith.constant 2 : index
    %c0_29 = arith.constant 0 : index
    %17 = vector.load %arg7[%c0_28, %c2, %c0_29] : memref<18x18x4xf32, #tpu.memory_space<vmem>>, vector<16x16x4xf32>
    %18 = vector.shape_cast %17 : vector<16x16x4xf32> to vector<256x4xf32>
    %c0_30 = arith.constant 0 : index
    %c8 = arith.constant 8 : index
    %19 = vector.load %arg9[%c0_30, %c8] : memref<256x36xf32, #tpu.memory_space<vmem>>, vector<256x4xf32>
    tpu.vector_store %arg9[%c0_30, %c8], %18 {strides = array<i32>} : memref<256x36xf32, #tpu.memory_space<vmem>>, vector<256x4xf32>,
    %c1_31 = arith.constant 1 : index
    %c0_32 = arith.constant 0 : index
    %c0_33 = arith.constant 0 : index
    %20 = vector.load %arg7[%c1_31, %c0_32, %c0_33] : memref<18x18x4xf32, #tpu.memory_space<vmem>>, vector<16x16x4xf32>
    %21 = vector.shape_cast %20 : vector<16x16x4xf32> to vector<256x4xf32>
    %c0_34 = arith.constant 0 : index
    %c12 = arith.constant 12 : index
    %22 = vector.load %arg9[%c0_34, %c12] : memref<256x36xf32, #tpu.memory_space<vmem>>, vector<256x4xf32>
    tpu.vector_store %arg9[%c0_34, %c12], %21 {strides = array<i32>} : memref<256x36xf32, #tpu.memory_space<vmem>>, vector<256x4xf32>,
    %c1_35 = arith.constant 1 : index
    %c1_36 = arith.constant 1 : index
    %c0_37 = arith.constant 0 : index
    %23 = vector.load %arg7[%c1_35, %c1_36, %c0_37] : memref<18x18x4xf32, #tpu.memory_space<vmem>>, vector<16x16x4xf32>
    %24 = vector.shape_cast %23 : vector<16x16x4xf32> to vector<256x4xf32>
    %c0_38 = arith.constant 0 : index
    %c16 = arith.constant 16 : index
    %25 = vector.load %arg9[%c0_38, %c16] : memref<256x36xf32, #tpu.memory_space<vmem>>, vector<256x4xf32>
    tpu.vector_store %arg9[%c0_38, %c16], %24 {strides = array<i32>} : memref<256x36xf32, #tpu.memory_space<vmem>>, vector<256x4xf32>,
    %c1_39 = arith.constant 1 : index
    %c2_40 = arith.constant 2 : index
    %c0_41 = arith.constant 0 : index
    %26 = vector.load %arg7[%c1_39, %c2_40, %c0_41] : memref<18x18x4xf32, #tpu.memory_space<vmem>>, vector<16x16x4xf32>
    %27 = vector.shape_cast %26 : vector<16x16x4xf32> to vector<256x4xf32>
    %c0_42 = arith.constant 0 : index
    %c20 = arith.constant 20 : index
    %28 = vector.load %arg9[%c0_42, %c20] : memref<256x36xf32, #tpu.memory_space<vmem>>, vector<256x4xf32>
    tpu.vector_store %arg9[%c0_42, %c20], %27 {strides = array<i32>} : memref<256x36xf32, #tpu.memory_space<vmem>>, vector<256x4xf32>,
    %c2_43 = arith.constant 2 : index
    %c0_44 = arith.constant 0 : index
    %c0_45 = arith.constant 0 : index
    %29 = vector.load %arg7[%c2_43, %c0_44, %c0_45] : memref<18x18x4xf32, #tpu.memory_space<vmem>>, vector<16x16x4xf32>
    %30 = vector.shape_cast %29 : vector<16x16x4xf32> to vector<256x4xf32>
    %c0_46 = arith.constant 0 : index
    %c24 = arith.constant 24 : index
    %31 = vector.load %arg9[%c0_46, %c24] : memref<256x36xf32, #tpu.memory_space<vmem>>, vector<256x4xf32>
    tpu.vector_store %arg9[%c0_46, %c24], %30 {strides = array<i32>} : memref<256x36xf32, #tpu.memory_space<vmem>>, vector<256x4xf32>,
    %c2_47 = arith.constant 2 : index
    %c1_48 = arith.constant 1 : index
    %c0_49 = arith.constant 0 : index
    %32 = vector.load %arg7[%c2_47, %c1_48, %c0_49] : memref<18x18x4xf32, #tpu.memory_space<vmem>>, vector<16x16x4xf32>
    %33 = vector.shape_cast %32 : vector<16x16x4xf32> to vector<256x4xf32>
    %c0_50 = arith.constant 0 : index
    %c28 = arith.constant 28 : index
    %34 = vector.load %arg9[%c0_50, %c28] : memref<256x36xf32, #tpu.memory_space<vmem>>, vector<256x4xf32>
    tpu.vector_store %arg9[%c0_50, %c28], %33 {strides = array<i32>} : memref<256x36xf32, #tpu.memory_space<vmem>>, vector<256x4xf32>,
    %c2_51 = arith.constant 2 : index
    %c2_52 = arith.constant 2 : index
    %c0_53 = arith.constant 0 : index
    %35 = vector.load %arg7[%c2_51, %c2_52, %c0_53] : memref<18x18x4xf32, #tpu.memory_space<vmem>>, vector<16x16x4xf32>
    %36 = vector.shape_cast %35 : vector<16x16x4xf32> to vector<256x4xf32>
    %c0_54 = arith.constant 0 : index
    %c32 = arith.constant 32 : index
    %37 = vector.load %arg9[%c0_54, %c32] : memref<256x36xf32, #tpu.memory_space<vmem>>, vector<256x4xf32>
    tpu.vector_store %arg9[%c0_54, %c32], %36 {strides = array<i32>} : memref<256x36xf32, #tpu.memory_space<vmem>>, vector<256x4xf32>,
    %c0_55 = arith.constant 0 : index
    %c0_56 = arith.constant 0 : index
    %38 = vector.load %arg9[%c0_55, %c0_56] : memref<256x36xf32, #tpu.memory_space<vmem>>, vector<256x36xf32>
    %c0_57 = arith.constant 0 : index
    %c0_58 = arith.constant 0 : index
    %39 = vector.load %arg2[%c0_57, %c0_58] : memref<36x4xf32, #tpu.memory_space<vmem>>, vector<36x4xf32>
    %cst_59 = arith.constant dense<0.000000e+00> : vector<256x4xf32>
    %40 = tpu.matmul %38, %39, %cst_59 {dimension_numbers = #tpu.dot_dimension_numbers<[1], [0], [0], [1], [0, 0, 1, 1], [], []>} : vector<256x36xf32>, vector<36x4xf32>, vector<256x4xf32> -> vector<256x4xf32>
    %c0_60 = arith.constant 0 : index
    %c0_61 = arith.constant 0 : index
    %41 = vector.load %arg3[%c0_60, %c0_61] : memref<1x4xf32, #tpu.memory_space<vmem>>, vector<1x4xf32>
    %42 = vector.broadcast %41 : vector<1x4xf32> to vector<256x4xf32>
    %43 = arith.addf %40, %42 : vector<256x4xf32>
    %cst_62 = arith.constant 0.000000e+00 : f32
    %44 = vector.broadcast %cst_62 : f32 to vector<256x4xf32>
    %45 = arith.maximumf %43, %44 : vector<256x4xf32>
    %cst_63 = arith.constant 0.000000e+00 : f32
    %46 = vector.broadcast %cst_63 : f32 to vector<1x18x4xf32>
    %c0_64 = arith.constant 0 : index
    %c0_65 = arith.constant 0 : index
    %c0_66 = arith.constant 0 : index
    %47 = vector.load %arg8[%c0_64, %c0_65, %c0_66] : memref<18x18x4xf32, #tpu.memory_space<vmem>>, vector<1x18x4xf32>
    tpu.vector_store %arg8[%c0_64, %c0_65, %c0_66], %46 {strides = array<i32>} : memref<18x18x4xf32, #tpu.memory_space<vmem>>, vector<1x18x4xf32>,
    %cst_67 = arith.constant 0.000000e+00 : f32
    %48 = vector.broadcast %cst_67 : f32 to vector<1x18x4xf32>
    %c17_68 = arith.constant 17 : index
    %c0_69 = arith.constant 0 : index
    %c0_70 = arith.constant 0 : index
    %49 = vector.load %arg8[%c17_68, %c0_69, %c0_70] : memref<18x18x4xf32, #tpu.memory_space<vmem>>, vector<1x18x4xf32>
    tpu.vector_store %arg8[%c17_68, %c0_69, %c0_70], %48 {strides = array<i32>} : memref<18x18x4xf32, #tpu.memory_space<vmem>>, vector<1x18x4xf32>,
    %cst_71 = arith.constant 0.000000e+00 : f32
    %50 = vector.broadcast %cst_71 : f32 to vector<18x1x4xf32>
    %c0_72 = arith.constant 0 : index
    %c0_73 = arith.constant 0 : index
    %c0_74 = arith.constant 0 : index
    %51 = vector.load %arg8[%c0_72, %c0_73, %c0_74] : memref<18x18x4xf32, #tpu.memory_space<vmem>>, vector<18x1x4xf32>
    tpu.vector_store %arg8[%c0_72, %c0_73, %c0_74], %50 {strides = array<i32>} : memref<18x18x4xf32, #tpu.memory_space<vmem>>, vector<18x1x4xf32>,
    %cst_75 = arith.constant 0.000000e+00 : f32
    %52 = vector.broadcast %cst_75 : f32 to vector<18x1x4xf32>
    %c0_76 = arith.constant 0 : index
    %c17_77 = arith.constant 17 : index
    %c0_78 = arith.constant 0 : index
    %53 = vector.load %arg8[%c0_76, %c17_77, %c0_78] : memref<18x18x4xf32, #tpu.memory_space<vmem>>, vector<18x1x4xf32>
    tpu.vector_store %arg8[%c0_76, %c17_77, %c0_78], %52 {strides = array<i32>} : memref<18x18x4xf32, #tpu.memory_space<vmem>>, vector<18x1x4xf32>,
    %54 = vector.shape_cast %45 : vector<256x4xf32> to vector<16x16x4xf32>
    %c1_79 = arith.constant 1 : index
    %c1_80 = arith.constant 1 : index
    %c0_81 = arith.constant 0 : index
    %55 = vector.load %arg8[%c1_79, %c1_80, %c0_81] : memref<18x18x4xf32, #tpu.memory_space<vmem>>, vector<16x16x4xf32>
    tpu.vector_store %arg8[%c1_79, %c1_80, %c0_81], %54 {strides = array<i32>} : memref<18x18x4xf32, #tpu.memory_space<vmem>>, vector<16x16x4xf32>,
    %c0_82 = arith.constant 0 : index
    %c0_83 = arith.constant 0 : index
    %c0_84 = arith.constant 0 : index
    %56 = vector.load %arg8[%c0_82, %c0_83, %c0_84] : memref<18x18x4xf32, #tpu.memory_space<vmem>>, vector<16x16x4xf32>
    %57 = vector.shape_cast %56 : vector<16x16x4xf32> to vector<256x4xf32>
    %c0_85 = arith.constant 0 : index
    %c0_86 = arith.constant 0 : index
    %58 = vector.load %arg9[%c0_85, %c0_86] : memref<256x36xf32, #tpu.memory_space<vmem>>, vector<256x4xf32>
    tpu.vector_store %arg9[%c0_85, %c0_86], %57 {strides = array<i32>} : memref<256x36xf32, #tpu.memory_space<vmem>>, vector<256x4xf32>,
    %c0_87 = arith.constant 0 : index
    %c1_88 = arith.constant 1 : index
    %c0_89 = arith.constant 0 : index
    %59 = vector.load %arg8[%c0_87, %c1_88, %c0_89] : memref<18x18x4xf32, #tpu.memory_space<vmem>>, vector<16x16x4xf32>
    %60 = vector.shape_cast %59 : vector<16x16x4xf32> to vector<256x4xf32>
    %c0_90 = arith.constant 0 : index
    %c4_91 = arith.constant 4 : index
    %61 = vector.load %arg9[%c0_90, %c4_91] : memref<256x36xf32, #tpu.memory_space<vmem>>, vector<256x4xf32>
    tpu.vector_store %arg9[%c0_90, %c4_91], %60 {strides = array<i32>} : memref<256x36xf32, #tpu.memory_space<vmem>>, vector<256x4xf32>,
    %c0_92 = arith.constant 0 : index
    %c2_93 = arith.constant 2 : index
    %c0_94 = arith.constant 0 : index
    %62 = vector.load %arg8[%c0_92, %c2_93, %c0_94] : memref<18x18x4xf32, #tpu.memory_space<vmem>>, vector<16x16x4xf32>
    %63 = vector.shape_cast %62 : vector<16x16x4xf32> to vector<256x4xf32>
    %c0_95 = arith.constant 0 : index
    %c8_96 = arith.constant 8 : index
    %64 = vector.load %arg9[%c0_95, %c8_96] : memref<256x36xf32, #tpu.memory_space<vmem>>, vector<256x4xf32>
    tpu.vector_store %arg9[%c0_95, %c8_96], %63 {strides = array<i32>} : memref<256x36xf32, #tpu.memory_space<vmem>>, vector<256x4xf32>,
    %c1_97 = arith.constant 1 : index
    %c0_98 = arith.constant 0 : index
    %c0_99 = arith.constant 0 : index
    %65 = vector.load %arg8[%c1_97, %c0_98, %c0_99] : memref<18x18x4xf32, #tpu.memory_space<vmem>>, vector<16x16x4xf32>
    %66 = vector.shape_cast %65 : vector<16x16x4xf32> to vector<256x4xf32>
    %c0_100 = arith.constant 0 : index
    %c12_101 = arith.constant 12 : index
    %67 = vector.load %arg9[%c0_100, %c12_101] : memref<256x36xf32, #tpu.memory_space<vmem>>, vector<256x4xf32>
    tpu.vector_store %arg9[%c0_100, %c12_101], %66 {strides = array<i32>} : memref<256x36xf32, #tpu.memory_space<vmem>>, vector<256x4xf32>,
    %c1_102 = arith.constant 1 : index
    %c1_103 = arith.constant 1 : index
    %c0_104 = arith.constant 0 : index
    %68 = vector.load %arg8[%c1_102, %c1_103, %c0_104] : memref<18x18x4xf32, #tpu.memory_space<vmem>>, vector<16x16x4xf32>
    %69 = vector.shape_cast %68 : vector<16x16x4xf32> to vector<256x4xf32>
    %c0_105 = arith.constant 0 : index
    %c16_106 = arith.constant 16 : index
    %70 = vector.load %arg9[%c0_105, %c16_106] : memref<256x36xf32, #tpu.memory_space<vmem>>, vector<256x4xf32>
    tpu.vector_store %arg9[%c0_105, %c16_106], %69 {strides = array<i32>} : memref<256x36xf32, #tpu.memory_space<vmem>>, vector<256x4xf32>,
    %c1_107 = arith.constant 1 : index
    %c2_108 = arith.constant 2 : index
    %c0_109 = arith.constant 0 : index
    %71 = vector.load %arg8[%c1_107, %c2_108, %c0_109] : memref<18x18x4xf32, #tpu.memory_space<vmem>>, vector<16x16x4xf32>
    %72 = vector.shape_cast %71 : vector<16x16x4xf32> to vector<256x4xf32>
    %c0_110 = arith.constant 0 : index
    %c20_111 = arith.constant 20 : index
    %73 = vector.load %arg9[%c0_110, %c20_111] : memref<256x36xf32, #tpu.memory_space<vmem>>, vector<256x4xf32>
    tpu.vector_store %arg9[%c0_110, %c20_111], %72 {strides = array<i32>} : memref<256x36xf32, #tpu.memory_space<vmem>>, vector<256x4xf32>,
    %c2_112 = arith.constant 2 : index
    %c0_113 = arith.constant 0 : index
    %c0_114 = arith.constant 0 : index
    %74 = vector.load %arg8[%c2_112, %c0_113, %c0_114] : memref<18x18x4xf32, #tpu.memory_space<vmem>>, vector<16x16x4xf32>
    %75 = vector.shape_cast %74 : vector<16x16x4xf32> to vector<256x4xf32>
    %c0_115 = arith.constant 0 : index
    %c24_116 = arith.constant 24 : index
    %76 = vector.load %arg9[%c0_115, %c24_116] : memref<256x36xf32, #tpu.memory_space<vmem>>, vector<256x4xf32>
    tpu.vector_store %arg9[%c0_115, %c24_116], %75 {strides = array<i32>} : memref<256x36xf32, #tpu.memory_space<vmem>>, vector<256x4xf32>,
    %c2_117 = arith.constant 2 : index
    %c1_118 = arith.constant 1 : index
    %c0_119 = arith.constant 0 : index
    %77 = vector.load %arg8[%c2_117, %c1_118, %c0_119] : memref<18x18x4xf32, #tpu.memory_space<vmem>>, vector<16x16x4xf32>
    %78 = vector.shape_cast %77 : vector<16x16x4xf32> to vector<256x4xf32>
    %c0_120 = arith.constant 0 : index
    %c28_121 = arith.constant 28 : index
    %79 = vector.load %arg9[%c0_120, %c28_121] : memref<256x36xf32, #tpu.memory_space<vmem>>, vector<256x4xf32>
    tpu.vector_store %arg9[%c0_120, %c28_121], %78 {strides = array<i32>} : memref<256x36xf32, #tpu.memory_space<vmem>>, vector<256x4xf32>,
    %c2_122 = arith.constant 2 : index
    %c2_123 = arith.constant 2 : index
    %c0_124 = arith.constant 0 : index
    %80 = vector.load %arg8[%c2_122, %c2_123, %c0_124] : memref<18x18x4xf32, #tpu.memory_space<vmem>>, vector<16x16x4xf32>
    %81 = vector.shape_cast %80 : vector<16x16x4xf32> to vector<256x4xf32>
    %c0_125 = arith.constant 0 : index
    %c32_126 = arith.constant 32 : index
    %82 = vector.load %arg9[%c0_125, %c32_126] : memref<256x36xf32, #tpu.memory_space<vmem>>, vector<256x4xf32>
    tpu.vector_store %arg9[%c0_125, %c32_126], %81 {strides = array<i32>} : memref<256x36xf32, #tpu.memory_space<vmem>>, vector<256x4xf32>,
    %c0_127 = arith.constant 0 : index
    %c0_128 = arith.constant 0 : index
    %83 = vector.load %arg9[%c0_127, %c0_128] : memref<256x36xf32, #tpu.memory_space<vmem>>, vector<256x36xf32>
    %c0_129 = arith.constant 0 : index
    %c0_130 = arith.constant 0 : index
    %84 = vector.load %arg4[%c0_129, %c0_130] : memref<36x4xf32, #tpu.memory_space<vmem>>, vector<36x4xf32>
    %cst_131 = arith.constant dense<0.000000e+00> : vector<256x4xf32>
    %85 = tpu.matmul %83, %84, %cst_131 {dimension_numbers = #tpu.dot_dimension_numbers<[1], [0], [0], [1], [0, 0, 1, 1], [], []>} : vector<256x36xf32>, vector<36x4xf32>, vector<256x4xf32> -> vector<256x4xf32>
    %c0_132 = arith.constant 0 : index
    %c0_133 = arith.constant 0 : index
    %86 = vector.load %arg5[%c0_132, %c0_133] : memref<1x4xf32, #tpu.memory_space<vmem>>, vector<1x4xf32>
    %87 = vector.broadcast %86 : vector<1x4xf32> to vector<256x4xf32>
    %88 = arith.addf %85, %87 : vector<256x4xf32>
    %c0_134 = arith.constant 0 : index
    %c0_135 = arith.constant 0 : index
    %c0_136 = arith.constant 0 : index
    %c0_137 = arith.constant 0 : index
    %89 = vector.load %arg1[%c0_134, %c0_135, %c0_136, %c0_137] : memref<1x16x16x4xf32, #tpu.memory_space<vmem>>, vector<1x16x16x4xf32>
    %90 = vector.shape_cast %89 : vector<1x16x16x4xf32> to vector<16x16x4xf32>
    %91 = vector.shape_cast %90 : vector<16x16x4xf32> to vector<256x4xf32>
    %92 = arith.addf %88, %91 : vector<256x4xf32>
    %cst_138 = arith.constant 0.000000e+00 : f32
    %93 = vector.broadcast %cst_138 : f32 to vector<256x4xf32>
    %94 = arith.maximumf %92, %93 : vector<256x4xf32>
    %95 = vector.shape_cast %94 : vector<256x4xf32> to vector<16x16x4xf32>
    %c0_139 = arith.constant 0 : index
    %c0_140 = arith.constant 0 : index
    %c0_141 = arith.constant 0 : index
    %c0_142 = arith.constant 0 : index
    %96 = vector.load %arg6[%c0_139, %c0_140, %c0_141, %c0_142] : memref<1x16x16x4xf32, #tpu.memory_space<vmem>>, vector<1x16x16x4xf32>
    %97 = vector.shape_cast %96 : vector<1x16x16x4xf32> to vector<16x16x4xf32>
    %98 = vector.shape_cast %95 : vector<16x16x4xf32> to vector<1x16x16x4xf32>
    tpu.vector_store %arg6[%c0_139, %c0_140, %c0_141, %c0_142], %98 {strides = array<i32>} : memref<1x16x16x4xf32, #tpu.memory_space<vmem>>, vector<1x16x16x4xf32>,
    return
  }
  func.func @transform_0(%arg0: i32) -> (i32, i32, i32, i32) {
    %c0_i32 = arith.constant 0 : i32
    %c0_i32_0 = arith.constant 0 : i32
    %c0_i32_1 = arith.constant 0 : i32
    %c0_i32_2 = arith.constant 0 : i32
    return %arg0, %c0_i32, %c0_i32_0, %c0_i32_1 : i32, i32, i32, i32
  }
  func.func @transform_1(%arg0: i32) -> (i32, i32) {
    %c0_i32 = arith.constant 0 : i32
    %c0_i32_0 = arith.constant 0 : i32
    %c0_i32_1 = arith.constant 0 : i32
    return %c0_i32, %c0_i32_0 : i32, i32
  }
  func.func @transform_2(%arg0: i32) -> (i32, i32) {
    %c0_i32 = arith.constant 0 : i32
    %c0_i32_0 = arith.constant 0 : i32
    %c0_i32_1 = arith.constant 0 : i32
    return %c0_i32, %c0_i32_0 : i32, i32
  }
  func.func @transform_3(%arg0: i32) -> (i32, i32) {
    %c0_i32 = arith.constant 0 : i32
    %c0_i32_0 = arith.constant 0 : i32
    %c0_i32_1 = arith.constant 0 : i32
    return %c0_i32, %c0_i32_0 : i32, i32
  }
  func.func @transform_4(%arg0: i32) -> (i32, i32) {
    %c0_i32 = arith.constant 0 : i32
    %c0_i32_0 = arith.constant 0 : i32
    %c0_i32_1 = arith.constant 0 : i32
    return %c0_i32, %c0_i32_0 : i32, i32
  }
  func.func @transform_5(%arg0: i32) -> (i32, i32, i32, i32) {
    %c0_i32 = arith.constant 0 : i32
    %c0_i32_0 = arith.constant 0 : i32
    %c0_i32_1 = arith.constant 0 : i32
    %c0_i32_2 = arith.constant 0 : i32
    return %arg0, %c0_i32, %c0_i32_0, %c0_i32_1 : i32, i32, i32, i32
  }
}

</mosaic_0001>

<bundles_post_ra>
// kernel: tpu_custom_call.1
= control target key start
LH: loop header
LB: loop body
LE: loop exit
PB: predicated region body
PF: predicated region fallthrough
CT: control target
= control target key end

     0   :  { %s4500_s18 = smov 0   ;;  %s6912_s0 = inlined_call_operand.vmem [shape: f32[2,16,16,4], index: 0, kind: input, shape index: {}]   ;;  %s6913_s1 = inlined_call_operand.vmem [shape: f32[36,4], index: 1, kind: input, shape index: {}]   ;;  %s6914_s2 = inlined_call_operand.vmem [shape: f32[1,4], index: 2, kind: input, shape index: {}]   ;;  %s6915_s3 = inlined_call_operand.vmem [shape: f32[36,4], index: 3, kind: input, shape index: {}]   ;;  %s6916_s4 = inlined_call_operand.vmem [shape: f32[1,4], index: 4, kind: input, shape index: {}]   ;;  %s6917_s5 = inlined_call_operand.vmem [shape: f32[2,16,16,4], index: 5, kind: output, shape index: {}]  }
   0x1 LB: > { %s4345_s19 = sadd.s32 4294967295, %s4459_s18   ;;  %p4349_p0 = scmp.ge.s32.totalorder %s4459_s18, 1  ;;  %s4459_s18 = sphi %s4500_s18, %s15_s18  }
   0x2   : > { %p187_p1 = scmp.lt.s32.totalorder %s4459_s18, 3 }
   0x4   : > { %p188_p2 = pnand %p4349_p0, %p187_p1 }
   0x6   : > { %191 = sbr.rel (%p188_p2) target bundleno = 1955 (0x7a3), region = 40 }
   0xb   : > { %vm225_vm0 = vcmask 31744   ;;  %v4461_v0 = vmov 0.0   ;;  %vm234_vm1 = vcmask 24576   ;;  %s4462_s20 = smov 4   ;;  %p215_p3 = scmp.lt.s32.totalorder %s4345_s19, 1  ;;  %vm228_vm2 = vcmask 25600  }
   0xc   : > { %226 = vst.msk [vmem:[#allocation2] sm:$0xff] %vm225_vm0, %v4461_v0  ;;  %vm560_vm3 = vcmask 64544   ;;  %s4463_s25 = smov 8   ;;  %s4464_s26 = smov 12   ;;  %vm753_vm4 = vcmask 97344   ;;  %vm946_vm5 = vcmask 130144  }
   0xd   : > { %227 = vst.msk [vmem:[#allocation2 + $0x8] sm:$0xff] %vm225_vm0, %v4461_v0  ;;  %s7109_s19 = smov (!%p215_p3, %s4345_s19), 1  ;;  %s4465_s27 = smov 16   ;;  %vm1139_vm6 = vcmask 162944   ;;  %vm1332_vm7 = vcmask 195744   ;;  %vm1526_vm8 = vcmask 228544  }
   0xe   : > { %235 = vst.msk [vmem:[#allocation2] sm:$0x1] %vm234_vm1, %v4461_v0  ;;  %s4422_s21 = sshll.u32 %s7109_s19, 8  ;;  %s4466_s28 = smov 20   ;;  %vm1719_vm9 = vcmask 261344   ;;  %vm2083_vm10 = vcmask 1043456  }
   0xf   : > { %231 = vst.msk [vmem:[#allocation2 + $0x198] sm:$0xff] %vm225_vm0, %v4461_v0  ;;  %s4671_s24 = scalar_lea.vmem %s6912_s0, %s4422_s21  ;;  %s4467_s29 = smov 24   ;;  %vm1912_vm11 = vcmask 294144   ;;  %vm1986_vm12 = vcmask 293888  }
  0x10   : > { %232 = vst.msk [vmem:[#allocation2 + $0x1a0] sm:$0xff] %vm225_vm0, %v4461_v0  ;;  %v271_v2 = vld [vmem:[%s4671_s24] sm:$0xff]  ;;  %v272_v5 = vld [vmem:[%s4671_s24 + $0x8] sm:$0xff]  ;;  %v278_v6 = vld [vmem:[%s4671_s24 + $0x38] sm:$0xff]  ;;  %s4468_s30 = smov 28   ;;  %s4469_s6 = smov 32  }
  0x11   : > { %236 = vst.msk [vmem:[#allocation2 + $0x18] sm:$0x1] %vm234_vm1, %v4461_v0  ;;  %v275_v4 = vld [vmem:[%s4671_s24 + $0x20] sm:$0xff]  ;;  %v273_v7 = vld [vmem:[%s4671_s24 + $0x10] sm:$0xff]  ;;  %v276_v8 = vld [vmem:[%s4671_s24 + $0x28] sm:$0xff]  ;;  %s6719_s15 = scalar_lea.vmem %s6917_s5, %s4422_s21 }
  0x12   : > { %237 = vst.msk [vmem:[#allocation2 + $0x30] sm:$0x1] %vm234_vm1, %v4461_v0  ;;  %v281_v9 = vld [vmem:[%s4671_s24 + $0x50] sm:$0xff]  ;;  %v274_v11 = vld [vmem:[%s4671_s24 + $0x18] sm:$0xff]  ;;  %v279_v12 = vld [vmem:[%s4671_s24 + $0x40] sm:$0xff] }
  0x13   : > { %238 = vst.msk [vmem:[#allocation2 + $0x48] sm:$0x1] %vm234_vm1, %v4461_v0  ;;  %v284_v13 = vld [vmem:[%s4671_s24 + $0x68] sm:$0xff]  ;;  %v277_v14 = vld [vmem:[%s4671_s24 + $0x30] sm:$0xff]  ;;  %v282_v16 = vld [vmem:[%s4671_s24 + $0x58] sm:$0xff] }
  0x14   : > { %v400_v1 = vld [vmem:[#allocation2 + $0x1] sm:$0xff]  ;;  %239 = vst.msk [vmem:[#allocation2 + $0x60] sm:$0x1] %vm234_vm1, %v4461_v0  ;;  %v285_v21 = vld [vmem:[%s4671_s24 + $0x70] sm:$0xff]  ;;  %v290_v22 = vld [vmem:[%s4671_s24 + $0x98] sm:$0xff] }
  0x15   : > { %464 = vrot.lane.b32.xlu0 %v400_v1, %s4462_s20  ;;  %240 = vst.msk [vmem:[#allocation2 + $0x78] sm:$0x1] %vm234_vm1, %v4461_v0  ;;  %v287_v17 = vld [vmem:[%s4671_s24 + $0x80] sm:$0xff]  ;;  %v280_v19 = vld [vmem:[%s4671_s24 + $0x48] sm:$0xff]  ;;  %v293_v28 = vld [vmem:[%s4671_s24 + $0xb0] sm:$0xff] }
  0x16   : > { %241 = vst.msk [vmem:[#allocation2 + $0x90] sm:$0x1] %vm234_vm1, %v4461_v0  ;;  %v283_v23 = vld [vmem:[%s4671_s24 + $0x60] sm:$0xff]  ;;  %v288_v25 = vld [vmem:[%s4671_s24 + $0x88] sm:$0xff]  ;;  %v286_v29 = vld [vmem:[%s4671_s24 + $0x78] sm:$0xff] }
  0x17   : > { %242 = vst.msk [vmem:[#allocation2 + $0xa8] sm:$0x1] %vm234_vm1, %v4461_v0  ;;  %v291_v30 = vld [vmem:[%s4671_s24 + $0xa0] sm:$0xff]  ;;  %v296_v34 = vld [vmem:[%s4671_s24 + $0xc8] sm:$0xff]  ;;  %v289_v35 = vld [vmem:[%s4671_s24 + $0x90] sm:$0xff] }
  0x18   : > { %243 = vst.msk [vmem:[#allocation2 + $0xc0] sm:$0x1] %vm234_vm1, %v4461_v0  ;;  %v294_v36 = vld [vmem:[%s4671_s24 + $0xb8] sm:$0xff]  ;;  %v299_v40 = vld [vmem:[%s4671_s24 + $0xe0] sm:$0xff]  ;;  %v292_v41 = vld [vmem:[%s4671_s24 + $0xa8] sm:$0xff] }
  0x19   : > { %244 = vst.msk [vmem:[#allocation2 + $0xd8] sm:$0x1] %vm234_vm1, %v4461_v0  ;;  %v297_v42 = vld [vmem:[%s4671_s24 + $0xd0] sm:$0xff]  ;;  %v295_v46 = vld [vmem:[%s4671_s24 + $0xc0] sm:$0xff]  ;;  %v300_v47 = vld [vmem:[%s4671_s24 + $0xe8] sm:$0xff] }
  0x1a   : > { %245 = vst.msk [vmem:[#allocation2 + $0xf0] sm:$0x1] %vm234_vm1, %v4461_v0  ;;  %v298_v51 = vld [vmem:[%s4671_s24 + $0xd8] sm:$0xff]  ;;  %v336_v62 = vld [vmem:[#allocation2] sm:$0xff] }
  0x1b   : > { %246 = vst.msk [vmem:[#allocation2 + $0x108] sm:$0x1] %vm234_vm1, %v4461_v0 }
  0x1c   : > { %247 = vst.msk [vmem:[#allocation2 + $0x120] sm:$0x1] %vm234_vm1, %v4461_v0 }
  0x1d   : > { %248 = vst.msk [vmem:[#allocation2 + $0x138] sm:$0x1] %vm234_vm1, %v4461_v0 }
  0x1e   : > { %249 = vst.msk [vmem:[#allocation2 + $0x150] sm:$0x1] %vm234_vm1, %v4461_v0 }
  0x1f   : > { %250 = vst.msk [vmem:[#allocation2 + $0x168] sm:$0x1] %vm234_vm1, %v4461_v0 }
  0x20   : > { %251 = vst.msk [vmem:[#allocation2 + $0x180] sm:$0x1] %vm234_vm1, %v4461_v0 }
  0x21   : > { %254 = vst.msk [vmem:[#allocation2 + $0x29] sm:$0x1] %vm234_vm1, %v4461_v0 }
  0x22   : > { %255 = vst.msk [vmem:[#allocation2 + $0x41] sm:$0x1] %vm234_vm1, %v4461_v0 }
  0x23   : > { %256 = vst.msk [vmem:[#allocation2 + $0x59] sm:$0x1] %vm234_vm1, %v4461_v0 }
  0x24   : > { %257 = vst.msk [vmem:[#allocation2 + $0x71] sm:$0x1] %vm234_vm1, %v4461_v0 }
  0x25   : > { %258 = vst.msk [vmem:[#allocation2 + $0x89] sm:$0x1] %vm234_vm1, %v4461_v0 }
  0x26   : > { %259 = vst.msk [vmem:[#allocation2 + $0xa1] sm:$0x1] %vm234_vm1, %v4461_v0 }
  0x27   : > { %260 = vst.msk [vmem:[#allocation2 + $0xb9] sm:$0x1] %vm234_vm1, %v4461_v0 }
  0x28   : > { %261 = vst.msk [vmem:[#allocation2 + $0xd1] sm:$0x1] %vm234_vm1, %v4461_v0 }
  0x29   : > { %262 = vst.msk [vmem:[#allocation2 + $0xe9] sm:$0x1] %vm234_vm1, %v4461_v0 }
  0x2a   : > { %263 = vst.msk [vmem:[#allocation2 + $0x101] sm:$0x1] %vm234_vm1, %v4461_v0 }
  0x2b   : > { %264 = vst.msk [vmem:[#allocation2 + $0x119] sm:$0x1] %vm234_vm1, %v4461_v0 }
  0x2c   : > { %265 = vst.msk [vmem:[#allocation2 + $0x131] sm:$0x1] %vm234_vm1, %v4461_v0 }
  0x2d   : > { %266 = vst.msk [vmem:[#allocation2 + $0x149] sm:$0x1] %vm234_vm1, %v4461_v0 }
  0x2e   : > { %267 = vst.msk [vmem:[#allocation2 + $0x161] sm:$0x1] %vm234_vm1, %v4461_v0 }
  0x2f   : > { %268 = vst.msk [vmem:[#allocation2 + $0x179] sm:$0x1] %vm234_vm1, %v4461_v0 }
  0x30   : > { %269 = vst.msk [vmem:[#allocation2 + $0x191] sm:$0x1] %vm234_vm1, %v4461_v0 }
  0x31   : > { %2232 = vst.msk [vmem:[#allocation3] sm:$0xff] %vm225_vm0, %v4461_v0 }
  0x32   : > { %2233 = vst.msk [vmem:[#allocation3 + $0x8] sm:$0xff] %vm225_vm0, %v4461_v0 }
  0x33   : > { %2236 = vst.msk [vmem:[#allocation3 + $0x198] sm:$0xff] %vm225_vm0, %v4461_v0 }
  0x34   : > { %2237 = vst.msk [vmem:[#allocation3 + $0x1a0] sm:$0xff] %vm225_vm0, %v4461_v0 }
  0x35   : > { %2240 = vst.msk [vmem:[#allocation3 + $0x18] sm:$0x1] %vm234_vm1, %v4461_v0 }
  0x36   : > { %2241 = vst.msk [vmem:[#allocation3 + $0x30] sm:$0x1] %vm234_vm1, %v4461_v0 }
  0x37   : > { %2242 = vst.msk [vmem:[#allocation3 + $0x48] sm:$0x1] %vm234_vm1, %v4461_v0 }
  0x38   : > { %2243 = vst.msk [vmem:[#allocation3 + $0x60] sm:$0x1] %vm234_vm1, %v4461_v0 }
  0x39   : > { %2244 = vst.msk [vmem:[#allocation3 + $0x78] sm:$0x1] %vm234_vm1, %v4461_v0 }
  0x3a   : > { %2245 = vst.msk [vmem:[#allocation3 + $0x90] sm:$0x1] %vm234_vm1, %v4461_v0 }
  0x3b   : > { %2246 = vst.msk [vmem:[#allocation3 + $0xa8] sm:$0x1] %vm234_vm1, %v4461_v0 }
  0x3c   : > { %2247 = vst.msk [vmem:[#allocation3 + $0xc0] sm:$0x1] %vm234_vm1, %v4461_v0 }
  0x3d   : > { %2248 = vst.msk [vmem:[#allocation3 + $0xd8] sm:$0x1] %vm234_vm1, %v4461_v0 }
  0x3e   : > { %2249 = vst.msk [vmem:[#allocation3 + $0xf0] sm:$0x1] %vm234_vm1, %v4461_v0 }
  0x3f   : > { %2250 = vst.msk [vmem:[#allocation3 + $0x108] sm:$0x1] %vm234_vm1, %v4461_v0 }
  0x40   : > { %2251 = vst.msk [vmem:[#allocation3 + $0x120] sm:$0x1] %vm234_vm1, %v4461_v0 }
  0x41   : > { %2252 = vst.msk [vmem:[#allocation3 + $0x138] sm:$0x1] %vm234_vm1, %v4461_v0 }
  0x42   : > { %2253 = vst.msk [vmem:[#allocation3 + $0x150] sm:$0x1] %vm234_vm1, %v4461_v0 }
  0x43   : > { %2254 = vst.msk [vmem:[#allocation3 + $0x168] sm:$0x1] %vm234_vm1, %v4461_v0 }
  0x44   : > { %2255 = vst.msk [vmem:[#allocation3 + $0x180] sm:$0x1] %vm234_vm1, %v4461_v0 }
  0x45   : > { %2258 = vst.msk [vmem:[#allocation3 + $0x29] sm:$0x1] %vm234_vm1, %v4461_v0 }
  0x46   : > { %2259 = vst.msk [vmem:[#allocation3 + $0x41] sm:$0x1] %vm234_vm1, %v4461_v0 }
  0x47   : > { %2260 = vst.msk [vmem:[#allocation3 + $0x59] sm:$0x1] %vm234_vm1, %v4461_v0 }
  0x48   : > { %2261 = vst.msk [vmem:[#allocation3 + $0x71] sm:$0x1] %vm234_vm1, %v4461_v0 }
  0x49   : > { %2262 = vst.msk [vmem:[#allocation3 + $0x89] sm:$0x1] %vm234_vm1, %v4461_v0 }
  0x4a   : > { %2263 = vst.msk [vmem:[#allocation3 + $0xa1] sm:$0x1] %vm234_vm1, %v4461_v0 }
  0x4b   : > { %2264 = vst.msk [vmem:[#allocation3 + $0xb9] sm:$0x1] %vm234_vm1, %v4461_v0 }
  0x4c   : > { %2265 = vst.msk [vmem:[#allocation3 + $0xd1] sm:$0x1] %vm234_vm1, %v4461_v0 }
  0x4d   : > { %2266 = vst.msk [vmem:[#allocation3 + $0xe9] sm:$0x1] %vm234_vm1, %v4461_v0 }
  0x4e   : > { %2267 = vst.msk [vmem:[#allocation3 + $0x101] sm:$0x1] %vm234_vm1, %v4461_v0 }
  0x4f   : > { %2268 = vst.msk [vmem:[#allocation3 + $0x119] sm:$0x1] %vm234_vm1, %v4461_v0 }
  0x50   : > { %2269 = vst.msk [vmem:[#allocation3 + $0x131] sm:$0x1] %vm234_vm1, %v4461_v0 }
  0x51   : > { %2270 = vst.msk [vmem:[#allocation3 + $0x149] sm:$0x1] %vm234_vm1, %v4461_v0 }
  0x52   : > { %2271 = vst.msk [vmem:[#allocation3 + $0x161] sm:$0x1] %vm234_vm1, %v4461_v0 }
  0x53   : > { %2272 = vst.msk [vmem:[#allocation3 + $0x179] sm:$0x1] %vm234_vm1, %v4461_v0 }
  0x54   : > { %2273 = vst.msk [vmem:[#allocation3 + $0x191] sm:$0x1] %vm234_vm1, %v4461_v0 }
  0x55   : > { %229 = vst.msk [vmem:[#allocation2 + $0x10] sm:$0x3] %vm228_vm2, %v4461_v0 }
  0x56   : > { %233 = vst.msk [vmem:[#allocation2 + $0x1a8] sm:$0x3] %vm228_vm2, %v4461_v0 }
  0x57   : > { %252 = vst.msk [vmem:[#allocation2 + $0x198] sm:$0x1] %vm234_vm1, %v4461_v0 }
  0x58   : > { %253 = vst.msk [vmem:[#allocation2 + $0x11] sm:$0x1] %vm234_vm1, %v4461_v0 }
  0x59   : > { %2234 = vst.msk [vmem:[#allocation3 + $0x10] sm:$0x3] %vm228_vm2, %v4461_v0 }
  0x5a   : > { %2238 = vst.msk [vmem:[#allocation3 + $0x1a8] sm:$0x3] %vm228_vm2, %v4461_v0 }
  0x5b   : > { %2239 = vst.msk [vmem:[#allocation3] sm:$0x1] %vm234_vm1, %v4461_v0 }
  0x5c   : > { %v401_v3 = vld [vmem:[#allocation2 + $0x9] sm:$0xff]  ;;  %2256 = vst.msk [vmem:[#allocation3 + $0x198] sm:$0x1] %vm234_vm1, %v4461_v0 }
  0x5d   : > { %466 = vrot.lane.b32.xlu0 %v401_v3, %s4462_s20  ;;  %304 = vst.msk [vmem:[#allocation2 + $0x19] sm:$0xff] %vm225_vm0, %v271_v2  ;;  %v337_v3 = vld [vmem:[#allocation2 + $0x8] sm:$0xff] }
  0x5e   : > { %270 = vst.msk [vmem:[#allocation2 + $0x1a9] sm:$0x1] %vm234_vm1, %v4461_v0 }
  0x5f   : > { %2257 = vst.msk [vmem:[#allocation3 + $0x11] sm:$0x1] %vm234_vm1, %v4461_v0 }
  0x60   : > { %2274 = vst.msk [vmem:[#allocation3 + $0x1a9] sm:$0x1] %vm234_vm1, %v4461_v0  ;;  %v594_v0 = vld [vmem:[#allocation2 + $0xa] sm:$0xff] }
  0x61   : > { %308 = vst.msk [vmem:[#allocation2 + $0x49] sm:$0xff] %vm225_vm0, %v275_v4 }
  0x62   : > { %305 = vst.msk [vmem:[#allocation2 + $0x21] sm:$0xff] %vm225_vm0, %v272_v5 }
  0x63   : > { %311 = vst.msk [vmem:[#allocation2 + $0x69] sm:$0xff] %vm225_vm0, %v278_v6 }
  0x64   : > { %v4699_v10 = vld [vmem:[#allocation2 + $0x19] sm:$0xff]  ;;  %306 = vst.msk [vmem:[#allocation2 + $0x31] sm:$0xff] %vm225_vm0, %v273_v7  ;;  %v593_v7 = vld [vmem:[#allocation2 + $0x2] sm:$0xff] }
  0x65   : > { %468 = vrot.lane.b32.xlu1 %v4699_v10, %s4462_s20  ;;  %309 = vst.msk [vmem:[#allocation2 + $0x51] sm:$0xff] %vm225_vm0, %v276_v8  ;;  %v4880_v6 = vld [vmem:[#allocation2 + $0x18] sm:$0xff] }
  0x66   : > { %314 = vst.msk [vmem:[#allocation2 + $0x91] sm:$0xff] %vm225_vm0, %v281_v9 }
  0x67   : > { %307 = vst.msk [vmem:[#allocation2 + $0x39] sm:$0xff] %vm225_vm0, %v274_v11 }
  0x68   : > { %v4711_v15 = vld [vmem:[#allocation2 + $0x49] sm:$0xff]  ;;  %312 = vst.msk [vmem:[#allocation2 + $0x79] sm:$0xff] %vm225_vm0, %v279_v12 }
  0x69   : > { %476 = vrot.lane.b32.xlu0 %v4711_v15, %s4462_s20  ;;  %317 = vst.msk [vmem:[#allocation2 + $0xb1] sm:$0xff] %vm225_vm0, %v284_v13  ;;  %v4719_v18 = vld [vmem:[#allocation2 + $0x21] sm:$0xff] }
  0x6a   : > { %310 = vst.msk [vmem:[#allocation2 + $0x61] sm:$0xff] %vm225_vm0, %v277_v14  ;;  %v4735_v24 = vld [vmem:[#allocation2 + $0x69] sm:$0xff]  ;;  %v4888_v8 = vld [vmem:[#allocation2 + $0x1a] sm:$0xff] }
  0x6b   : > { %v4723_v20 = vld [vmem:[#allocation2 + $0x31] sm:$0xff]  ;;  %315 = vst.msk [vmem:[#allocation2 + $0x99] sm:$0xff] %vm225_vm0, %v282_v16  ;;  %v4893_v9 = vld [vmem:[#allocation2 + $0x48] sm:$0xff]  ;;  %v4901_v13 = vld [vmem:[#allocation2 + $0x20] sm:$0xff] }
  0x6c   : > { %472 = vrot.lane.b32.xlu2 %v4723_v20, %s4462_s20  ;;  %320 = vst.msk [vmem:[#allocation2 + $0xd9] sm:$0xff] %vm225_vm0, %v287_v17  ;;  %v4746_v27 = vld [vmem:[#allocation2 + $0x51] sm:$0xff]  ;;  %v4909_v14 = vld [vmem:[#allocation2 + $0x22] sm:$0xff] }
  0x6d   : > { %470 = vrot.lane.b32.xlu1 %v4719_v18, %s4462_s20  ;;  %313 = vst.msk [vmem:[#allocation2 + $0x81] sm:$0xff] %vm225_vm0, %v280_v19  ;;  %v4756_v31 = vld [vmem:[#allocation2 + $0x91] sm:$0xff] }
  0x6e   : > { %318 = vst.msk [vmem:[#allocation2 + $0xc1] sm:$0xff] %vm225_vm0, %v285_v21  ;;  %v4743_v26 = vld [vmem:[#allocation2 + $0x39] sm:$0xff]  ;;  %v4860_v63 = vld [vmem:[#allocation2 + $0x30] sm:$0xff] }
  0x6f   : > { %323 = vst.msk [vmem:[#allocation2 + $0xf9] sm:$0xff] %vm225_vm0, %v290_v22  ;;  %v4764_v33 = vld [vmem:[#allocation2 + $0x79] sm:$0xff] }
  0x70   : > { %316 = vst.msk [vmem:[#allocation2 + $0xa9] sm:$0xff] %vm225_vm0, %v283_v23  ;;  %v4774_v37 = vld [vmem:[#allocation2 + $0xb1] sm:$0xff]  ;;  %v4911_v16 = vld [vmem:[#allocation2 + $0x3a] sm:$0xff] }
  0x71   : > { %482 = vrot.lane.b32.xlu0 %v4735_v24, %s4462_s20  ;;  %321 = vst.msk [vmem:[#allocation2 + $0xe1] sm:$0xff] %vm225_vm0, %v288_v25  ;;  %v4762_v32 = vld [vmem:[#allocation2 + $0x61] sm:$0xff]  ;;  %v4875_v4 = vld [vmem:[#allocation2 + $0x38] sm:$0xff]  ;;  %v4925_v23 = vld [vmem:[#allocation2 + $0x50] sm:$0xff] }
  0x72   : > { %326 = vst.msk [vmem:[#allocation2 + $0x121] sm:$0xff] %vm225_vm0, %v293_v28  ;;  %v4782_v39 = vld [vmem:[#allocation2 + $0x99] sm:$0xff]  ;;  %v4917_v17 = vld [vmem:[#allocation2 + $0x68] sm:$0xff] }
  0x73   : > { %319 = vst.msk [vmem:[#allocation2 + $0xc9] sm:$0xff] %vm225_vm0, %v286_v29  ;;  %v4792_v43 = vld [vmem:[#allocation2 + $0xd9] sm:$0xff]  ;;  %v4932_v25 = vld [vmem:[#allocation2 + $0x4a] sm:$0xff]  ;;  %v4936_v28 = vld [vmem:[#allocation2 + $0x62] sm:$0xff] }
  0x74   : > { %474 = vrot.lane.b32.xlu2 %v4743_v26, %s4462_s20  ;;  %324 = vst.msk [vmem:[#allocation2 + $0x109] sm:$0xff] %vm225_vm0, %v291_v30  ;;  %v4780_v38 = vld [vmem:[#allocation2 + $0x81] sm:$0xff]  ;;  %v4877_v5 = vld [vmem:[#allocation2 + $0x32] sm:$0xff] }
  0x75   : > { %478 = vrot.lane.b32.xlu1 %v4746_v27, %s4462_s20  ;;  %329 = vst.msk [vmem:[#allocation2 + $0x141] sm:$0xff] %vm225_vm0, %v296_v34  ;;  %v4800_v45 = vld [vmem:[#allocation2 + $0xc1] sm:$0xff]  ;;  %v4897_v12 = vld [vmem:[#allocation2 + $0x52] sm:$0xff] }
  0x76   : > { %322 = vst.msk [vmem:[#allocation2 + $0xf1] sm:$0xff] %vm225_vm0, %v289_v35  ;;  %v4809_v48 = vld [vmem:[#allocation2 + $0xf9] sm:$0xff]  ;;  %v4942_v29 = vld [vmem:[#allocation2 + $0x90] sm:$0xff] }
  0x77   : > { %327 = vst.msk [vmem:[#allocation2 + $0x129] sm:$0xff] %vm225_vm0, %v294_v36  ;;  %v4798_v44 = vld [vmem:[#allocation2 + $0xa9] sm:$0xff]  ;;  %v4895_v11 = vld [vmem:[#allocation2 + $0x60] sm:$0xff] }
  0x78   : > { %332 = vst.msk [vmem:[#allocation2 + $0x169] sm:$0xff] %vm225_vm0, %v299_v40  ;;  %v4816_v50 = vld [vmem:[#allocation2 + $0xe1] sm:$0xff]  ;;  %v4951_v40 = vld [vmem:[#allocation2 + $0x78] sm:$0xff] }
  0x79   : > { %488 = vrot.lane.b32.xlu0 %v4756_v31, %s4462_s20  ;;  %325 = vst.msk [vmem:[#allocation2 + $0x111] sm:$0xff] %vm225_vm0, %v292_v41  ;;  %v4824_v52 = vld [vmem:[#allocation2 + $0x121] sm:$0xff]  ;;  %v4956_v41 = vld [vmem:[#allocation2 + $0x6a] sm:$0xff] }
  0x7a   : > { %330 = vst.msk [vmem:[#allocation2 + $0x151] sm:$0xff] %vm225_vm0, %v297_v42  ;;  %v4814_v49 = vld [vmem:[#allocation2 + $0xc9] sm:$0xff]  ;;  %v4919_v19 = vld [vmem:[#allocation2 + $0x80] sm:$0xff] }
  0x7b   : > { %328 = vst.msk [vmem:[#allocation2 + $0x139] sm:$0xff] %vm225_vm0, %v295_v46  ;;  %v4830_v54 = vld [vmem:[#allocation2 + $0x109] sm:$0xff]  ;;  %v4921_v21 = vld [vmem:[#allocation2 + $0x7a] sm:$0xff] }
  0x7c   : > { %480 = vrot.lane.b32.xlu2 %v4762_v32, %s4462_s20  ;;  %333 = vst.msk [vmem:[#allocation2 + $0x171] sm:$0xff] %vm225_vm0, %v300_v47  ;;  %v4836_v55 = vld [vmem:[#allocation2 + $0x141] sm:$0xff]  ;;  %v4968_v46 = vld [vmem:[#allocation2 + $0xb0] sm:$0xff] }
  0x7d   : > { %484 = vrot.lane.b32.xlu1 %v4764_v33, %s4462_s20  ;;  %331 = vst.msk [vmem:[#allocation2 + $0x159] sm:$0xff] %vm225_vm0, %v298_v51  ;;  %v4828_v53 = vld [vmem:[#allocation2 + $0xf1] sm:$0xff]  ;;  %v4944_v30 = vld [vmem:[#allocation2 + $0x9a] sm:$0xff]  ;;  %v4948_v35 = vld [vmem:[#allocation2 + $0xa8] sm:$0xff] }
  0x7e   : > { %v4842_v57 = vld [vmem:[#allocation2 + $0x129] sm:$0xff]  ;;  %368 = vst.msk [vmem:[#allocation4] sm:$0xff] %vm225_vm0, %v336_v62 }
  0x7f   : > { %v4848_v58 = vld [vmem:[#allocation2 + $0x169] sm:$0xff]  ;;  %372 = vst.msk [vmem:[#allocation4 + $0x20] sm:$0xff] %vm225_vm0, %v4860_v63 }
  0x80   : > { %v4840_v56 = vld [vmem:[#allocation2 + $0x111] sm:$0xff]  ;;  %6984 = vst [vmem:[#allocation5_spill] sm:$0xff] %v4848_v58  ;;  %v4960_v42 = vld [vmem:[#allocation2 + $0x82] sm:$0xff] }
  0x81   : > { %494 = vrot.lane.b32.xlu0 %v4774_v37, %s4462_s20  ;;  %v4854_v60 = vld [vmem:[#allocation2 + $0x151] sm:$0xff]  ;;  %6986 = vst [vmem:[#allocation7_spill] sm:$0xff] %v4877_v5  ;;  %v4970_v47 = vld [vmem:[#allocation2 + $0xc2] sm:$0xff] }
  0x82   : > { %v4852_v59 = vld [vmem:[#allocation2 + $0x139] sm:$0xff]  ;;  %369 = vst.msk [vmem:[#allocation4 + $0x8] sm:$0xff] %vm225_vm0, %v337_v3 }
  0x83   : > { %v4869_v2 = vld [vmem:[#allocation2 + $0x171] sm:$0xff]  ;;  %373 = vst.msk [vmem:[#allocation4 + $0x28] sm:$0xff] %vm225_vm0, %v4875_v4 }
  0x84   : > { %486 = vrot.lane.b32.xlu2 %v4780_v38, %s4462_s20  ;;  %v4867_v1 = vld [vmem:[#allocation2 + $0x159] sm:$0xff]  ;;  %6985 = vst [vmem:[#allocation6_spill] sm:$0xff] %v4869_v2 }
  0x85   : > { %490 = vrot.lane.b32.xlu1 %v4782_v39, %s4462_s20  ;;  %370 = vst.msk [vmem:[#allocation4 + $0x10] sm:$0xff] %vm225_vm0, %v4880_v6  ;;  %v4982_v3 = vld [vmem:[#allocation2 + $0x92] sm:$0xff] }
  0x86   : > { %6987 = vst [vmem:[#allocation8_spill] sm:$0xff] %v4888_v8 }
  0x87   : > { %v465_v61 = vpop.permute.xlu0 %464  ;;  %6988 = vst [vmem:[#allocation9_spill] sm:$0xff] %v4897_v12 }
  0x88   : > { %561 = vst.msk [vmem:[#allocation4] sm:$0xff] %vm560_vm3, %v465_v61  ;;  %v4974_v61 = vld [vmem:[#allocation2 + $0xc8] sm:$0xff] }
  0x89   : > { %500 = vrot.lane.b32.xlu0 %v4792_v43, %s4462_s20  ;;  %374 = vst.msk [vmem:[#allocation4 + $0x30] sm:$0xff] %vm225_vm0, %v4893_v9 }
  0x8a   : > { %376 = vst.msk [vmem:[#allocation4 + $0x40] sm:$0xff] %vm225_vm0, %v4895_v11 }
  0x8b   : > { %371 = vst.msk [vmem:[#allocation4 + $0x18] sm:$0xff] %vm225_vm0, %v4901_v13 }
  0x8c   : > { %492 = vrot.lane.b32.xlu2 %v4798_v44, %s4462_s20  ;;  %6989 = vst [vmem:[#allocation10_spill] sm:$0xff] %v4909_v14 }
  0x8d   : > { %496 = vrot.lane.b32.xlu1 %v4800_v45, %s4462_s20  ;;  %6990 = vst [vmem:[#allocation11_spill] sm:$0xff] %v4911_v16 }
  0x8e   : > { %6991 = vst [vmem:[#allocation12_spill] sm:$0xff] %v4921_v21 }
  0x8f   : > { %377 = vst.msk [vmem:[#allocation4 + $0x48] sm:$0xff] %vm225_vm0, %v4917_v17 }
  0x90   : > { %379 = vst.msk [vmem:[#allocation4 + $0x58] sm:$0xff] %vm225_vm0, %v4919_v19 }
  0x91   : > { %506 = vrot.lane.b32.xlu0 %v4809_v48, %s4462_s20  ;;  %6992 = vst [vmem:[#allocation13_spill] sm:$0xff] %v4932_v25 }
  0x92   : > { %375 = vst.msk [vmem:[#allocation4 + $0x38] sm:$0xff] %vm225_vm0, %v4925_v23 }
  0x93   : > { %6993 = vst [vmem:[#allocation14_spill] sm:$0xff] %v4936_v28 }
  0x94   : > { %498 = vrot.lane.b32.xlu2 %v4814_v49, %s4462_s20  ;;  %6994 = vst [vmem:[#allocation15_spill] sm:$0xff] %v4944_v30 }
  0x95   : > { %502 = vrot.lane.b32.xlu1 %v4816_v50, %s4462_s20  ;;  %380 = vst.msk [vmem:[#allocation4 + $0x60] sm:$0xff] %vm225_vm0, %v4942_v29 }
  0x96   : > { %6995 = vst [vmem:[#allocation16_spill] sm:$0xff] %v4956_v41 }
  0x97   : > { %382 = vst.msk [vmem:[#allocation4 + $0x70] sm:$0xff] %vm225_vm0, %v4948_v35 }
  0x98   : > { %6996 = vst [vmem:[#allocation17_spill] sm:$0xff] %v4960_v42 }
  0x99   : > { %512 = vrot.lane.b32.xlu0 %v4824_v52, %s4462_s20  ;;  %378 = vst.msk [vmem:[#allocation4 + $0x50] sm:$0xff] %vm225_vm0, %v4951_v40 }
  0x9a   : > { %6997 = vst [vmem:[#allocation18_spill] sm:$0xff] %v4970_v47 }
  0x9b   : > { %383 = vst.msk [vmem:[#allocation4 + $0x78] sm:$0xff] %vm225_vm0, %v4968_v46 }
  0x9c   : > { %504 = vrot.lane.b32.xlu2 %v4828_v53, %s4462_s20  ;;  %6998 = vst [vmem:[#allocation19_spill] sm:$0xff] %v4982_v3 }
  0x9d   : > { %508 = vrot.lane.b32.xlu1 %v4830_v54, %s4462_s20  ;;  %385 = vst.msk [vmem:[#allocation4 + $0x88] sm:$0xff] %vm225_vm0, %v4974_v61 }
  0xa1   : > { %518 = vrot.lane.b32.xlu0 %v4836_v55, %s4462_s20 }
  0xa4   : > { %510 = vrot.lane.b32.xlu2 %v4840_v56, %s4462_s20 }
  0xa5   : > { %514 = vrot.lane.b32.xlu1 %v4842_v57, %s4462_s20 }
  0xa9   : > { %524 = vrot.lane.b32.xlu0 %v4848_v58, %s4462_s20 }
  0xac   : > { %516 = vrot.lane.b32.xlu2 %v4852_v59, %s4462_s20 }
  0xad   : > { %520 = vrot.lane.b32.xlu1 %v4854_v60, %s4462_s20 }
  0xb1   : > { %659 = vrot.lane.b32.xlu0 %v594_v0, %s4463_s25  ;;  %v4977_v0 = vld [vmem:[#allocation2 + $0x98] sm:$0xff] }
  0xb2   : > { %381 = vst.msk [vmem:[#allocation4 + $0x68] sm:$0xff] %vm225_vm0, %v4977_v0 }
  0xb4   : > { %522 = vrot.lane.b32.xlu2 %v4867_v1, %s4462_s20 }
  0xb5   : > { %526 = vrot.lane.b32.xlu1 %v4869_v2, %s4462_s20  ;;  %v5109_v2 = vld [vmem:[#allocation2 + $0x150] sm:$0xff] }
  0xb6   : > { %396 = vst.msk [vmem:[#allocation4 + $0xe0] sm:$0xff] %vm225_vm0, %v5109_v2 }
  0xb9   : > { %665 = vrot.lane.b32.xlu0 %v4877_v5, %s4463_s25  ;;  %v5082_v5 = vld [vmem:[#allocation2 + $0x158] sm:$0xff] }
  0xba   : > { %397 = vst.msk [vmem:[#allocation4 + $0xe8] sm:$0xff] %vm225_vm0, %v5082_v5 }
  0xbc   : > { %657 = vrot.lane.b32.xlu2 %v593_v7, %s4463_s25  ;;  %v4986_v7 = vld [vmem:[#allocation2 + $0xaa] sm:$0xff] }
  0xbd   : > { %661 = vrot.lane.b32.xlu1 %v4888_v8, %s4463_s25  ;;  %6999 = vst [vmem:[#allocation20_spill] sm:$0xff] %v4986_v7 }
  0xc1   : > { %671 = vrot.lane.b32.xlu0 %v4897_v12, %s4463_s25  ;;  %v5055_v12 = vld [vmem:[#allocation2 + $0x138] sm:$0xff] }
  0xc2   : > { %394 = vst.msk [vmem:[#allocation4 + $0xd0] sm:$0xff] %vm225_vm0, %v5055_v12 }
  0xc4   : > { %663 = vrot.lane.b32.xlu2 %v4909_v14, %s4463_s25 }
  0xc5   : > { %667 = vrot.lane.b32.xlu1 %v4911_v16, %s4463_s25 }
  0xc6   : > { %v473_v22 = vpop.permute.xlu2 %472 }
  0xc7   : > { %565 = vst.msk [vmem:[#allocation4 + $0x20] sm:$0xff] %vm560_vm3, %v473_v22 }
  0xc9   : > { %677 = vrot.lane.b32.xlu0 %v4921_v21, %s4463_s25  ;;  %v5028_v21 = vld [vmem:[#allocation2 + $0x110] sm:$0xff] }
  0xca   : > { %391 = vst.msk [vmem:[#allocation4 + $0xb8] sm:$0xff] %vm225_vm0, %v5028_v21 }
  0xcc   : > { %669 = vrot.lane.b32.xlu2 %v4932_v25, %s4463_s25 }
  0xcd   : > { %673 = vrot.lane.b32.xlu1 %v4936_v28, %s4463_s25 }
  0xce   : > { %v475_v34 = vpop.permute.xlu2 %474 }
  0xcf   : > { %v467_v36 = vpop.permute.xlu0 %466  ;;  %566 = vst.msk [vmem:[#allocation4 + $0x28] sm:$0xff] %vm560_vm3, %v475_v34  ;;  %v4995_v34 = vld [vmem:[#allocation2 + $0xd8] sm:$0xff] }
  0xd0   : > { %562 = vst.msk [vmem:[#allocation4 + $0x8] sm:$0xff] %vm560_vm3, %v467_v36  ;;  %v4997_v36 = vld [vmem:[#allocation2 + $0xe2] sm:$0xff] }
  0xd1   : > { %683 = vrot.lane.b32.xlu0 %v4944_v30, %s4463_s25  ;;  %7000 = vst [vmem:[#allocation21_spill] sm:$0xff] %v4997_v36  ;;  %v5013_v30 = vld [vmem:[#allocation2 + $0xca] sm:$0xff] }
  0xd2   : > { %386 = vst.msk [vmem:[#allocation4 + $0x90] sm:$0xff] %vm225_vm0, %v4995_v34 }
  0xd3   : > { %7002 = vst [vmem:[#allocation23_spill] sm:$0xff] %v5013_v30 }
  0xd4   : > { %675 = vrot.lane.b32.xlu2 %v4956_v41, %s4463_s25 }
  0xd5   : > { %679 = vrot.lane.b32.xlu1 %v4960_v42, %s4463_s25 }
  0xd6   : > { %v481_v51 = vpop.permute.xlu2 %480 }
  0xd7   : > { %v469_v62 = vpop.permute.xlu1 %468  ;;  %569 = vst.msk [vmem:[#allocation4 + $0x40] sm:$0xff] %vm560_vm3, %v481_v51 }
  0xd8   : > { %563 = vst.msk [vmem:[#allocation4 + $0x10] sm:$0xff] %vm560_vm3, %v469_v62  ;;  %v5001_v62 = vld [vmem:[#allocation2 + $0xf0] sm:$0xff] }
  0xd9   : > { %689 = vrot.lane.b32.xlu0 %v4970_v47, %s4463_s25  ;;  %388 = vst.msk [vmem:[#allocation4 + $0xa0] sm:$0xff] %vm225_vm0, %v5001_v62 }
  0xdb   : > { %v477_v22 = vpop.permute.xlu0 %476 }
  0xdc   : > { %567 = vst.msk [vmem:[#allocation4 + $0x30] sm:$0xff] %vm560_vm3, %v477_v22  ;;  %681 = vrot.lane.b32.xlu2 %v4982_v3, %s4463_s25  ;;  %v5004_v22 = vld [vmem:[#allocation2 + $0xc0] sm:$0xff] }
  0xdd   : > { %685 = vrot.lane.b32.xlu1 %v4986_v7, %s4463_s25  ;;  %v5009_v7 = vld [vmem:[#allocation2 + $0xb2] sm:$0xff]  ;;  %384 = vst.msk [vmem:[#allocation4 + $0x80] sm:$0xff] %vm225_vm0, %v5004_v22 }
  0xde   : > { %v487_v51 = vpop.permute.xlu2 %486  ;;  %7001 = vst [vmem:[#allocation22_spill] sm:$0xff] %v5009_v7 }
  0xdf   : > { %v471_v47 = vpop.permute.xlu1 %470  ;;  %572 = vst.msk [vmem:[#allocation4 + $0x58] sm:$0xff] %vm560_vm3, %v487_v51  ;;  %v5024_v51 = vld [vmem:[#allocation2 + $0x10a] sm:$0xff] }
  0xe0   : > { %564 = vst.msk [vmem:[#allocation4 + $0x18] sm:$0xff] %vm560_vm3, %v471_v47  ;;  %v5022_v47 = vld [vmem:[#allocation2 + $0xf8] sm:$0xff] }
  0xe1   : > { %695 = vrot.lane.b32.xlu0 %v4997_v36, %s4463_s25  ;;  %7003 = vst [vmem:[#allocation24_spill] sm:$0xff] %v5024_v51 }
  0xe2   : > { %389 = vst.msk [vmem:[#allocation4 + $0xa8] sm:$0xff] %vm225_vm0, %v5022_v47 }
  0xe3   : > { %v483_v42 = vpop.permute.xlu0 %482 }
  0xe4   : > { %570 = vst.msk [vmem:[#allocation4 + $0x48] sm:$0xff] %vm560_vm3, %v483_v42  ;;  %687 = vrot.lane.b32.xlu2 %v5009_v7, %s4463_s25  ;;  %v5031_v42 = vld [vmem:[#allocation2 + $0xe0] sm:$0xff]  ;;  %v5040_v7 = vld [vmem:[#allocation2 + $0xf2] sm:$0xff] }
  0xe5   : > { %691 = vrot.lane.b32.xlu1 %v5013_v30, %s4463_s25  ;;  %v5036_v30 = vld [vmem:[#allocation2 + $0xda] sm:$0xff]  ;;  %7005 = vst [vmem:[#allocation26_spill] sm:$0xff] %v5040_v7 }
  0xe6   : > { %v493_v36 = vpop.permute.xlu2 %492  ;;  %7004 = vst [vmem:[#allocation25_spill] sm:$0xff] %v5036_v30 }
  0xe7   : > { %v479_v28 = vpop.permute.xlu1 %478  ;;  %575 = vst.msk [vmem:[#allocation4 + $0x70] sm:$0xff] %vm560_vm3, %v493_v36  ;;  %v5051_v36 = vld [vmem:[#allocation2 + $0x12a] sm:$0xff] }
  0xe8   : > { %568 = vst.msk [vmem:[#allocation4 + $0x38] sm:$0xff] %vm560_vm3, %v479_v28  ;;  %v5049_v28 = vld [vmem:[#allocation2 + $0x120] sm:$0xff] }
  0xe9   : > { %701 = vrot.lane.b32.xlu0 %v5024_v51, %s4463_s25  ;;  %387 = vst.msk [vmem:[#allocation4 + $0x98] sm:$0xff] %vm225_vm0, %v5031_v42 }
  0xea   : > { %7006 = vst [vmem:[#allocation27_spill] sm:$0xff] %v5051_v36 }
  0xeb   : > { %v489_v3 = vpop.permute.xlu0 %488  ;;  %392 = vst.msk [vmem:[#allocation4 + $0xc0] sm:$0xff] %vm225_vm0, %v5049_v28 }
  0xec   : > { %573 = vst.msk [vmem:[#allocation4 + $0x60] sm:$0xff] %vm560_vm3, %v489_v3  ;;  %693 = vrot.lane.b32.xlu2 %v5036_v30, %s4463_s25  ;;  %v5058_v3 = vld [vmem:[#allocation2 + $0x108] sm:$0xff]  ;;  %v5067_v30 = vld [vmem:[#allocation2 + $0x112] sm:$0xff] }
  0xed   : > { %697 = vrot.lane.b32.xlu1 %v5040_v7, %s4463_s25  ;;  %v5063_v7 = vld [vmem:[#allocation2 + $0xfa] sm:$0xff]  ;;  %7008 = vst [vmem:[#allocation29_spill] sm:$0xff] %v5067_v30 }
  0xee   : > { %v499_v51 = vpop.permute.xlu2 %498  ;;  %7007 = vst [vmem:[#allocation28_spill] sm:$0xff] %v5063_v7 }
  0xef   : > { %v485_v16 = vpop.permute.xlu1 %484  ;;  %578 = vst.msk [vmem:[#allocation4 + $0x88] sm:$0xff] %vm560_vm3, %v499_v51  ;;  %v5078_v51 = vld [vmem:[#allocation2 + $0x152] sm:$0xff] }
  0xf0   : > { %571 = vst.msk [vmem:[#allocation4 + $0x50] sm:$0xff] %vm560_vm3, %v485_v16  ;;  %v5076_v16 = vld [vmem:[#allocation2 + $0x140] sm:$0xff] }
  0xf1   : > { %707 = vrot.lane.b32.xlu0 %v5051_v36, %s4463_s25  ;;  %390 = vst.msk [vmem:[#allocation4 + $0xb0] sm:$0xff] %vm225_vm0, %v5058_v3 }
  0xf2   : > { %7009 = vst [vmem:[#allocation30_spill] sm:$0xff] %v5078_v51 }
  0xf3   : > { %v495_v41 = vpop.permute.xlu0 %494  ;;  %395 = vst.msk [vmem:[#allocation4 + $0xd8] sm:$0xff] %vm225_vm0, %v5076_v16 }
  0xf4   : > { %576 = vst.msk [vmem:[#allocation4 + $0x78] sm:$0xff] %vm560_vm3, %v495_v41  ;;  %699 = vrot.lane.b32.xlu2 %v5063_v7, %s4463_s25  ;;  %v5085_v41 = vld [vmem:[#allocation2 + $0x128] sm:$0xff]  ;;  %v5094_v7 = vld [vmem:[#allocation2 + $0x13a] sm:$0xff] }
  0xf5   : > { %703 = vrot.lane.b32.xlu1 %v5067_v30, %s4463_s25  ;;  %v5090_v30 = vld [vmem:[#allocation2 + $0x122] sm:$0xff]  ;;  %7011 = vst [vmem:[#allocation32_spill] sm:$0xff] %v5094_v7 }
  0xf6   : > { %v505_v36 = vpop.permute.xlu2 %504  ;;  %7010 = vst [vmem:[#allocation31_spill] sm:$0xff] %v5090_v30 }
  0xf7   : > { %v491_v8 = vpop.permute.xlu1 %490  ;;  %581 = vst.msk [vmem:[#allocation4 + $0xa0] sm:$0xff] %vm560_vm3, %v505_v36  ;;  %v5105_v36 = vld [vmem:[#allocation2 + $0x172] sm:$0xff] }
  0xf8   : > { %574 = vst.msk [vmem:[#allocation4 + $0x68] sm:$0xff] %vm560_vm3, %v491_v8  ;;  %v5103_v8 = vld [vmem:[#allocation2 + $0x168] sm:$0xff] }
  0xf9   : > { %713 = vrot.lane.b32.xlu0 %v5078_v51, %s4463_s25  ;;  %393 = vst.msk [vmem:[#allocation4 + $0xc8] sm:$0xff] %vm225_vm0, %v5085_v41 }
  0xfa   : > { %7012 = vst [vmem:[#allocation33_spill] sm:$0xff] %v5105_v36 }
  0xfb   : > { %v501_v25 = vpop.permute.xlu0 %500  ;;  %398 = vst.msk [vmem:[#allocation4 + $0xf0] sm:$0xff] %vm225_vm0, %v5103_v8 }
  0xfc   : > { %579 = vst.msk [vmem:[#allocation4 + $0x90] sm:$0xff] %vm560_vm3, %v501_v25  ;;  %705 = vrot.lane.b32.xlu2 %v5090_v30, %s4463_s25  ;;  %v5115_v25 = vld [vmem:[#allocation2 + $0x142] sm:$0xff] }
  0xfd   : > { %709 = vrot.lane.b32.xlu1 %v5094_v7, %s4463_s25  ;;  %7013 = vst [vmem:[#allocation34_spill] sm:$0xff] %v5115_v25  ;;  %v5119_v7 = vld [vmem:[#allocation2 + $0x15a] sm:$0xff] }
  0xfe   : > { %v511_v51 = vpop.permute.xlu2 %510  ;;  %7014 = vst [vmem:[#allocation35_spill] sm:$0xff] %v5119_v7 }
  0xff   : > { %v497_v14 = vpop.permute.xlu1 %496  ;;  %584 = vst.msk [vmem:[#allocation4 + $0xb8] sm:$0xff] %vm560_vm3, %v511_v51 }
 0x100   : > { %577 = vst.msk [vmem:[#allocation4 + $0x80] sm:$0xff] %vm560_vm3, %v497_v14  ;;  %v5126_v14 = vld [vmem:[#allocation2 + $0x170] sm:$0xff] }
 0x101   : > { %719 = vrot.lane.b32.xlu0 %v5105_v36, %s4463_s25  ;;  %399 = vst.msk [vmem:[#allocation4 + $0xf8] sm:$0xff] %vm225_vm0, %v5126_v14 }
 0x103   : > { %v507_v30 = vpop.permute.xlu0 %506 }
 0x104   : > { %582 = vst.msk [vmem:[#allocation4 + $0xa8] sm:$0xff] %vm560_vm3, %v507_v30  ;;  %711 = vrot.lane.b32.xlu2 %v5115_v25, %s4463_s25  ;;  %v5134_v30 = vld [vmem:[#allocation2 + $0x16a] sm:$0xff] }
 0x105   : > { %715 = vrot.lane.b32.xlu1 %v5119_v7, %s4463_s25 }
 0x106   : > { %v517_v51 = vpop.permute.xlu2 %516 }
 0x107   : > { %v503_v36 = vpop.permute.xlu1 %502  ;;  %587 = vst.msk [vmem:[#allocation4 + $0xd0] sm:$0xff] %vm560_vm3, %v517_v51 }
 0x108   : > { %580 = vst.msk [vmem:[#allocation4 + $0x98] sm:$0xff] %vm560_vm3, %v503_v36 }
 0x109   : > { %854 = vrot.lane.b32.xlu0 %v4860_v63, %s4464_s26 }
 0x10b   : > { %v513_v25 = vpop.permute.xlu0 %512 }
 0x10c   : > { %585 = vst.msk [vmem:[#allocation4 + $0xc0] sm:$0xff] %vm560_vm3, %v513_v25  ;;  %717 = vrot.lane.b32.xlu2 %v5134_v30, %s4463_s25 }
 0x10d   : > { %850 = vrot.lane.b32.xlu1 %v4880_v6, %s4464_s26 }
 0x10e   : > { %v523_v7 = vpop.permute.xlu2 %522 }
 0x10f   : > { %v509_v58 = vpop.permute.xlu1 %508  ;;  %590 = vst.msk [vmem:[#allocation4 + $0xe8] sm:$0xff] %vm560_vm3, %v523_v7 }
 0x110   : > { %583 = vst.msk [vmem:[#allocation4 + $0xb0] sm:$0xff] %vm560_vm3, %v509_v58 }
 0x111   : > { %860 = vrot.lane.b32.xlu0 %v4925_v23, %s4464_s26 }
 0x113   : > { %v519_v63 = vpop.permute.xlu0 %518 }
 0x114   : > { %588 = vst.msk [vmem:[#allocation4 + $0xd8] sm:$0xff] %vm560_vm3, %v519_v63  ;;  %852 = vrot.lane.b32.xlu2 %v4901_v13, %s4464_s26 }
 0x115   : > { %856 = vrot.lane.b32.xlu1 %v4875_v4, %s4464_s26 }
 0x116   : > { %v658_v6 = vpop.permute.xlu2 %657 }
 0x117   : > { %v515_v36 = vpop.permute.xlu1 %514  ;;  %754 = vst.msk [vmem:[#allocation4] sm:$0xff] %vm753_vm4, %v658_v6  ;;  %v301_v6 = vld [vmem:[%s4671_s24 + $0xf0] sm:$0xff] }
 0x118   : > { %586 = vst.msk [vmem:[#allocation4 + $0xc8] sm:$0xff] %vm560_vm3, %v515_v36 }
 0x119   : > { %866 = vrot.lane.b32.xlu0 %v4951_v40, %s4464_s26  ;;  %334 = vst.msk [vmem:[#allocation2 + $0x181] sm:$0xff] %vm225_vm0, %v301_v6 }
 0x11b   : > { %v525_v58 = vpop.permute.xlu0 %524 }
 0x11c   : > { %591 = vst.msk [vmem:[#allocation4 + $0xf0] sm:$0xff] %vm560_vm3, %v525_v58  ;;  %858 = vrot.lane.b32.xlu2 %v4893_v9, %s4464_s26 }
 0x11d   : > { %862 = vrot.lane.b32.xlu1 %v4895_v11, %s4464_s26 }
 0x11e   : > { %v664_v13 = vpop.permute.xlu2 %663 }
 0x11f   : > { %v521_v4 = vpop.permute.xlu1 %520  ;;  %757 = vst.msk [vmem:[#allocation4 + $0x18] sm:$0xff] %vm753_vm4, %v664_v13 }
 0x120   : > { %589 = vst.msk [vmem:[#allocation4 + $0xe0] sm:$0xff] %vm560_vm3, %v521_v4 }
 0x121   : > { %872 = vrot.lane.b32.xlu0 %v4977_v0, %s4464_s26 }
 0x123   : > { %v660_v7 = vpop.permute.xlu0 %659 }
 0x124   : > { %755 = vst.msk [vmem:[#allocation4 + $0x8] sm:$0xff] %vm753_vm4, %v660_v7  ;;  %864 = vrot.lane.b32.xlu2 %v4917_v17, %s4464_s26  ;;  %v302_v7 = vld [vmem:[%s4671_s24 + $0xf8] sm:$0xff] }
 0x125   : > { %868 = vrot.lane.b32.xlu1 %v4919_v19, %s4464_s26  ;;  %335 = vst.msk [vmem:[#allocation2 + $0x189] sm:$0xff] %vm225_vm0, %v302_v7 }
 0x126   : > { %v670_v9 = vpop.permute.xlu2 %669 }
 0x127   : > { %v527_v11 = vpop.permute.xlu1 %526  ;;  %760 = vst.msk [vmem:[#allocation4 + $0x30] sm:$0xff] %vm753_vm4, %v670_v9 }
 0x128   : > { %592 = vst.msk [vmem:[#allocation4 + $0xf8] sm:$0xff] %vm560_vm3, %v527_v11 }
 0x129   : > { %878 = vrot.lane.b32.xlu0 %v5004_v22, %s4464_s26 }
 0x12b   : > { %v666_v25 = vpop.permute.xlu0 %665 }
 0x12c   : > { %758 = vst.msk [vmem:[#allocation4 + $0x20] sm:$0xff] %vm753_vm4, %v666_v25  ;;  %870 = vrot.lane.b32.xlu2 %v4942_v29, %s4464_s26 }
 0x12d   : > { %874 = vrot.lane.b32.xlu1 %v4948_v35, %s4464_s26 }
 0x12e   : > { %v676_v19 = vpop.permute.xlu2 %675 }
 0x12f   : > { %v662_v51 = vpop.permute.xlu1 %661  ;;  %763 = vst.msk [vmem:[#allocation4 + $0x48] sm:$0xff] %vm753_vm4, %v676_v19 }
 0x130   : > { %756 = vst.msk [vmem:[#allocation4 + $0x10] sm:$0xff] %vm753_vm4, %v662_v51 }
 0x131   : > { %884 = vrot.lane.b32.xlu0 %v5031_v42, %s4464_s26 }
 0x133   : > { %v672_v63 = vpop.permute.xlu0 %671 }
 0x134   : > { %761 = vst.msk [vmem:[#allocation4 + $0x38] sm:$0xff] %vm753_vm4, %v672_v63  ;;  %876 = vrot.lane.b32.xlu2 %v4968_v46, %s4464_s26  ;;  %v5230_v63 = vld [vmem:[#allocation2 + $0x180] sm:$0xff] }
 0x135   : > { %880 = vrot.lane.b32.xlu1 %v4974_v61, %s4464_s26 }
 0x136   : > { %v682_v35 = vpop.permute.xlu2 %681 }
 0x137   : > { %v668_v36 = vpop.permute.xlu1 %667  ;;  %766 = vst.msk [vmem:[#allocation4 + $0x60] sm:$0xff] %vm753_vm4, %v682_v35 }
 0x138   : > { %759 = vst.msk [vmem:[#allocation4 + $0x28] sm:$0xff] %vm753_vm4, %v668_v36 }
 0x139   : > { %890 = vrot.lane.b32.xlu0 %v5058_v3, %s4464_s26 }
 0x13b   : > { %v678_v58 = vpop.permute.xlu0 %677 }
 0x13c   : > { %764 = vst.msk [vmem:[#allocation4 + $0x50] sm:$0xff] %vm753_vm4, %v678_v58  ;;  %882 = vrot.lane.b32.xlu2 %v4995_v34, %s4464_s26 }
 0x13d   : > { %886 = vrot.lane.b32.xlu1 %v5001_v62, %s4464_s26 }
 0x13e   : > { %v688_v61 = vpop.permute.xlu2 %687 }
 0x13f   : > { %v674_v13 = vpop.permute.xlu1 %673  ;;  %769 = vst.msk [vmem:[#allocation4 + $0x78] sm:$0xff] %vm753_vm4, %v688_v61 }
 0x140   : > { %762 = vst.msk [vmem:[#allocation4 + $0x40] sm:$0xff] %vm753_vm4, %v674_v13 }
 0x141   : > { %896 = vrot.lane.b32.xlu0 %v5085_v41, %s4464_s26 }
 0x143   : > { %v684_v4 = vpop.permute.xlu0 %683 }
 0x144   : > { %767 = vst.msk [vmem:[#allocation4 + $0x68] sm:$0xff] %vm753_vm4, %v684_v4  ;;  %888 = vrot.lane.b32.xlu2 %v5022_v47, %s4464_s26 }
 0x145   : > { %892 = vrot.lane.b32.xlu1 %v5028_v21, %s4464_s26 }
 0x146   : > { %v694_v62 = vpop.permute.xlu2 %693 }
 0x147   : > { %v680_v9 = vpop.permute.xlu1 %679  ;;  %772 = vst.msk [vmem:[#allocation4 + $0x90] sm:$0xff] %vm753_vm4, %v694_v62 }
 0x148   : > { %765 = vst.msk [vmem:[#allocation4 + $0x58] sm:$0xff] %vm753_vm4, %v680_v9  ;;  %v7016_v9 = vld [vmem:[#allocation10_spill] sm:$0xff] }
 0x149   : > { %902 = vrot.lane.b32.xlu0 %v5109_v2, %s4464_s26 }
 0x14b   : > { %v690_v11 = vpop.permute.xlu0 %689 }
 0x14c   : > { %770 = vst.msk [vmem:[#allocation4 + $0x80] sm:$0xff] %vm753_vm4, %v690_v11  ;;  %894 = vrot.lane.b32.xlu2 %v5049_v28, %s4464_s26  ;;  %v5335_v11 = vld [vmem:[#allocation2 + $0x189] sm:$0xff] }
 0x14d   : > { %898 = vrot.lane.b32.xlu1 %v5055_v12, %s4464_s26 }
 0x14e   : > { %v700_v21 = vpop.permute.xlu2 %699 }
 0x14f   : > { %v686_v25 = vpop.permute.xlu1 %685  ;;  %775 = vst.msk [vmem:[#allocation4 + $0xa8] sm:$0xff] %vm753_vm4, %v700_v21 }
 0x150   : > { %768 = vst.msk [vmem:[#allocation4 + $0x70] sm:$0xff] %vm753_vm4, %v686_v25 }
 0x151   : > { %908 = vrot.lane.b32.xlu0 %v5126_v14, %s4464_s26 }
 0x153   : > { %v696_v19 = vpop.permute.xlu0 %695 }
 0x154   : > { %773 = vst.msk [vmem:[#allocation4 + $0x98] sm:$0xff] %vm753_vm4, %v696_v19  ;;  %900 = vrot.lane.b32.xlu2 %v5076_v16, %s4464_s26 }
 0x155   : > { %904 = vrot.lane.b32.xlu1 %v5082_v5, %s4464_s26 }
 0x156   : > { %v706_v51 = vpop.permute.xlu2 %705 }
 0x157   : > { %v692_v12 = vpop.permute.xlu1 %691  ;;  %778 = vst.msk [vmem:[#allocation4 + $0xc0] sm:$0xff] %vm753_vm4, %v706_v51  ;;  %v7018_v51 = vld [vmem:[#allocation13_spill] sm:$0xff] }
 0x158   : > { %771 = vst.msk [vmem:[#allocation4 + $0x88] sm:$0xff] %vm753_vm4, %v692_v12 }
 0x159   : > { %1043 = vrot.lane.b32.xlu0 %v4699_v10, %s4465_s27  ;;  %v5241_v10 = vld [vmem:[#allocation2 + $0x188] sm:$0xff] }
 0x15b   : > { %v702_v6 = vpop.permute.xlu0 %701 }
 0x15c   : > { %776 = vst.msk [vmem:[#allocation4 + $0xb0] sm:$0xff] %vm753_vm4, %v702_v6  ;;  %906 = vrot.lane.b32.xlu2 %v5103_v8, %s4464_s26  ;;  %v7019_v6 = vld [vmem:[#allocation8_spill] sm:$0xff] }
 0x15d   : > { %910 = vrot.lane.b32.xlu1 %v5230_v63, %s4464_s26 }
 0x15e   : > { %v712_v35 = vpop.permute.xlu2 %711 }
 0x15f   : > { %v698_v36 = vpop.permute.xlu1 %697  ;;  %781 = vst.msk [vmem:[#allocation4 + $0xd8] sm:$0xff] %vm753_vm4, %v712_v35  ;;  %v7020_v35 = vld [vmem:[#allocation7_spill] sm:$0xff] }
 0x160   : > { %774 = vst.msk [vmem:[#allocation4 + $0xa0] sm:$0xff] %vm753_vm4, %v698_v36 }
 0x161   : > { %1049 = vrot.lane.b32.xlu0 %v4743_v26, %s4465_s27 }
 0x163   : > { %v708_v58 = vpop.permute.xlu0 %707 }
 0x164   : > { %779 = vst.msk [vmem:[#allocation4 + $0xc8] sm:$0xff] %vm753_vm4, %v708_v58  ;;  %912 = vrot.lane.b32.xlu2 %v5241_v10, %s4464_s26 }
 0x165   : > { %1045 = vrot.lane.b32.xlu1 %v4719_v18, %s4465_s27 }
 0x166   : > { %v718_v61 = vpop.permute.xlu2 %717 }
 0x167   : > { %v704_v13 = vpop.permute.xlu1 %703  ;;  %784 = vst.msk [vmem:[#allocation4 + $0xf0] sm:$0xff] %vm753_vm4, %v718_v61  ;;  %v7021_v61 = vld [vmem:[#allocation16_spill] sm:$0xff] }
 0x168   : > { %777 = vst.msk [vmem:[#allocation4 + $0xb8] sm:$0xff] %vm753_vm4, %v704_v13 }
 0x169   : > { %1055 = vrot.lane.b32.xlu0 %v4762_v32, %s4465_s27 }
 0x16b   : > { %v714_v26 = vpop.permute.xlu0 %713 }
 0x16c   : > { %782 = vst.msk [vmem:[#allocation4 + $0xe0] sm:$0xff] %vm753_vm4, %v714_v26  ;;  %1047 = vrot.lane.b32.xlu2 %v4723_v20, %s4465_s27  ;;  %v7022_v26 = vld [vmem:[#allocation11_spill] sm:$0xff] }
 0x16d   : > { %1051 = vrot.lane.b32.xlu1 %v4711_v15, %s4465_s27 }
 0x16e   : > { %v853_v18 = vpop.permute.xlu2 %852 }
 0x16f   : > { %v710_v4 = vpop.permute.xlu1 %709  ;;  %948 = vst.msk [vmem:[#allocation4 + $0x8] sm:$0xff] %vm946_vm5, %v853_v18  ;;  %v7023_v18 = vld [vmem:[#allocation9_spill] sm:$0xff] }
 0x170   : > { %780 = vst.msk [vmem:[#allocation4 + $0xd0] sm:$0xff] %vm753_vm4, %v710_v4 }
 0x171   : > { %1061 = vrot.lane.b32.xlu0 %v4780_v38, %s4465_s27 }
 0x173   : > { %v720_v32 = vpop.permute.xlu0 %719 }
 0x174   : > { %785 = vst.msk [vmem:[#allocation4 + $0xf8] sm:$0xff] %vm753_vm4, %v720_v32  ;;  %1053 = vrot.lane.b32.xlu2 %v4746_v27, %s4465_s27 }
 0x175   : > { %1057 = vrot.lane.b32.xlu1 %v4735_v24, %s4465_s27 }
 0x176   : > { %v859_v20 = vpop.permute.xlu2 %858 }
 0x177   : > { %v716_v15 = vpop.permute.xlu1 %715  ;;  %951 = vst.msk [vmem:[#allocation4 + $0x20] sm:$0xff] %vm946_vm5, %v859_v20  ;;  %v7024_v20 = vld [vmem:[#allocation19_spill] sm:$0xff] }
 0x178   : > { %783 = vst.msk [vmem:[#allocation4 + $0xe8] sm:$0xff] %vm753_vm4, %v716_v15 }
 0x179   : > { %1067 = vrot.lane.b32.xlu0 %v4798_v44, %s4465_s27 }
 0x17b   : > { %v855_v7 = vpop.permute.xlu0 %854 }
 0x17c   : > { %949 = vst.msk [vmem:[#allocation4 + $0x10] sm:$0xff] %vm946_vm5, %v855_v7  ;;  %1059 = vrot.lane.b32.xlu2 %v4764_v33, %s4465_s27  ;;  %v7025_v7 = vld [vmem:[#allocation14_spill] sm:$0xff] }
 0x17d   : > { %1063 = vrot.lane.b32.xlu1 %v4756_v31, %s4465_s27 }
 0x17e   : > { %v865_v27 = vpop.permute.xlu2 %864 }
 0x17f   : > { %v851_v24 = vpop.permute.xlu1 %850  ;;  %954 = vst.msk [vmem:[#allocation4 + $0x38] sm:$0xff] %vm946_vm5, %v865_v27  ;;  %v7026_v27 = vld [vmem:[#allocation12_spill] sm:$0xff] }
 0x180   : > { %947 = vst.msk [vmem:[#allocation4] sm:$0xff] %vm946_vm5, %v851_v24 }
 0x181   : > { %1073 = vrot.lane.b32.xlu0 %v4814_v49, %s4465_s27 }
 0x183   : > { %v861_v38 = vpop.permute.xlu0 %860 }
 0x184   : > { %952 = vst.msk [vmem:[#allocation4 + $0x28] sm:$0xff] %vm946_vm5, %v861_v38  ;;  %1065 = vrot.lane.b32.xlu2 %v4782_v39, %s4465_s27 }
 0x185   : > { %1069 = vrot.lane.b32.xlu1 %v4774_v37, %s4465_s27 }
 0x186   : > { %v871_v33 = vpop.permute.xlu2 %870 }
 0x187   : > { %v857_v31 = vpop.permute.xlu1 %856  ;;  %957 = vst.msk [vmem:[#allocation4 + $0x50] sm:$0xff] %vm946_vm5, %v871_v33  ;;  %v7027_v33 = vld [vmem:[#allocation22_spill] sm:$0xff] }
 0x188   : > { %950 = vst.msk [vmem:[#allocation4 + $0x18] sm:$0xff] %vm946_vm5, %v857_v31 }
 0x189   : > { %1079 = vrot.lane.b32.xlu0 %v4828_v53, %s4465_s27 }
 0x18b   : > { %v867_v44 = vpop.permute.xlu0 %866 }
 0x18c   : > { %955 = vst.msk [vmem:[#allocation4 + $0x40] sm:$0xff] %vm946_vm5, %v867_v44  ;;  %1071 = vrot.lane.b32.xlu2 %v4800_v45, %s4465_s27  ;;  %v7028_v44 = vld [vmem:[#allocation17_spill] sm:$0xff] }
 0x18d   : > { %1075 = vrot.lane.b32.xlu1 %v4792_v43, %s4465_s27 }
 0x18e   : > { %v877_v39 = vpop.permute.xlu2 %876 }
 0x18f   : > { %v863_v37 = vpop.permute.xlu1 %862  ;;  %960 = vst.msk [vmem:[#allocation4 + $0x68] sm:$0xff] %vm946_vm5, %v877_v39  ;;  %v7029_v39 = vld [vmem:[#allocation15_spill] sm:$0xff] }
 0x190   : > { %953 = vst.msk [vmem:[#allocation4 + $0x30] sm:$0xff] %vm946_vm5, %v863_v37 }
 0x191   : > { %1085 = vrot.lane.b32.xlu0 %v4840_v56, %s4465_s27 }
 0x193   : > { %v873_v49 = vpop.permute.xlu0 %872 }
 0x194   : > { %958 = vst.msk [vmem:[#allocation4 + $0x58] sm:$0xff] %vm946_vm5, %v873_v49  ;;  %1077 = vrot.lane.b32.xlu2 %v4816_v50, %s4465_s27 }
 0x195   : > { %1081 = vrot.lane.b32.xlu1 %v4809_v48, %s4465_s27 }
 0x196   : > { %v883_v45 = vpop.permute.xlu2 %882 }
 0x197   : > { %v869_v43 = vpop.permute.xlu1 %868  ;;  %963 = vst.msk [vmem:[#allocation4 + $0x80] sm:$0xff] %vm946_vm5, %v883_v45  ;;  %v7030_v45 = vld [vmem:[#allocation25_spill] sm:$0xff] }
 0x198   : > { %956 = vst.msk [vmem:[#allocation4 + $0x48] sm:$0xff] %vm946_vm5, %v869_v43 }
 0x199   : > { %1091 = vrot.lane.b32.xlu0 %v4852_v59, %s4465_s27 }
 0x19b   : > { %v879_v53 = vpop.permute.xlu0 %878 }
 0x19c   : > { %961 = vst.msk [vmem:[#allocation4 + $0x70] sm:$0xff] %vm946_vm5, %v879_v53  ;;  %1083 = vrot.lane.b32.xlu2 %v4830_v54, %s4465_s27  ;;  %v5320_v54 = vld [vmem:[#allocation2 + $0x181] sm:$0xff]  ;;  %v7031_v53 = vld [vmem:[#allocation20_spill] sm:$0xff] }
 0x19d   : > { %1087 = vrot.lane.b32.xlu1 %v4824_v52, %s4465_s27 }
 0x19e   : > { %v889_v50 = vpop.permute.xlu2 %888 }
 0x19f   : > { %v875_v48 = vpop.permute.xlu1 %874  ;;  %966 = vst.msk [vmem:[#allocation4 + $0x98] sm:$0xff] %vm946_vm5, %v889_v50  ;;  %v7032_v50 = vld [vmem:[#allocation18_spill] sm:$0xff] }
 0x1a0   : > { %959 = vst.msk [vmem:[#allocation4 + $0x60] sm:$0xff] %vm946_vm5, %v875_v48 }
 0x1a1   : > { %1097 = vrot.lane.b32.xlu0 %v4867_v1, %s4465_s27 }
 0x1a3   : > { %v885_v56 = vpop.permute.xlu0 %884 }
 0x1a4   : > { %964 = vst.msk [vmem:[#allocation4 + $0x88] sm:$0xff] %vm946_vm5, %v885_v56  ;;  %1089 = vrot.lane.b32.xlu2 %v4842_v57, %s4465_s27  ;;  %v7015_v57 = vld [vmem:[#allocation5_spill] sm:$0xff] }
 0x1a5   : > { %1093 = vrot.lane.b32.xlu1 %v4836_v55, %s4465_s27 }
 0x1a6   : > { %v895_v52 = vpop.permute.xlu2 %894 }
 0x1a7   : > { %v881_v59 = vpop.permute.xlu1 %880  ;;  %969 = vst.msk [vmem:[#allocation4 + $0xb0] sm:$0xff] %vm946_vm5, %v895_v52  ;;  %v7033_v52 = vld [vmem:[#allocation28_spill] sm:$0xff] }
 0x1a8   : > { %962 = vst.msk [vmem:[#allocation4 + $0x78] sm:$0xff] %vm946_vm5, %v881_v59 }
 0x1a9   : > { %1103 = vrot.lane.b32.xlu0 %v5320_v54, %s4465_s27 }
 0x1ab   : > { %v891_v1 = vpop.permute.xlu0 %890 }
 0x1ac   : > { %967 = vst.msk [vmem:[#allocation4 + $0xa0] sm:$0xff] %vm946_vm5, %v891_v1  ;;  %1095 = vrot.lane.b32.xlu2 %v4854_v60, %s4465_s27  ;;  %v7017_v60 = vld [vmem:[#allocation6_spill] sm:$0xff]  ;;  %v7034_v1 = vld [vmem:[#allocation23_spill] sm:$0xff] }
 0x1ad   : > { %1099 = vrot.lane.b32.xlu1 %v7015_v57, %s4465_s27  ;;  %v7035_v57 = vld [vmem:[#allocation21_spill] sm:$0xff] }
 0x1ae   : > { %v901_v55 = vpop.permute.xlu2 %900 }
 0x1af   : > { %v887_v62 = vpop.permute.xlu1 %886  ;;  %972 = vst.msk [vmem:[#allocation4 + $0xc8] sm:$0xff] %vm946_vm5, %v901_v55 }
 0x1b0   : > { %965 = vst.msk [vmem:[#allocation4 + $0x90] sm:$0xff] %vm946_vm5, %v887_v62 }
 0x1b1   : > { %1238 = vrot.lane.b32.xlu0 %v7016_v9, %s4466_s28  ;;  %v7036_v9 = vld [vmem:[#allocation31_spill] sm:$0xff] }
 0x1b3   : > { %v897_v21 = vpop.permute.xlu0 %896 }
 0x1b4   : > { %970 = vst.msk [vmem:[#allocation4 + $0xb8] sm:$0xff] %vm946_vm5, %v897_v21  ;;  %1101 = vrot.lane.b32.xlu2 %v7017_v60, %s4465_s27  ;;  %v7037_v60 = vld [vmem:[#allocation26_spill] sm:$0xff] }
 0x1b5   : > { %1105 = vrot.lane.b32.xlu1 %v5335_v11, %s4465_s27 }
 0x1b6   : > { %v907_v25 = vpop.permute.xlu2 %906 }
 0x1b7   : > { %v893_v19 = vpop.permute.xlu1 %892  ;;  %975 = vst.msk [vmem:[#allocation4 + $0xe0] sm:$0xff] %vm946_vm5, %v907_v25  ;;  %v7038_v25 = vld [vmem:[#allocation24_spill] sm:$0xff] }
 0x1b8   : > { %968 = vst.msk [vmem:[#allocation4 + $0xa8] sm:$0xff] %vm946_vm5, %v893_v19 }
 0x1b9   : > { %1244 = vrot.lane.b32.xlu0 %v7018_v51, %s4466_s28 }
 0x1bb   : > { %v903_v12 = vpop.permute.xlu0 %902 }
 0x1bc   : > { %973 = vst.msk [vmem:[#allocation4 + $0xd0] sm:$0xff] %vm946_vm5, %v903_v12  ;;  %1236 = vrot.lane.b32.xlu2 %v7019_v6, %s4466_s28  ;;  %v7039_v12 = vld [vmem:[#allocation34_spill] sm:$0xff] }
 0x1bd   : > { %1240 = vrot.lane.b32.xlu1 %v7020_v35, %s4466_s28  ;;  %v7040_v35 = vld [vmem:[#allocation29_spill] sm:$0xff] }
 0x1be   : > { %v913_v36 = vpop.permute.xlu2 %912 }
 0x1bf   : > { %v899_v58 = vpop.permute.xlu1 %898  ;;  %978 = vst.msk [vmem:[#allocation4 + $0xf8] sm:$0xff] %vm946_vm5, %v913_v36  ;;  %v7041_v36 = vld [vmem:[#allocation27_spill] sm:$0xff] }
 0x1c0   : > { %971 = vst.msk [vmem:[#allocation4 + $0xc0] sm:$0xff] %vm946_vm5, %v899_v58 }
 0x1c1   : > { %1250 = vrot.lane.b32.xlu0 %v7021_v61, %s4466_s28 }
 0x1c3   : > { %v909_v13 = vpop.permute.xlu0 %908 }
 0x1c4   : > { %976 = vst.msk [vmem:[#allocation4 + $0xe8] sm:$0xff] %vm946_vm5, %v909_v13  ;;  %1242 = vrot.lane.b32.xlu2 %v7022_v26, %s4466_s28  ;;  %v7042_v26 = vld [vmem:[#allocation32_spill] sm:$0xff] }
 0x1c5   : > { %1246 = vrot.lane.b32.xlu1 %v7023_v18, %s4466_s28  ;;  %v7043_v18 = vld [vmem:[#allocation30_spill] sm:$0xff] }
 0x1c6   : > { %v1048_v4 = vpop.permute.xlu2 %1047 }
 0x1c7   : > { %v905_v32 = vpop.permute.xlu1 %904  ;;  %1142 = vst.msk [vmem:[#allocation4 + $0x10] sm:$0xff] %vm1139_vm6, %v1048_v4  ;;  %v5423_v4 = vld [vmem:[#allocation2 + $0x18a] sm:$0xff] }
 0x1c8   : > { %974 = vst.msk [vmem:[#allocation4 + $0xd8] sm:$0xff] %vm946_vm5, %v905_v32 }
 0x1c9   : > { %1256 = vrot.lane.b32.xlu0 %v7024_v20, %s4466_s28 }
 0x1cb   : > { %v1044_v15 = vpop.permute.xlu0 %1043 }
 0x1cc   : > { %1140 = vst.msk [vmem:[#allocation4] sm:$0xff] %vm1139_vm6, %v1044_v15  ;;  %1248 = vrot.lane.b32.xlu2 %v7025_v7, %s4466_s28  ;;  %v7044_v15 = vld [vmem:[#allocation35_spill] sm:$0xff]  ;;  %v7045_v7 = vld [vmem:[#allocation33_spill] sm:$0xff] }
 0x1cd   : > { %1252 = vrot.lane.b32.xlu1 %v7026_v27, %s4466_s28  ;;  %v1368_v27 = vld [vmem:[#allocation2 + $0x48] sm:$0xff] }
 0x1ce   : > { %v1054_v24 = vpop.permute.xlu2 %1053 }
 0x1cf   : > { %v911_v38 = vpop.permute.xlu1 %910  ;;  %1145 = vst.msk [vmem:[#allocation4 + $0x28] sm:$0xff] %vm1139_vm6, %v1054_v24 }
 0x1d0   : > { %977 = vst.msk [vmem:[#allocation4 + $0xf0] sm:$0xff] %vm946_vm5, %v911_v38 }
 0x1d1   : > { %1262 = vrot.lane.b32.xlu0 %v7027_v33, %s4466_s28  ;;  %v5437_v33 = vld [vmem:[#allocation2 + $0x182] sm:$0xff] }
 0x1d3   : > { %v1050_v31 = vpop.permute.xlu0 %1049 }
 0x1d4   : > { %1143 = vst.msk [vmem:[#allocation4 + $0x18] sm:$0xff] %vm1139_vm6, %v1050_v31  ;;  %1254 = vrot.lane.b32.xlu2 %v7028_v44, %s4466_s28  ;;  %v1366_v31 = vld [vmem:[#allocation2 + $0x30] sm:$0xff] }
 0x1d5   : > { %1258 = vrot.lane.b32.xlu1 %v7029_v39, %s4466_s28 }
 0x1d6   : > { %v1060_v37 = vpop.permute.xlu2 %1059 }
 0x1d7   : > { %v1046_v49 = vpop.permute.xlu1 %1045  ;;  %1148 = vst.msk [vmem:[#allocation4 + $0x40] sm:$0xff] %vm1139_vm6, %v1060_v37 }
 0x1d8   : > { %1141 = vst.msk [vmem:[#allocation4 + $0x8] sm:$0xff] %vm1139_vm6, %v1046_v49  ;;  %v1367_v49 = vld [vmem:[#allocation2 + $0x38] sm:$0xff] }
 0x1d9   : > { %1268 = vrot.lane.b32.xlu0 %v7030_v45, %s4466_s28 }
 0x1db   : > { %v1056_v43 = vpop.permute.xlu0 %1055 }
 0x1dc   : > { %1146 = vst.msk [vmem:[#allocation4 + $0x30] sm:$0xff] %vm1139_vm6, %v1056_v43  ;;  %1260 = vrot.lane.b32.xlu2 %v7031_v53, %s4466_s28 }
 0x1dd   : > { %1264 = vrot.lane.b32.xlu1 %v7032_v50, %s4466_s28 }
 0x1de   : > { %v1066_v48 = vpop.permute.xlu2 %1065 }
 0x1df   : > { %v1052_v56 = vpop.permute.xlu1 %1051  ;;  %1151 = vst.msk [vmem:[#allocation4 + $0x58] sm:$0xff] %vm1139_vm6, %v1066_v48 }
 0x1e0   : > { %1144 = vst.msk [vmem:[#allocation4 + $0x20] sm:$0xff] %vm1139_vm6, %v1052_v56  ;;  %v1373_v56 = vld [vmem:[#allocation2 + $0x80] sm:$0xff] }
 0x1e1   : > { %1274 = vrot.lane.b32.xlu0 %v7033_v52, %s4466_s28 }
 0x1e3   : > { %v1062_v59 = vpop.permute.xlu0 %1061 }
 0x1e4   : > { %1149 = vst.msk [vmem:[#allocation4 + $0x48] sm:$0xff] %vm1139_vm6, %v1062_v59  ;;  %1266 = vrot.lane.b32.xlu2 %v7034_v1, %s4466_s28  ;;  %v1376_v59 = vld [vmem:[#allocation2 + $0xa8] sm:$0xff] }
 0x1e5   : > { %1270 = vrot.lane.b32.xlu1 %v7035_v57, %s4466_s28  ;;  %v1379_v57 = vld [vmem:[#allocation2 + $0xc8] sm:$0xff] }
 0x1e6   : > { %v1072_v55 = vpop.permute.xlu2 %1071 }
 0x1e7   : > { %v1058_v62 = vpop.permute.xlu1 %1057  ;;  %1154 = vst.msk [vmem:[#allocation4 + $0x70] sm:$0xff] %vm1139_vm6, %v1072_v55 }
 0x1e8   : > { %1147 = vst.msk [vmem:[#allocation4 + $0x38] sm:$0xff] %vm1139_vm6, %v1058_v62  ;;  %v1382_v62 = vld [vmem:[#allocation2 + $0xf0] sm:$0xff] }
 0x1e9   : > { %1280 = vrot.lane.b32.xlu0 %v7036_v9, %s4466_s28 }
 0x1eb   : > { %v1068_v21 = vpop.permute.xlu0 %1067 }
 0x1ec   : > { %1152 = vst.msk [vmem:[#allocation4 + $0x60] sm:$0xff] %vm1139_vm6, %v1068_v21  ;;  %1272 = vrot.lane.b32.xlu2 %v7037_v60, %s4466_s28  ;;  %v1385_v21 = vld [vmem:[#allocation2 + $0x110] sm:$0xff] }
 0x1ed   : > { %1276 = vrot.lane.b32.xlu1 %v7038_v25, %s4466_s28  ;;  %v1388_v25 = vld [vmem:[#allocation2 + $0x138] sm:$0xff] }
 0x1ee   : > { %v1078_v19 = vpop.permute.xlu2 %1077 }
 0x1ef   : > { %v1064_v51 = vpop.permute.xlu1 %1063  ;;  %1157 = vst.msk [vmem:[#allocation4 + $0x88] sm:$0xff] %vm1139_vm6, %v1078_v19 }
 0x1f0   : > { %1150 = vst.msk [vmem:[#allocation4 + $0x50] sm:$0xff] %vm1139_vm6, %v1064_v51 }
 0x1f1   : > { %1286 = vrot.lane.b32.xlu0 %v7039_v12, %s4466_s28 }
 0x1f3   : > { %v1074_v6 = vpop.permute.xlu0 %1073 }
 0x1f4   : > { %1155 = vst.msk [vmem:[#allocation4 + $0x78] sm:$0xff] %vm1139_vm6, %v1074_v6  ;;  %1278 = vrot.lane.b32.xlu2 %v7040_v35, %s4466_s28 }
 0x1f5   : > { %1282 = vrot.lane.b32.xlu1 %v7041_v36, %s4466_s28  ;;  %v1397_v36 = vld [vmem:[#allocation2 + $0x1a0] sm:$0xff] }
 0x1f6   : > { %v1084_v58 = vpop.permute.xlu2 %1083 }
 0x1f7   : > { %v1070_v61 = vpop.permute.xlu1 %1069  ;;  %1160 = vst.msk [vmem:[#allocation4 + $0xa0] sm:$0xff] %vm1139_vm6, %v1084_v58  ;;  %v1560_v58 = vld [vmem:[#allocation2 + $0x39] sm:$0xff] }
 0x1f8   : > { %1153 = vst.msk [vmem:[#allocation4 + $0x68] sm:$0xff] %vm1139_vm6, %v1070_v61 }
 0x1f9   : > { %1292 = vrot.lane.b32.xlu0 %v5134_v30, %s4466_s28 }
 0x1fb   : > { %v1080_v13 = vpop.permute.xlu0 %1079 }
 0x1fc   : > { %1158 = vst.msk [vmem:[#allocation4 + $0x90] sm:$0xff] %vm1139_vm6, %v1080_v13  ;;  %1284 = vrot.lane.b32.xlu2 %v7042_v26, %s4466_s28 }
 0x1fd   : > { %1288 = vrot.lane.b32.xlu1 %v7043_v18, %s4466_s28  ;;  %v1561_v18 = vld [vmem:[#allocation2 + $0x49] sm:$0xff] }
 0x1fe   : > { %v1090_v32 = vpop.permute.xlu2 %1089 }
 0x1ff   : > { %v1076_v20 = vpop.permute.xlu1 %1075  ;;  %1163 = vst.msk [vmem:[#allocation4 + $0xb8] sm:$0xff] %vm1139_vm6, %v1090_v32  ;;  %v1563_v32 = vld [vmem:[#allocation2 + $0x61] sm:$0xff] }
 0x200   : > { %1156 = vst.msk [vmem:[#allocation4 + $0x80] sm:$0xff] %vm1139_vm6, %v1076_v20 }
 0x201   : > { %1298 = vrot.lane.b32.xlu0 %v5423_v4, %s4466_s28 }
 0x203   : > { %v1086_v30 = vpop.permute.xlu0 %1085 }
 0x204   : > { %1161 = vst.msk [vmem:[#allocation4 + $0xa8] sm:$0xff] %vm1139_vm6, %v1086_v30  ;;  %1290 = vrot.lane.b32.xlu2 %v7044_v15, %s4466_s28  ;;  %v1568_v30 = vld [vmem:[#allocation2 + $0x99] sm:$0xff] }
 0x205   : > { %1294 = vrot.lane.b32.xlu1 %v7045_v7, %s4466_s28 }
 0x206   : > { %v1096_v24 = vpop.permute.xlu2 %1095 }
 0x207   : > { %v1082_v38 = vpop.permute.xlu1 %1081  ;;  %1166 = vst.msk [vmem:[#allocation4 + $0xd0] sm:$0xff] %vm1139_vm6, %v1096_v24  ;;  %v1566_v24 = vld [vmem:[#allocation2 + $0x81] sm:$0xff] }
 0x208   : > { %1159 = vst.msk [vmem:[#allocation4 + $0x98] sm:$0xff] %vm1139_vm6, %v1082_v38 }
 0x209   : > { %1434 = vrot.lane.b32.xlu0 %v1368_v27, %s4467_s29  ;;  %v1564_v27 = vld [vmem:[#allocation2 + $0x69] sm:$0xff] }
 0x20b   : > { %v1092_v44 = vpop.permute.xlu0 %1091 }
 0x20c   : > { %1164 = vst.msk [vmem:[#allocation4 + $0xc0] sm:$0xff] %vm1139_vm6, %v1092_v44  ;;  %1296 = vrot.lane.b32.xlu2 %v5437_v33, %s4466_s28 }
 0x20d   : > { %1430 = vrot.lane.b32.xlu1 %v1366_v31, %s4467_s29  ;;  %v1571_v31 = vld [vmem:[#allocation2 + $0xc1] sm:$0xff] }
 0x20e   : > { %v1102_v39 = vpop.permute.xlu2 %1101 }
 0x20f   : > { %v1088_v37 = vpop.permute.xlu1 %1087  ;;  %1169 = vst.msk [vmem:[#allocation4 + $0xe8] sm:$0xff] %vm1139_vm6, %v1102_v39 }
 0x210   : > { %1162 = vst.msk [vmem:[#allocation4 + $0xb0] sm:$0xff] %vm1139_vm6, %v1088_v37  ;;  %v1567_v37 = vld [vmem:[#allocation2 + $0x91] sm:$0xff] }
 0x211   : > { %1440 = vrot.lane.b32.xlu0 %v4917_v17, %s4467_s29  ;;  %v1370_v17 = vld [vmem:[#allocation2 + $0x60] sm:$0xff] }
 0x213   : > { %v1098_v45 = vpop.permute.xlu0 %1097 }
 0x214   : > { %1167 = vst.msk [vmem:[#allocation4 + $0xd8] sm:$0xff] %vm1139_vm6, %v1098_v45  ;;  %1432 = vrot.lane.b32.xlu2 %v1367_v49, %s4467_s29  ;;  %v1569_v49 = vld [vmem:[#allocation2 + $0xa9] sm:$0xff] }
 0x215   : > { %1436 = vrot.lane.b32.xlu1 %v4925_v23, %s4467_s29 }
 0x216   : > { %v1237_v43 = vpop.permute.xlu2 %1236 }
 0x217   : > { %v1094_v53 = vpop.permute.xlu1 %1093  ;;  %1333 = vst.msk [vmem:[#allocation4] sm:$0xff] %vm1332_vm7, %v1237_v43  ;;  %v1574_v43 = vld [vmem:[#allocation2 + $0xe1] sm:$0xff] }
 0x218   : > { %1165 = vst.msk [vmem:[#allocation4 + $0xc8] sm:$0xff] %vm1139_vm6, %v1094_v53 }
 0x219   : > { %1446 = vrot.lane.b32.xlu0 %v4942_v29, %s4467_s29 }
 0x21b   : > { %v1104_v50 = vpop.permute.xlu0 %1103 }
 0x21c   : > { %1170 = vst.msk [vmem:[#allocation4 + $0xf0] sm:$0xff] %vm1139_vm6, %v1104_v50  ;;  %1438 = vrot.lane.b32.xlu2 %v1370_v17, %s4467_s29  ;;  %v1570_v50 = vld [vmem:[#allocation2 + $0xb1] sm:$0xff] }
 0x21d   : > { %1442 = vrot.lane.b32.xlu1 %v4951_v40, %s4467_s29 }
 0x21e   : > { %v1243_v48 = vpop.permute.xlu2 %1242 }
 0x21f   : > { %v1100_v23 = vpop.permute.xlu1 %1099  ;;  %1336 = vst.msk [vmem:[#allocation4 + $0x18] sm:$0xff] %vm1332_vm7, %v1243_v48  ;;  %v1572_v48 = vld [vmem:[#allocation2 + $0xc9] sm:$0xff] }
 0x220   : > { %1168 = vst.msk [vmem:[#allocation4 + $0xe0] sm:$0xff] %vm1139_vm6, %v1100_v23 }
 0x221   : > { %1452 = vrot.lane.b32.xlu0 %v4968_v46, %s4467_s29 }
 0x223   : > { %v1239_v29 = vpop.permute.xlu0 %1238 }
 0x224   : > { %1334 = vst.msk [vmem:[#allocation4 + $0x8] sm:$0xff] %vm1332_vm7, %v1239_v29  ;;  %1444 = vrot.lane.b32.xlu2 %v1373_v56, %s4467_s29  ;;  %v1577_v56 = vld [vmem:[#allocation2 + $0x109] sm:$0xff] }
 0x225   : > { %1448 = vrot.lane.b32.xlu1 %v4977_v0, %s4467_s29 }
 0x226   : > { %v1249_v52 = vpop.permute.xlu2 %1248 }
 0x227   : > { %v1106_v40 = vpop.permute.xlu1 %1105  ;;  %1339 = vst.msk [vmem:[#allocation4 + $0x30] sm:$0xff] %vm1332_vm7, %v1249_v52 }
 0x228   : > { %1171 = vst.msk [vmem:[#allocation4 + $0xf8] sm:$0xff] %vm1139_vm6, %v1106_v40  ;;  %v1573_v40 = vld [vmem:[#allocation2 + $0xd9] sm:$0xff] }
 0x229   : > { %1458 = vrot.lane.b32.xlu0 %v4995_v34, %s4467_s29 }
 0x22b   : > { %v1245_v46 = vpop.permute.xlu0 %1244 }
 0x22c   : > { %1337 = vst.msk [vmem:[#allocation4 + $0x20] sm:$0xff] %vm1332_vm7, %v1245_v46  ;;  %1450 = vrot.lane.b32.xlu2 %v1376_v59, %s4467_s29  ;;  %v1575_v59 = vld [vmem:[#allocation2 + $0xf1] sm:$0xff] }
 0x22d   : > { %1454 = vrot.lane.b32.xlu1 %v5004_v22, %s4467_s29 }
 0x22e   : > { %v1255_v1 = vpop.permute.xlu2 %1254 }
 0x22f   : > { %v1241_v0 = vpop.permute.xlu1 %1240  ;;  %1342 = vst.msk [vmem:[#allocation4 + $0x48] sm:$0xff] %vm1332_vm7, %v1255_v1  ;;  %v1580_v1 = vld [vmem:[#allocation2 + $0x129] sm:$0xff] }
 0x230   : > { %1335 = vst.msk [vmem:[#allocation4 + $0x10] sm:$0xff] %vm1332_vm7, %v1241_v0 }
 0x231   : > { %1464 = vrot.lane.b32.xlu0 %v5022_v47, %s4467_s29 }
 0x233   : > { %v1251_v34 = vpop.permute.xlu0 %1250 }
 0x234   : > { %1340 = vst.msk [vmem:[#allocation4 + $0x38] sm:$0xff] %vm1332_vm7, %v1251_v34  ;;  %1456 = vrot.lane.b32.xlu2 %v1379_v57, %s4467_s29  ;;  %v1576_v34 = vld [vmem:[#allocation2 + $0xf9] sm:$0xff] }
 0x235   : > { %1460 = vrot.lane.b32.xlu1 %v5031_v42, %s4467_s29 }
 0x236   : > { %v1261_v55 = vpop.permute.xlu2 %1260 }
 0x237   : > { %v1247_v22 = vpop.permute.xlu1 %1246  ;;  %1345 = vst.msk [vmem:[#allocation4 + $0x60] sm:$0xff] %vm1332_vm7, %v1261_v55  ;;  %v1578_v55 = vld [vmem:[#allocation2 + $0x111] sm:$0xff] }
 0x238   : > { %1338 = vst.msk [vmem:[#allocation4 + $0x28] sm:$0xff] %vm1332_vm7, %v1247_v22 }
 0x239   : > { %1470 = vrot.lane.b32.xlu0 %v5049_v28, %s4467_s29 }
 0x23b   : > { %v1257_v47 = vpop.permute.xlu0 %1256 }
 0x23c   : > { %1343 = vst.msk [vmem:[#allocation4 + $0x50] sm:$0xff] %vm1332_vm7, %v1257_v47  ;;  %1462 = vrot.lane.b32.xlu2 %v1382_v62, %s4467_s29  ;;  %v1583_v62 = vld [vmem:[#allocation2 + $0x151] sm:$0xff] }
 0x23d   : > { %1466 = vrot.lane.b32.xlu1 %v5058_v3, %s4467_s29 }
 0x23e   : > { %v1267_v9 = vpop.permute.xlu2 %1266 }
 0x23f   : > { %v1253_v42 = vpop.permute.xlu1 %1252  ;;  %1348 = vst.msk [vmem:[#allocation4 + $0x78] sm:$0xff] %vm1332_vm7, %v1267_v9 }
 0x240   : > { %1341 = vst.msk [vmem:[#allocation4 + $0x40] sm:$0xff] %vm1332_vm7, %v1253_v42  ;;  %v1579_v42 = vld [vmem:[#allocation2 + $0x121] sm:$0xff] }
 0x241   : > { %1476 = vrot.lane.b32.xlu0 %v5076_v16, %s4467_s29 }
 0x243   : > { %v1263_v28 = vpop.permute.xlu0 %1262 }
 0x244   : > { %1346 = vst.msk [vmem:[#allocation4 + $0x68] sm:$0xff] %vm1332_vm7, %v1263_v28  ;;  %1468 = vrot.lane.b32.xlu2 %v1385_v21, %s4467_s29  ;;  %v1581_v21 = vld [vmem:[#allocation2 + $0x139] sm:$0xff] }
 0x245   : > { %1472 = vrot.lane.b32.xlu1 %v5085_v41, %s4467_s29 }
 0x246   : > { %v1273_v60 = vpop.permute.xlu2 %1272 }
 0x247   : > { %v1259_v3 = vpop.permute.xlu1 %1258  ;;  %1351 = vst.msk [vmem:[#allocation4 + $0x90] sm:$0xff] %vm1332_vm7, %v1273_v60  ;;  %v1586_v60 = vld [vmem:[#allocation2 + $0x171] sm:$0xff] }
 0x248   : > { %1344 = vst.msk [vmem:[#allocation4 + $0x58] sm:$0xff] %vm1332_vm7, %v1259_v3 }
 0x249   : > { %1482 = vrot.lane.b32.xlu0 %v5103_v8, %s4467_s29  ;;  %v1559_v8 = vld [vmem:[#allocation2 + $0x31] sm:$0xff] }
 0x24b   : > { %v1269_v16 = vpop.permute.xlu0 %1268 }
 0x24c   : > { %1349 = vst.msk [vmem:[#allocation4 + $0x80] sm:$0xff] %vm1332_vm7, %v1269_v16  ;;  %1474 = vrot.lane.b32.xlu2 %v1388_v25, %s4467_s29  ;;  %v1582_v16 = vld [vmem:[#allocation2 + $0x141] sm:$0xff] }
 0x24d   : > { %1478 = vrot.lane.b32.xlu1 %v5109_v2, %s4467_s29 }
 0x24e   : > { %v1279_v19 = vpop.permute.xlu2 %1278 }
 0x24f   : > { %v1265_v41 = vpop.permute.xlu1 %1264  ;;  %1354 = vst.msk [vmem:[#allocation4 + $0xa8] sm:$0xff] %vm1332_vm7, %v1279_v19  ;;  %v1584_v19 = vld [vmem:[#allocation2 + $0x159] sm:$0xff] }
 0x250   : > { %1347 = vst.msk [vmem:[#allocation4 + $0x70] sm:$0xff] %vm1332_vm7, %v1265_v41 }
 0x251   : > { %1488 = vrot.lane.b32.xlu0 %v5241_v10, %s4467_s29  ;;  %v1396_v10 = vld [vmem:[#allocation2 + $0x198] sm:$0xff] }
 0x253   : > { %v1275_v51 = vpop.permute.xlu0 %1274 }
 0x254   : > { %1352 = vst.msk [vmem:[#allocation4 + $0x98] sm:$0xff] %vm1332_vm7, %v1275_v51  ;;  %1480 = vrot.lane.b32.xlu2 %v5082_v5, %s4467_s29  ;;  %v1562_v5 = vld [vmem:[#allocation2 + $0x51] sm:$0xff]  ;;  %v1589_v51 = vld [vmem:[#allocation2 + $0x199] sm:$0xff] }
 0x255   : > { %1484 = vrot.lane.b32.xlu1 %v5126_v14, %s4467_s29 }
 0x256   : > { %v1285_v2 = vpop.permute.xlu2 %1284 }
 0x257   : > { %v1271_v12 = vpop.permute.xlu1 %1270  ;;  %1357 = vst.msk [vmem:[#allocation4 + $0xc0] sm:$0xff] %vm1332_vm7, %v1285_v2 }
 0x258   : > { %1350 = vst.msk [vmem:[#allocation4 + $0x88] sm:$0xff] %vm1332_vm7, %v1271_v12  ;;  %v1585_v12 = vld [vmem:[#allocation2 + $0x169] sm:$0xff] }
 0x259   : > { %1623 = vrot.lane.b32.xlu0 %v1559_v8, %s4468_s30 }
 0x25b   : > { %v1281_v6 = vpop.permute.xlu0 %1280 }
 0x25c   : > { %1355 = vst.msk [vmem:[#allocation4 + $0xb0] sm:$0xff] %vm1332_vm7, %v1281_v6  ;;  %1486 = vrot.lane.b32.xlu2 %v5230_v63, %s4467_s29  ;;  %v1565_v63 = vld [vmem:[#allocation2 + $0x79] sm:$0xff] }
 0x25d   : > { %1490 = vrot.lane.b32.xlu1 %v1396_v10, %s4467_s29  ;;  %v1753_v6 = vld [vmem:[#allocation2 + $0x3a] sm:$0xff] }
 0x25e   : > { %v1291_v14 = vpop.permute.xlu2 %1290 }
 0x25f   : > { %v1277_v35 = vpop.permute.xlu1 %1276  ;;  %1360 = vst.msk [vmem:[#allocation4 + $0xd8] sm:$0xff] %vm1332_vm7, %v1291_v14 }
 0x260   : > { %1353 = vst.msk [vmem:[#allocation4 + $0xa0] sm:$0xff] %vm1332_vm7, %v1277_v35  ;;  %v1590_v35 = vld [vmem:[#allocation2 + $0x1a1] sm:$0xff] }
 0x261   : > { %1629 = vrot.lane.b32.xlu0 %v1562_v5, %s4468_s30 }
 0x263   : > { %v1287_v61 = vpop.permute.xlu0 %1286 }
 0x264   : > { %1358 = vst.msk [vmem:[#allocation4 + $0xc8] sm:$0xff] %vm1332_vm7, %v1287_v61  ;;  %1492 = vrot.lane.b32.xlu2 %v1397_v36, %s4467_s29 }
 0x265   : > { %1625 = vrot.lane.b32.xlu1 %v1560_v58, %s4468_s30 }
 0x266   : > { %v1297_v13 = vpop.permute.xlu2 %1296 }
 0x267   : > { %v1283_v26 = vpop.permute.xlu1 %1282  ;;  %1363 = vst.msk [vmem:[#allocation4 + $0xf0] sm:$0xff] %vm1332_vm7, %v1297_v13  ;;  %v1754_v13 = vld [vmem:[#allocation2 + $0x4a] sm:$0xff] }
 0x268   : > { %1356 = vst.msk [vmem:[#allocation4 + $0xb8] sm:$0xff] %vm1332_vm7, %v1283_v26 }
 0x269   : > { %1635 = vrot.lane.b32.xlu0 %v1565_v63, %s4468_s30  ;;  %v1752_v63 = vld [vmem:[#allocation2 + $0x32] sm:$0xff] }
 0x26b   : > { %v1293_v20 = vpop.permute.xlu0 %1292 }
 0x26c   : > { %1361 = vst.msk [vmem:[#allocation4 + $0xe0] sm:$0xff] %vm1332_vm7, %v1293_v20  ;;  %1627 = vrot.lane.b32.xlu2 %v1561_v18, %s4468_s30  ;;  %v1755_v20 = vld [vmem:[#allocation2 + $0x52] sm:$0xff] }
 0x26d   : > { %1631 = vrot.lane.b32.xlu1 %v1563_v32, %s4468_s30 }
 0x26e   : > { %v1433_v15 = vpop.permute.xlu2 %1432 }
 0x26f   : > { %v1289_v7 = vpop.permute.xlu1 %1288  ;;  %1528 = vst.msk [vmem:[#allocation4 + $0x8] sm:$0xff] %vm1526_vm8, %v1433_v15 }
 0x270   : > { %1359 = vst.msk [vmem:[#allocation4 + $0xd0] sm:$0xff] %vm1332_vm7, %v1289_v7  ;;  %v1762_v7 = vld [vmem:[#allocation2 + $0xaa] sm:$0xff] }
 0x271   : > { %1641 = vrot.lane.b32.xlu0 %v1568_v30, %s4468_s30  ;;  %v1757_v30 = vld [vmem:[#allocation2 + $0x6a] sm:$0xff] }
 0x273   : > { %v1299_v38 = vpop.permute.xlu0 %1298 }
 0x274   : > { %1364 = vst.msk [vmem:[#allocation4 + $0xf8] sm:$0xff] %vm1332_vm7, %v1299_v38  ;;  %1633 = vrot.lane.b32.xlu2 %v1564_v27, %s4468_s30  ;;  %v1758_v38 = vld [vmem:[#allocation2 + $0x7a] sm:$0xff] }
 0x275   : > { %1637 = vrot.lane.b32.xlu1 %v1566_v24, %s4468_s30 }
 0x276   : > { %v1439_v44 = vpop.permute.xlu2 %1438 }
 0x277   : > { %v1295_v39 = vpop.permute.xlu1 %1294  ;;  %1531 = vst.msk [vmem:[#allocation4 + $0x20] sm:$0xff] %vm1526_vm8, %v1439_v44 }
 0x278   : > { %1362 = vst.msk [vmem:[#allocation4 + $0xe8] sm:$0xff] %vm1332_vm7, %v1295_v39  ;;  %v1765_v39 = vld [vmem:[#allocation2 + $0xca] sm:$0xff] }
 0x279   : > { %1647 = vrot.lane.b32.xlu0 %v1571_v31, %s4468_s30  ;;  %v1760_v31 = vld [vmem:[#allocation2 + $0x92] sm:$0xff] }
 0x27b   : > { %v1435_v45 = vpop.permute.xlu0 %1434 }
 0x27c   : > { %1529 = vst.msk [vmem:[#allocation4 + $0x10] sm:$0xff] %vm1526_vm8, %v1435_v45  ;;  %1639 = vrot.lane.b32.xlu2 %v1567_v37, %s4468_s30  ;;  %v1761_v45 = vld [vmem:[#allocation2 + $0x9a] sm:$0xff] }
 0x27d   : > { %1643 = vrot.lane.b32.xlu1 %v1569_v49, %s4468_s30 }
 0x27e   : > { %v1445_v53 = vpop.permute.xlu2 %1444 }
 0x27f   : > { %v1431_v17 = vpop.permute.xlu1 %1430  ;;  %1534 = vst.msk [vmem:[#allocation4 + $0x38] sm:$0xff] %vm1526_vm8, %v1445_v53 }
 0x280   : > { %1527 = vst.msk [vmem:[#allocation4] sm:$0xff] %vm1526_vm8, %v1431_v17  ;;  %v1768_v17 = vld [vmem:[#allocation2 + $0xf2] sm:$0xff] }
 0x281   : > { %1653 = vrot.lane.b32.xlu0 %v1574_v43, %s4468_s30  ;;  %v1763_v43 = vld [vmem:[#allocation2 + $0xb2] sm:$0xff] }
 0x283   : > { %v1441_v23 = vpop.permute.xlu0 %1440 }
 0x284   : > { %1532 = vst.msk [vmem:[#allocation4 + $0x28] sm:$0xff] %vm1526_vm8, %v1441_v23  ;;  %1645 = vrot.lane.b32.xlu2 %v1570_v50, %s4468_s30  ;;  %v1764_v23 = vld [vmem:[#allocation2 + $0xc2] sm:$0xff] }
 0x285   : > { %1649 = vrot.lane.b32.xlu1 %v1572_v48, %s4468_s30 }
 0x286   : > { %v1451_v29 = vpop.permute.xlu2 %1450 }
 0x287   : > { %v1437_v52 = vpop.permute.xlu1 %1436  ;;  %1537 = vst.msk [vmem:[#allocation4 + $0x50] sm:$0xff] %vm1526_vm8, %v1451_v29 }
 0x288   : > { %1530 = vst.msk [vmem:[#allocation4 + $0x18] sm:$0xff] %vm1526_vm8, %v1437_v52 }
 0x289   : > { %1659 = vrot.lane.b32.xlu0 %v1577_v56, %s4468_s30  ;;  %v1766_v56 = vld [vmem:[#allocation2 + $0xda] sm:$0xff] }
 0x28b   : > { %v1447_v46 = vpop.permute.xlu0 %1446 }
 0x28c   : > { %1535 = vst.msk [vmem:[#allocation4 + $0x40] sm:$0xff] %vm1526_vm8, %v1447_v46  ;;  %1651 = vrot.lane.b32.xlu2 %v1573_v40, %s4468_s30  ;;  %v1771_v40 = vld [vmem:[#allocation2 + $0x112] sm:$0xff]  ;;  %v1767_v46 = vld [vmem:[#allocation2 + $0xe2] sm:$0xff] }
 0x28d   : > { %1655 = vrot.lane.b32.xlu1 %v1575_v59, %s4468_s30 }
 0x28e   : > { %v1457_v0 = vpop.permute.xlu2 %1456 }
 0x28f   : > { %v1443_v57 = vpop.permute.xlu1 %1442  ;;  %1540 = vst.msk [vmem:[#allocation4 + $0x68] sm:$0xff] %vm1526_vm8, %v1457_v0 }
 0x290   : > { %1533 = vst.msk [vmem:[#allocation4 + $0x30] sm:$0xff] %vm1526_vm8, %v1443_v57 }
 0x291   : > { %1665 = vrot.lane.b32.xlu0 %v1580_v1, %s4468_s30  ;;  %v1769_v1 = vld [vmem:[#allocation2 + $0xfa] sm:$0xff] }
 0x293   : > { %v1453_v22 = vpop.permute.xlu0 %1452 }
 0x294   : > { %1538 = vst.msk [vmem:[#allocation4 + $0x58] sm:$0xff] %vm1526_vm8, %v1453_v22  ;;  %1657 = vrot.lane.b32.xlu2 %v1576_v34, %s4468_s30  ;;  %v1770_v22 = vld [vmem:[#allocation2 + $0x10a] sm:$0xff] }
 0x295   : > { %1661 = vrot.lane.b32.xlu1 %v1578_v55, %s4468_s30  ;;  %v1774_v55 = vld [vmem:[#allocation2 + $0x13a] sm:$0xff] }
 0x296   : > { %v1463_v47 = vpop.permute.xlu2 %1462 }
 0x297   : > { %v1449_v9 = vpop.permute.xlu1 %1448  ;;  %1543 = vst.msk [vmem:[#allocation4 + $0x80] sm:$0xff] %vm1526_vm8, %v1463_v47 }
 0x298   : > { %1536 = vst.msk [vmem:[#allocation4 + $0x48] sm:$0xff] %vm1526_vm8, %v1449_v9 }
 0x299   : > { %1671 = vrot.lane.b32.xlu0 %v1583_v62, %s4468_s30  ;;  %v1772_v62 = vld [vmem:[#allocation2 + $0x122] sm:$0xff] }
 0x29b   : > { %v1459_v28 = vpop.permute.xlu0 %1458 }
 0x29c   : > { %1541 = vst.msk [vmem:[#allocation4 + $0x70] sm:$0xff] %vm1526_vm8, %v1459_v28  ;;  %1663 = vrot.lane.b32.xlu2 %v1579_v42, %s4468_s30 }
 0x29d   : > { %1667 = vrot.lane.b32.xlu1 %v1581_v21, %s4468_s30  ;;  %v1775_v21 = vld [vmem:[#allocation2 + $0x142] sm:$0xff] }
 0x29e   : > { %v1469_v3 = vpop.permute.xlu2 %1468 }
 0x29f   : > { %v1455_v25 = vpop.permute.xlu1 %1454  ;;  %1546 = vst.msk [vmem:[#allocation4 + $0x98] sm:$0xff] %vm1526_vm8, %v1469_v3 }
 0x2a0   : > { %1539 = vst.msk [vmem:[#allocation4 + $0x60] sm:$0xff] %vm1526_vm8, %v1455_v25  ;;  %v1773_v25 = vld [vmem:[#allocation2 + $0x12a] sm:$0xff] }
 0x2a1   : > { %1677 = vrot.lane.b32.xlu0 %v1586_v60, %s4468_s30 }
 0x2a3   : > { %v1465_v41 = vpop.permute.xlu0 %1464 }
 0x2a4   : > { %1544 = vst.msk [vmem:[#allocation4 + $0x88] sm:$0xff] %vm1526_vm8, %v1465_v41  ;;  %1669 = vrot.lane.b32.xlu2 %v1582_v16, %s4468_s30  ;;  %v1981_v16 = vld [vmem:[%s6913_s1 + $0x20] sm:$0xf] }
 0x2a5   : > { %1673 = vrot.lane.b32.xlu1 %v1584_v19, %s4468_s30  ;;  %4354 = vmatpush.msk.msra.mxu0 %vm2083_vm10, %v1981_v16 }
 0x2a6   : > { %v1475_v8 = vpop.permute.xlu2 %1474  ;;  %4424 = vmatpush.msk.msra.mxu2 %vm2083_vm10, %v1981_v16 }
 0x2a7   : > { %v1461_v2 = vpop.permute.xlu1 %1460  ;;  %1549 = vst.msk [vmem:[#allocation4 + $0xb0] sm:$0xff] %vm1526_vm8, %v1475_v8  ;;  %v1980_v8 = vld [vmem:[%s6913_s1 + $0x18] sm:$0xff] }
 0x2a8   : > { %1542 = vst.msk [vmem:[#allocation4 + $0x78] sm:$0xff] %vm1526_vm8, %v1461_v2  ;;  %v1979_v2 = vld [vmem:[%s6913_s1 + $0x10] sm:$0xff]  ;;  %2099 = vmatpush.msra.mxu0 %v1980_v8  ;;  %4425 = vmatpush.msra.mxu2 %v1980_v8 }
 0x2a9   : > { %1683 = vrot.lane.b32.xlu0 %v1589_v51, %s4468_s30 }
 0x2aa   : > { %2100 = vmatpush.msra.mxu0 %v1979_v2  ;;  %4426 = vmatpush.msra.mxu2 %v1979_v2 }
 0x2ab   : > { %v1471_v10 = vpop.permute.xlu0 %1470 }
 0x2ac   : > { %1547 = vst.msk [vmem:[#allocation4 + $0xa0] sm:$0xff] %vm1526_vm8, %v1471_v10  ;;  %1675 = vrot.lane.b32.xlu2 %v1585_v12, %s4468_s30  ;;  %v1777_v12 = vld [vmem:[#allocation2 + $0x15a] sm:$0xff]  ;;  %v1978_v10 = vld [vmem:[%s6913_s1 + $0x8] sm:$0xff] }
 0x2ad   : > { %1679 = vrot.lane.b32.xlu1 %v5320_v54, %s4468_s30  ;;  %v1756_v54 = vld [vmem:[#allocation2 + $0x62] sm:$0xff]  ;;  %2101 = vmatpush.msra.mxu0 %v1978_v10 }
 0x2ae   : > { %v1481_v5 = vpop.permute.xlu2 %1480  ;;  %4427 = vmatpush.msra.mxu2 %v1978_v10  ;;  %v1783_v10 = vld [vmem:[#allocation2 + $0x1a2] sm:$0xff] }
 0x2af   : > { %v1467_v14 = vpop.permute.xlu1 %1466  ;;  %1552 = vst.msk [vmem:[#allocation4 + $0xc8] sm:$0xff] %vm1526_vm8, %v1481_v5  ;;  %v1977_v5 = vld [vmem:[%s6913_s1] sm:$0xff] }
 0x2b0   : > { %1545 = vst.msk [vmem:[#allocation4 + $0x90] sm:$0xff] %vm1526_vm8, %v1467_v14  ;;  %2102 = vmatpush.msra.mxu0 %v1977_v5  ;;  %4428 = vmatpush.msra.mxu2 %v1977_v5 }
 0x2b1   : > { %1818 = vrot.lane.b32.xlu0 %v1753_v6, %s4469_s6 }
 0x2b3   : > { %v1477_v36 = vpop.permute.xlu0 %1476 }
 0x2b4   : > { %1550 = vst.msk [vmem:[#allocation4 + $0xb8] sm:$0xff] %vm1526_vm8, %v1477_v36  ;;  %1681 = vrot.lane.b32.xlu2 %v5335_v11, %s4468_s30  ;;  %v1759_v11 = vld [vmem:[#allocation2 + $0x82] sm:$0xff]  ;;  %v1778_v36 = vld [vmem:[#allocation2 + $0x16a] sm:$0xff] }
 0x2b5   : > { %1685 = vrot.lane.b32.xlu1 %v1590_v35, %s4468_s30 }
 0x2b6   : > { %v1487_v58 = vpop.permute.xlu2 %1486 }
 0x2b7   : > { %v1473_v61 = vpop.permute.xlu1 %1472  ;;  %1555 = vst.msk [vmem:[#allocation4 + $0xe0] sm:$0xff] %vm1526_vm8, %v1487_v58 }
 0x2b8   : > { %1548 = vst.msk [vmem:[#allocation4 + $0xa8] sm:$0xff] %vm1526_vm8, %v1473_v61 }
 0x2b9   : > { %1824 = vrot.lane.b32.xlu0 %v1756_v54, %s4469_s6 }
 0x2bb   : > { %v1483_v26 = vpop.permute.xlu0 %1482 }
 0x2bc   : > { %1553 = vst.msk [vmem:[#allocation4 + $0xd0] sm:$0xff] %vm1526_vm8, %v1483_v26  ;;  %1816 = vrot.lane.b32.xlu2 %v1752_v63, %s4469_s6  ;;  %v1776_v63 = vld [vmem:[#allocation2 + $0x152] sm:$0xff] }
 0x2bd   : > { %1820 = vrot.lane.b32.xlu1 %v1754_v13, %s4469_s6 }
 0x2be   : > { %v1493_v18 = vpop.permute.xlu2 %1492 }
 0x2bf   : > { %v1479_v32 = vpop.permute.xlu1 %1478  ;;  %1558 = vst.msk [vmem:[#allocation4 + $0xf8] sm:$0xff] %vm1526_vm8, %v1493_v18 }
 0x2c0   : > { %1551 = vst.msk [vmem:[#allocation4 + $0xc0] sm:$0xff] %vm1526_vm8, %v1479_v32 }
 0x2c1   : > { %1830 = vrot.lane.b32.xlu0 %v1759_v11, %s4469_s6 }
 0x2c3   : > { %v1489_v15 = vpop.permute.xlu0 %1488 }
 0x2c4   : > { %1556 = vst.msk [vmem:[#allocation4 + $0xe8] sm:$0xff] %vm1526_vm8, %v1489_v15  ;;  %1822 = vrot.lane.b32.xlu2 %v1755_v20, %s4469_s6 }
 0x2c5   : > { %1826 = vrot.lane.b32.xlu1 %v1757_v30, %s4469_s6 }
 0x2c6   : > { %v1628_v27 = vpop.permute.xlu2 %1627 }
 0x2c7   : > { %v1485_v24 = vpop.permute.xlu1 %1484  ;;  %1722 = vst.msk [vmem:[#allocation4 + $0x10] sm:$0xff] %vm1719_vm9, %v1628_v27 }
 0x2c8   : > { %1554 = vst.msk [vmem:[#allocation4 + $0xd8] sm:$0xff] %vm1526_vm8, %v1485_v24 }
 0x2c9   : > { %1836 = vrot.lane.b32.xlu0 %v1762_v7, %s4469_s6  ;;  %v1779_v7 = vld [vmem:[#allocation2 + $0x172] sm:$0xff] }
 0x2cb   : > { %v1624_v44 = vpop.permute.xlu0 %1623 }
 0x2cc   : > { %1720 = vst.msk [vmem:[#allocation4] sm:$0xff] %vm1719_vm9, %v1624_v44  ;;  %1828 = vrot.lane.b32.xlu2 %v1758_v38, %s4469_s6 }
 0x2cd   : > { %1832 = vrot.lane.b32.xlu1 %v1760_v31, %s4469_s6 }
 0x2ce   : > { %v1634_v37 = vpop.permute.xlu2 %1633 }
 0x2cf   : > { %v1491_v49 = vpop.permute.xlu1 %1490  ;;  %1725 = vst.msk [vmem:[#allocation4 + $0x28] sm:$0xff] %vm1719_vm9, %v1634_v37 }
 0x2d0   : > { %1557 = vst.msk [vmem:[#allocation4 + $0xf0] sm:$0xff] %vm1526_vm8, %v1491_v49 }
 0x2d1   : > { %1842 = vrot.lane.b32.xlu0 %v1765_v39, %s4469_s6 }
 0x2d3   : > { %v1630_v53 = vpop.permute.xlu0 %1629 }
 0x2d4   : > { %1723 = vst.msk [vmem:[#allocation4 + $0x18] sm:$0xff] %vm1719_vm9, %v1630_v53  ;;  %1834 = vrot.lane.b32.xlu2 %v1761_v45, %s4469_s6 }
 0x2d5   : > { %1838 = vrot.lane.b32.xlu1 %v1763_v43, %s4469_s6 }
 0x2d6   : > { %v1640_v50 = vpop.permute.xlu2 %1639 }
 0x2d7   : > { %v1626_v48 = vpop.permute.xlu1 %1625  ;;  %1728 = vst.msk [vmem:[#allocation4 + $0x40] sm:$0xff] %vm1719_vm9, %v1640_v50 }
 0x2d8   : > { %1721 = vst.msk [vmem:[#allocation4 + $0x8] sm:$0xff] %vm1719_vm9, %v1626_v48 }
 0x2d9   : > { %1848 = vrot.lane.b32.xlu0 %v1768_v17, %s4469_s6 }
 0x2db   : > { %v1636_v29 = vpop.permute.xlu0 %1635 }
 0x2dc   : > { %1726 = vst.msk [vmem:[#allocation4 + $0x30] sm:$0xff] %vm1719_vm9, %v1636_v29  ;;  %1840 = vrot.lane.b32.xlu2 %v1764_v23, %s4469_s6 }
 0x2dd   : > { %1844 = vrot.lane.b32.xlu1 %v1766_v56, %s4469_s6 }
 0x2de   : > { %v1646_v52 = vpop.permute.xlu2 %1645 }
 0x2df   : > { %v1632_v59 = vpop.permute.xlu1 %1631  ;;  %1731 = vst.msk [vmem:[#allocation4 + $0x58] sm:$0xff] %vm1719_vm9, %v1646_v52 }
 0x2e0   : > { %1724 = vst.msk [vmem:[#allocation4 + $0x20] sm:$0xff] %vm1719_vm9, %v1632_v59 }
 0x2e1   : > { %1854 = vrot.lane.b32.xlu0 %v1771_v40, %s4469_s6 }
 0x2e3   : > { %v1642_v0 = vpop.permute.xlu0 %1641 }
 0x2e4   : > { %1729 = vst.msk [vmem:[#allocation4 + $0x48] sm:$0xff] %vm1719_vm9, %v1642_v0  ;;  %1846 = vrot.lane.b32.xlu2 %v1767_v46, %s4469_s6 }
 0x2e5   : > { %1850 = vrot.lane.b32.xlu1 %v1769_v1, %s4469_s6 }
 0x2e6   : > { %v1652_v57 = vpop.permute.xlu2 %1651 }
 0x2e7   : > { %v1638_v34 = vpop.permute.xlu1 %1637  ;;  %1734 = vst.msk [vmem:[#allocation4 + $0x70] sm:$0xff] %vm1719_vm9, %v1652_v57 }
 0x2e8   : > { %1727 = vst.msk [vmem:[#allocation4 + $0x38] sm:$0xff] %vm1719_vm9, %v1638_v34 }
 0x2e9   : > { %1860 = vrot.lane.b32.xlu0 %v1774_v55, %s4469_s6 }
 0x2eb   : > { %v1648_v47 = vpop.permute.xlu0 %1647 }
 0x2ec   : > { %1732 = vst.msk [vmem:[#allocation4 + $0x60] sm:$0xff] %vm1719_vm9, %v1648_v47  ;;  %1852 = vrot.lane.b32.xlu2 %v1770_v22, %s4469_s6 }
 0x2ed   : > { %1856 = vrot.lane.b32.xlu1 %v1772_v62, %s4469_s6 }
 0x2ee   : > { %v1658_v9 = vpop.permute.xlu2 %1657 }
 0x2ef   : > { %v1644_v42 = vpop.permute.xlu1 %1643  ;;  %1737 = vst.msk [vmem:[#allocation4 + $0x88] sm:$0xff] %vm1719_vm9, %v1658_v9 }
 0x2f0   : > { %1730 = vst.msk [vmem:[#allocation4 + $0x50] sm:$0xff] %vm1719_vm9, %v1644_v42 }
 0x2f1   : > { %1866 = vrot.lane.b32.xlu0 %v1777_v12, %s4469_s6 }
 0x2f3   : > { %v1654_v28 = vpop.permute.xlu0 %1653 }
 0x2f4   : > { %1735 = vst.msk [vmem:[#allocation4 + $0x78] sm:$0xff] %vm1719_vm9, %v1654_v28  ;;  %1858 = vrot.lane.b32.xlu2 %v1773_v25, %s4469_s6 }
 0x2f5   : > { %1862 = vrot.lane.b32.xlu1 %v1775_v21, %s4469_s6 }
 0x2f6   : > { %v1664_v60 = vpop.permute.xlu2 %1663 }
 0x2f7   : > { %v1650_v3 = vpop.permute.xlu1 %1649  ;;  %1740 = vst.msk [vmem:[#allocation4 + $0xa0] sm:$0xff] %vm1719_vm9, %v1664_v60 }
 0x2f8   : > { %1733 = vst.msk [vmem:[#allocation4 + $0x68] sm:$0xff] %vm1719_vm9, %v1650_v3 }
 0x2f9   : > { %1872 = vrot.lane.b32.xlu0 %v5437_v33, %s4469_s6 }
 0x2fb   : > { %v1660_v19 = vpop.permute.xlu0 %1659 }
 0x2fc   : > { %1738 = vst.msk [vmem:[#allocation4 + $0x90] sm:$0xff] %vm1719_vm9, %v1660_v19  ;;  %1864 = vrot.lane.b32.xlu2 %v1776_v63, %s4469_s6  ;;  %v5739_v63 = vld [vmem:[%s6914_s2] ss:$0 sm:$0xff] }
 0x2fd   : > { %1868 = vrot.lane.b32.xlu1 %v1778_v36, %s4469_s6  ;;  %v2372_v36 = vld [vmem:[#allocation3 + $0x1] sm:$0xff] }
 0x2fe   : > { %v1670_v41 = vpop.permute.xlu2 %1669 }
 0x2ff   : > { %v1656_v51 = vpop.permute.xlu1 %1655  ;;  %1743 = vst.msk [vmem:[#allocation4 + $0xb8] sm:$0xff] %vm1719_vm9, %v1670_v41 }
 0x300   : > { %1736 = vst.msk [vmem:[#allocation4 + $0x80] sm:$0xff] %vm1719_vm9, %v1656_v51 }
 0x301   : > { %1878 = vrot.lane.b32.xlu0 %v1783_v10, %s4469_s6 }
 0x303   : > { %v1666_v6 = vpop.permute.xlu0 %1665 }
 0x304   : > { %1741 = vst.msk [vmem:[#allocation4 + $0xa8] sm:$0xff] %vm1719_vm9, %v1666_v6  ;;  %1870 = vrot.lane.b32.xlu2 %v1779_v7, %s4469_s6 }
 0x305   : > { %1874 = vrot.lane.b32.xlu1 %v5423_v4, %s4469_s6 }
 0x306   : > { %v1676_v14 = vpop.permute.xlu2 %1675 }
 0x307   : > { %v1662_v35 = vpop.permute.xlu1 %1661  ;;  %1746 = vst.msk [vmem:[#allocation4 + $0xd0] sm:$0xff] %vm1719_vm9, %v1676_v14 }
 0x308   : > { %1739 = vst.msk [vmem:[#allocation4 + $0x98] sm:$0xff] %vm1719_vm9, %v1662_v35  ;;  %v1782_v35 = vld [vmem:[#allocation2 + $0x19a] sm:$0xff] }
 0x30b   : > { %v1672_v54 = vpop.permute.xlu0 %1671 }
 0x30c   : > { %1744 = vst.msk [vmem:[#allocation4 + $0xc0] sm:$0xff] %vm1719_vm9, %v1672_v54  ;;  %1876 = vrot.lane.b32.xlu2 %v1782_v35, %s4469_s6 }
 0x30d   : > { %2436 = vrot.lane.b32.xlu1 %v2372_v36, %s4462_s20 }
 0x30e   : > { %v1682_v58 = vpop.permute.xlu2 %1681 }
 0x30f   : > { %v1668_v61 = vpop.permute.xlu1 %1667  ;;  %1749 = vst.msk [vmem:[#allocation4 + $0xe8] sm:$0xff] %vm1719_vm9, %v1682_v58 }
 0x310   : > { %1742 = vst.msk [vmem:[#allocation4 + $0xb0] sm:$0xff] %vm1719_vm9, %v1668_v61 }
 0x313   : > { %v1678_v13 = vpop.permute.xlu0 %1677 }
 0x314   : > { %1747 = vst.msk [vmem:[#allocation4 + $0xd8] sm:$0xff] %vm1719_vm9, %v1678_v13  ;;  %v2373_v13 = vld [vmem:[#allocation3 + $0x9] sm:$0xff] }
 0x315   : > { %2438 = vrot.lane.b32.xlu2 %v2373_v13, %s4462_s20 }
 0x316   : > { %v1817_v33 = vpop.permute.xlu2 %1816 }
 0x317   : > { %v1674_v26 = vpop.permute.xlu1 %1673  ;;  %1913 = vst.msk [vmem:[#allocation4] sm:$0xff] %vm1912_vm11, %v1817_v33 }
 0x318   : > { %1745 = vst.msk [vmem:[#allocation4 + $0xc8] sm:$0xff] %vm1719_vm9, %v1674_v26 }
 0x31b   : > { %v1684_v11 = vpop.permute.xlu0 %1683 }
 0x31c   : > { %1750 = vst.msk [vmem:[#allocation4 + $0xf0] sm:$0xff] %vm1719_vm9, %v1684_v11 }
 0x31e   : > { %v1945_v18 = vld [vmem:[#allocation4] sm:$0xff]  ;;  %v1823_v32 = vpop.permute.xlu2 %1822 }
 0x31f   : > { %v1680_v20 = vpop.permute.xlu1 %1679  ;;  %4355 = vmatmul.msk.f32.vlgmr.msra.gmra.mxu0 %vm1986_vm12, %v1945_v18  ;;  %1916 = vst.msk [vmem:[#allocation4 + $0x18] sm:$0xff] %vm1912_vm11, %v1823_v32 }
 0x320   : > { %1748 = vst.msk [vmem:[#allocation4 + $0xe0] sm:$0xff] %vm1719_vm9, %v1680_v20 }
 0x323   : > { %v1819_v4 = vpop.permute.xlu0 %1818 }
 0x324   : > { %1914 = vst.msk [vmem:[#allocation4 + $0x8] sm:$0xff] %vm1912_vm11, %v1819_v4 }
 0x326   : > { %v1829_v30 = vpop.permute.xlu2 %1828  ;;  %v1948_v43 = vld [vmem:[#allocation4 + $0x18] sm:$0xff] }
 0x327   : > { %v1686_v15 = vpop.permute.xlu1 %1685  ;;  %1919 = vst.msk [vmem:[#allocation4 + $0x30] sm:$0xff] %vm1912_vm11, %v1829_v30 }
 0x328   : > { %1751 = vst.msk [vmem:[#allocation4 + $0xf8] sm:$0xff] %vm1719_vm9, %v1686_v15 }
 0x32b   : > { %v1825_v27 = vpop.permute.xlu0 %1824  ;;  %v1946_v24 = vld [vmem:[#allocation4 + $0x8] sm:$0xff] }
 0x32c   : > { %1917 = vst.msk [vmem:[#allocation4 + $0x20] sm:$0xff] %vm1912_vm11, %v1825_v27  ;;  %4356 = vmatmul.msk.f32.gmra.mxu0 %vm1986_vm12, %v1946_v24 }
 0x32e   : > { %v1835_v38 = vpop.permute.xlu2 %1834  ;;  %v1951_v57 = vld [vmem:[#allocation4 + $0x30] sm:$0xff] }
 0x32f   : > { %v1821_v31 = vpop.permute.xlu1 %1820  ;;  %1922 = vst.msk [vmem:[#allocation4 + $0x48] sm:$0xff] %vm1912_vm11, %v1835_v38 }
 0x330   : > { %1915 = vst.msk [vmem:[#allocation4 + $0x10] sm:$0xff] %vm1912_vm11, %v1821_v31 }
 0x333   : > { %v1831_v44 = vpop.permute.xlu0 %1830  ;;  %v1949_v56 = vld [vmem:[#allocation4 + $0x20] sm:$0xff] }
 0x334   : > { %1920 = vst.msk [vmem:[#allocation4 + $0x38] sm:$0xff] %vm1912_vm11, %v1831_v44 }
 0x336   : > { %v1841_v39 = vpop.permute.xlu2 %1840  ;;  %v1954_v60 = vld [vmem:[#allocation4 + $0x48] sm:$0xff] }
 0x337   : > { %v1827_v37 = vpop.permute.xlu1 %1826  ;;  %v1947_v49 = vld [vmem:[#allocation4 + $0x10] sm:$0xff]  ;;  %1925 = vst.msk [vmem:[#allocation4 + $0x60] sm:$0xff] %vm1912_vm11, %v1841_v39 }
 0x338   : > { %1918 = vst.msk [vmem:[#allocation4 + $0x28] sm:$0xff] %vm1912_vm11, %v1827_v37  ;;  %4357 = vmatmul.msk.f32.gmra.mxu0 %vm1986_vm12, %v1947_v49 }
 0x33b   : > { %v1837_v45 = vpop.permute.xlu0 %1836  ;;  %v1952_v55 = vld [vmem:[#allocation4 + $0x38] sm:$0xff] }
 0x33c   : > { %1923 = vst.msk [vmem:[#allocation4 + $0x50] sm:$0xff] %vm1912_vm11, %v1837_v45 }
 0x33e   : > { %v1847_v53 = vpop.permute.xlu2 %1846  ;;  %v1957_v12 = vld [vmem:[#allocation4 + $0x60] sm:$0xff] }
 0x33f   : > { %v1833_v17 = vpop.permute.xlu1 %1832  ;;  %1928 = vst.msk [vmem:[#allocation4 + $0x78] sm:$0xff] %vm1912_vm11, %v1847_v53  ;;  %v1950_v40 = vld [vmem:[#allocation4 + $0x28] sm:$0xff] }
 0x340   : > { %1921 = vst.msk [vmem:[#allocation4 + $0x40] sm:$0xff] %vm1912_vm11, %v1833_v17  ;;  %4358 = vmatmul.msk.f32.gmra.mxu0 %vm1986_vm12, %v1948_v43 }
 0x343   : > { %v1843_v50 = vpop.permute.xlu0 %1842  ;;  %v1955_v16 = vld [vmem:[#allocation4 + $0x50] sm:$0xff] }
 0x344   : > { %1926 = vst.msk [vmem:[#allocation4 + $0x68] sm:$0xff] %vm1912_vm11, %v1843_v50 }
 0x346   : > { %v1853_v48 = vpop.permute.xlu2 %1852  ;;  %v1960_v18 = vld [vmem:[#allocation4 + $0x78] sm:$0xff] }
 0x347   : > { %v1839_v23 = vpop.permute.xlu1 %1838  ;;  %1931 = vst.msk [vmem:[#allocation4 + $0x90] sm:$0xff] %vm1912_vm11, %v1853_v48  ;;  %v1953_v9 = vld [vmem:[#allocation4 + $0x40] sm:$0xff] }
 0x348   : > { %1924 = vst.msk [vmem:[#allocation4 + $0x58] sm:$0xff] %vm1912_vm11, %v1839_v23  ;;  %4359 = vmatmul.msk.f32.gmra.mxu0 %vm1986_vm12, %v1949_v56 }
 0x34b   : > { %v1849_v29 = vpop.permute.xlu0 %1848  ;;  %v1958_v14 = vld [vmem:[#allocation4 + $0x68] sm:$0xff] }
 0x34c   : > { %1929 = vst.msk [vmem:[#allocation4 + $0x80] sm:$0xff] %vm1912_vm11, %v1849_v29 }
 0x34e   : > { %v1859_v1 = vpop.permute.xlu2 %1858  ;;  %v1963_v47 = vld [vmem:[#allocation4 + $0x90] sm:$0xff] }
 0x34f   : > { %v1845_v52 = vpop.permute.xlu1 %1844  ;;  %1934 = vst.msk [vmem:[#allocation4 + $0xa8] sm:$0xff] %vm1912_vm11, %v1859_v1  ;;  %v1956_v51 = vld [vmem:[#allocation4 + $0x58] sm:$0xff] }
 0x350   : > { %1927 = vst.msk [vmem:[#allocation4 + $0x70] sm:$0xff] %vm1912_vm11, %v1845_v52  ;;  %4360 = vmatmul.msk.f32.gmra.mxu0 %vm1986_vm12, %v1950_v40 }
 0x353   : > { %v1961_v59 = vld [vmem:[#allocation4 + $0x80] sm:$0xff]  ;;  %v1855_v46 = vpop.permute.xlu0 %1854 }
 0x354   : > { %4371 = vmatmul.msk.f32.vlgmr.msra.gmra.mxu2 %vm1986_vm12, %v1961_v59  ;;  %1932 = vst.msk [vmem:[#allocation4 + $0x98] sm:$0xff] %vm1912_vm11, %v1855_v46 }
 0x356   : > { %v1865_v21 = vpop.permute.xlu2 %1864  ;;  %v1966_v41 = vld [vmem:[#allocation4 + $0xa8] sm:$0xff] }
 0x357   : > { %v1851_v0 = vpop.permute.xlu1 %1850  ;;  %1937 = vst.msk [vmem:[#allocation4 + $0xc0] sm:$0xff] %vm1912_vm11, %v1865_v21  ;;  %v1959_v58 = vld [vmem:[#allocation4 + $0x70] sm:$0xff] }
 0x358   : > { %1930 = vst.msk [vmem:[#allocation4 + $0x88] sm:$0xff] %vm1912_vm11, %v1851_v0  ;;  %4361 = vmatmul.msk.f32.gmra.mxu0 %vm1986_vm12, %v1951_v57 }
 0x35b   : > { %v1861_v34 = vpop.permute.xlu0 %1860  ;;  %v1964_v28 = vld [vmem:[#allocation4 + $0x98] sm:$0xff] }
 0x35c   : > { %1935 = vst.msk [vmem:[#allocation4 + $0xb0] sm:$0xff] %vm1912_vm11, %v1861_v34 }
 0x35e   : > { %v1871_v8 = vpop.permute.xlu2 %1870  ;;  %v1969_v54 = vld [vmem:[#allocation4 + $0xc0] sm:$0xff] }
 0x35f   : > { %v1962_v22 = vld [vmem:[#allocation4 + $0x88] sm:$0xff]  ;;  %v1857_v62 = vpop.permute.xlu1 %1856  ;;  %1940 = vst.msk [vmem:[#allocation4 + $0xd8] sm:$0xff] %vm1912_vm11, %v1871_v8 }
 0x360   : > { %4362 = vmatmul.msk.f32.gmra.mxu0 %vm1986_vm12, %v1952_v55  ;;  %4372 = vmatmul.msk.f32.gmra.mxu2 %vm1986_vm12, %v1962_v22  ;;  %1933 = vst.msk [vmem:[#allocation4 + $0xa0] sm:$0xff] %vm1912_vm11, %v1857_v62 }
 0x363   : > { %v1867_v3 = vpop.permute.xlu0 %1866  ;;  %v1967_v2 = vld [vmem:[#allocation4 + $0xb0] sm:$0xff] }
 0x364   : > { %1938 = vst.msk [vmem:[#allocation4 + $0xc8] sm:$0xff] %vm1912_vm11, %v1867_v3 }
 0x366   : > { %v1972_v24 = vld [vmem:[#allocation4 + $0xd8] sm:$0xff]  ;;  %v1877_v36 = vpop.permute.xlu2 %1876 }
 0x367   : > { %v1863_v42 = vpop.permute.xlu1 %1862  ;;  %v1965_v25 = vld [vmem:[#allocation4 + $0xa0] sm:$0xff]  ;;  %1943 = vst.msk [vmem:[#allocation4 + $0xf0] sm:$0xff] %vm1912_vm11, %v1877_v36 }
 0x368   : > { %4363 = vmatmul.msk.f32.gmra.mxu0 %vm1986_vm12, %v1953_v9  ;;  %4373 = vmatmul.msk.f32.gmra.mxu2 %vm1986_vm12, %v1963_v47  ;;  %1936 = vst.msk [vmem:[#allocation4 + $0xb8] sm:$0xff] %vm1912_vm11, %v1863_v42 }
 0x36b   : > { %v1873_v5 = vpop.permute.xlu0 %1872  ;;  %v1970_v26 = vld [vmem:[#allocation4 + $0xc8] sm:$0xff] }
 0x36c   : > { %1941 = vst.msk [vmem:[#allocation4 + $0xe0] sm:$0xff] %vm1912_vm11, %v1873_v5 }
 0x36f   : > { %v1869_v19 = vpop.permute.xlu1 %1868  ;;  %v1968_v6 = vld [vmem:[#allocation4 + $0xb8] sm:$0xff] }
 0x370   : > { %4364 = vmatmul.msk.f32.gmra.mxu0 %vm1986_vm12, %v1954_v60  ;;  %4374 = vmatmul.msk.f32.gmra.mxu2 %vm1986_vm12, %v1964_v28  ;;  %1939 = vst.msk [vmem:[#allocation4 + $0xd0] sm:$0xff] %vm1912_vm11, %v1869_v19 }
 0x373   : > { %v1973_v31 = vld [vmem:[#allocation4 + $0xe0] sm:$0xff] }
 0x377   : > { %v1875_v61 = vpop.permute.xlu1 %1874  ;;  %v1971_v20 = vld [vmem:[#allocation4 + $0xd0] sm:$0xff] }
 0x378   : > { %4365 = vmatmul.msk.f32.gmra.mxu0 %vm1986_vm12, %v1955_v16  ;;  %4375 = vmatmul.msk.f32.gmra.mxu2 %vm1986_vm12, %v1965_v25  ;;  %1942 = vst.msk [vmem:[#allocation4 + $0xe8] sm:$0xff] %vm1912_vm11, %v1875_v61 }
 0x37f   : > { %v1974_v43 = vld [vmem:[#allocation4 + $0xe8] sm:$0xff] }
 0x380   : > { %4366 = vmatmul.msk.f32.gmra.mxu0 %vm1986_vm12, %v1956_v51  ;;  %4376 = vmatmul.msk.f32.gmra.mxu2 %vm1986_vm12, %v1966_v41 }
 0x388   : > { %4367 = vmatmul.msk.f32.gmra.mxu0 %vm1986_vm12, %v1957_v12  ;;  %4377 = vmatmul.msk.f32.gmra.mxu2 %vm1986_vm12, %v1967_v2 }
 0x390   : > { %4368 = vmatmul.msk.f32.gmra.mxu0 %vm1986_vm12, %v1958_v14  ;;  %4378 = vmatmul.msk.f32.gmra.mxu2 %vm1986_vm12, %v1968_v6 }
 0x398   : > { %4369 = vmatmul.msk.f32.gmra.mxu0 %vm1986_vm12, %v1959_v58  ;;  %4379 = vmatmul.msk.f32.gmra.mxu2 %vm1986_vm12, %v1969_v54 }
 0x39c   : > { %v2104_v33 = vpop.f32.mrf.mxu0 }
 0x39d   : > { %v2105_v11 = vadd.f32 %v5739_v63, %v2104_v33 }
 0x39f   : > { %v2200_v32 = vmax.f32 %v2105_v11, 0.0 }
 0x3a0   : > { %4370 = vmatmul.msk.f32.gmra.mxu0 %vm1986_vm12, %v1960_v18  ;;  %4380 = vmatmul.msk.f32.gmra.mxu2 %vm1986_vm12, %v1970_v26 }
 0x3a1   : > { %2276 = vst.msk [vmem:[#allocation3 + $0x19] sm:$0xff] %vm225_vm0, %v2200_v32 }
 0x3a8   : > { %4381 = vmatmul.msk.f32.gmra.mxu2 %vm1986_vm12, %v1971_v20  ;;  %v5747_v4 = vld [vmem:[#allocation3 + $0x19] sm:$0xff] }
 0x3a9   : > { %v5749_v30 = vld [vmem:[#allocation3 + $0x18] sm:$0xff]  ;;  %v2107_v15 = vpop.f32.mrf.mxu0  ;;  %2440 = vrot.lane.b32.xlu0 %v5747_v4, %s4462_s20 }
 0x3aa   : > { %2342 = vst.msk [vmem:[#allocation4 + $0x10] sm:$0xff] %vm225_vm0, %v5749_v30  ;;  %v2108_v7 = vadd.f32 %v5739_v63, %v2107_v15 }
 0x3ac   : > { %v2201_v27 = vmax.f32 %v2108_v7, 0.0 }
 0x3ae   : > { %2277 = vst.msk [vmem:[#allocation3 + $0x21] sm:$0xff] %vm225_vm0, %v2201_v27 }
 0x3b0   : > { %4382 = vmatmul.msk.f32.gmra.mxu2 %vm1986_vm12, %v1972_v24  ;;  %v2309_v24 = vld [vmem:[#allocation3 + $0x8] sm:$0xff] }
 0x3b1   : > { %2341 = vst.msk [vmem:[#allocation4 + $0x8] sm:$0xff] %vm225_vm0, %v2309_v24 }
 0x3b5   : > { %v2110_v38 = vpop.f32.mrf.mxu0  ;;  %v5758_v44 = vld [vmem:[#allocation3 + $0x21] sm:$0xff] }
 0x3b6   : > { %v5760_v39 = vld [vmem:[#allocation3 + $0x20] sm:$0xff]  ;;  %v2111_v37 = vadd.f32 %v5739_v63, %v2110_v38  ;;  %2442 = vrot.lane.b32.xlu1 %v5758_v44, %s4462_s20 }
 0x3b7   : > { %2343 = vst.msk [vmem:[#allocation4 + $0x18] sm:$0xff] %vm225_vm0, %v5760_v39 }
 0x3b8   : > { %v2202_v49 = vmax.f32 %v2111_v37, 0.0  ;;  %4383 = vmatmul.msk.f32.gmra.mxu2 %vm1986_vm12, %v1973_v31  ;;  %v2439_v37 = vpop.permute.xlu2 %2438 }
 0x3b9   : > { %2533 = vst.msk [vmem:[#allocation4 + $0x8] sm:$0xff] %vm560_vm3, %v2439_v37 }
 0x3ba   : > { %2278 = vst.msk [vmem:[#allocation3 + $0x31] sm:$0xff] %vm225_vm0, %v2202_v49 }
 0x3bd   : > { %v2113_v45 = vpop.f32.mrf.mxu0 }
 0x3be   : > { %v2114_v53 = vadd.f32 %v5739_v63, %v2113_v45 }
 0x3c0   : > { %v2203_v17 = vmax.f32 %v2114_v53, 0.0  ;;  %4384 = vmatmul.msk.f32.gmra.mxu2 %vm1986_vm12, %v1974_v43  ;;  %v1879_v53 = vpop.permute.xlu0 %1878 }
 0x3c1   : > { %v5771_v50 = vld [vmem:[#allocation3 + $0x31] sm:$0xff]  ;;  %1944 = vst.msk [vmem:[#allocation4 + $0xf8] sm:$0xff] %vm1912_vm11, %v1879_v53 }
 0x3c2   : > { %v5773_v48 = vld [vmem:[#allocation3 + $0x30] sm:$0xff]  ;;  %2279 = vst.msk [vmem:[#allocation3 + $0x39] sm:$0xff] %vm225_vm0, %v2203_v17  ;;  %2444 = vrot.lane.b32.xlu2 %v5771_v50, %s4462_s20 }
 0x3c3   : > { %2344 = vst.msk [vmem:[#allocation4 + $0x20] sm:$0xff] %vm225_vm0, %v5773_v48 }
 0x3c5   : > { %v2116_v23 = vpop.f32.mrf.mxu0 }
 0x3c6   : > { %v2117_v56 = vadd.f32 %v5739_v63, %v2116_v23 }
 0x3c8   : > { %v2204_v29 = vmax.f32 %v2117_v56, 0.0 }
 0x3c9   : > { %v5781_v52 = vld [vmem:[#allocation3 + $0x39] sm:$0xff] }
 0x3ca   : > { %v5783_v40 = vld [vmem:[#allocation3 + $0x38] sm:$0xff]  ;;  %2280 = vst.msk [vmem:[#allocation3 + $0x49] sm:$0xff] %vm225_vm0, %v2204_v29  ;;  %2446 = vrot.lane.b32.xlu0 %v5781_v52, %s4462_s20 }
 0x3cb   : > { %2345 = vst.msk [vmem:[#allocation4 + $0x28] sm:$0xff] %vm225_vm0, %v5783_v40 }
 0x3cd   : > { %v2119_v59 = vpop.f32.mrf.mxu0 }
 0x3ce   : > { %v2120_v46 = vadd.f32 %v5739_v63, %v2119_v59 }
 0x3d0   : > { %v2205_v1 = vmax.f32 %v2120_v46, 0.0 }
 0x3d1   : > { %v5791_v0 = vld [vmem:[#allocation3 + $0x49] sm:$0xff] }
 0x3d2   : > { %v5793_v57 = vld [vmem:[#allocation3 + $0x48] sm:$0xff]  ;;  %2281 = vst.msk [vmem:[#allocation3 + $0x51] sm:$0xff] %vm225_vm0, %v2205_v1  ;;  %2448 = vrot.lane.b32.xlu1 %v5791_v0, %s4462_s20 }
 0x3d3   : > { %2346 = vst.msk [vmem:[#allocation4 + $0x30] sm:$0xff] %vm225_vm0, %v5793_v57 }
 0x3d5   : > { %v2122_v34 = vpop.f32.mrf.mxu0 }
 0x3d6   : > { %v2123_v55 = vadd.f32 %v5739_v63, %v2122_v34 }
 0x3d7   : > { %v2152_v22 = vpop.f32.mrf.mxu2 }
 0x3d8   : > { %v2206_v62 = vmax.f32 %v2123_v55, 0.0  ;;  %v2153_v47 = vadd.f32 %v5739_v63, %v2152_v22 }
 0x3d9   : > { %v5802_v9 = vld [vmem:[#allocation3 + $0x51] sm:$0xff] }
 0x3da   : > { %v5804_v42 = vld [vmem:[#allocation3 + $0x50] sm:$0xff]  ;;  %2282 = vst.msk [vmem:[#allocation3 + $0x61] sm:$0xff] %vm225_vm0, %v2206_v62  ;;  %2450 = vrot.lane.b32.xlu2 %v5802_v9, %s4462_s20  ;;  %v2216_v21 = vmax.f32 %v2153_v47, 0.0 }
 0x3db   : > { %2347 = vst.msk [vmem:[#allocation4 + $0x38] sm:$0xff] %vm225_vm0, %v5804_v42 }
 0x3dc   : > { %2292 = vst.msk [vmem:[#allocation3 + $0xd9] sm:$0xff] %vm225_vm0, %v2216_v21 }
 0x3dd   : > { %v2125_v28 = vpop.f32.mrf.mxu0 }
 0x3de   : > { %v2126_v60 = vadd.f32 %v5739_v63, %v2125_v28  ;;  %v2308_v28 = vld [vmem:[#allocation3] sm:$0xff] }
 0x3df   : > { %2340 = vst.msk [vmem:[#allocation4] sm:$0xff] %vm225_vm0, %v2308_v28 }
 0x3e0   : > { %v2207_v3 = vmax.f32 %v2126_v60, 0.0 }
 0x3e1   : > { %v5813_v25 = vld [vmem:[#allocation3 + $0x61] sm:$0xff] }
 0x3e2   : > { %v5815_v16 = vld [vmem:[#allocation3 + $0x60] sm:$0xff]  ;;  %2283 = vst.msk [vmem:[#allocation3 + $0x69] sm:$0xff] %vm225_vm0, %v2207_v3  ;;  %2452 = vrot.lane.b32.xlu0 %v5813_v25, %s4462_s20 }
 0x3e3   : > { %v2155_v19 = vpop.f32.mrf.mxu2  ;;  %2348 = vst.msk [vmem:[#allocation4 + $0x40] sm:$0xff] %vm225_vm0, %v5815_v16  ;;  %v5822_v41 = vld [vmem:[#allocation3 + $0xd8] sm:$0xff] }
 0x3e4   : > { %v2156_v51 = vadd.f32 %v5739_v63, %v2155_v19  ;;  %2358 = vst.msk [vmem:[#allocation4 + $0x90] sm:$0xff] %vm225_vm0, %v5822_v41  ;;  %v2437_v19 = vpop.permute.xlu1 %2436 }
 0x3e5   : > { %v2128_v8 = vpop.f32.mrf.mxu0  ;;  %2532 = vst.msk [vmem:[#allocation4] sm:$0xff] %vm560_vm3, %v2437_v19 }
 0x3e6   : > { %v2217_v2 = vmax.f32 %v2156_v51, 0.0  ;;  %v2129_v12 = vadd.f32 %v5739_v63, %v2128_v8 }
 0x3e8   : > { %2293 = vst.msk [vmem:[#allocation3 + $0xe1] sm:$0xff] %vm225_vm0, %v2217_v2  ;;  %v2208_v10 = vmax.f32 %v2129_v12, 0.0 }
 0x3e9   : > { %v5829_v6 = vld [vmem:[#allocation3 + $0x69] sm:$0xff] }
 0x3ea   : > { %v5831_v5 = vld [vmem:[#allocation3 + $0x68] sm:$0xff]  ;;  %2284 = vst.msk [vmem:[#allocation3 + $0x79] sm:$0xff] %vm225_vm0, %v2208_v10  ;;  %2454 = vrot.lane.b32.xlu1 %v5829_v6, %s4462_s20 }
 0x3eb   : > { %v2158_v14 = vpop.f32.mrf.mxu2  ;;  %2349 = vst.msk [vmem:[#allocation4 + $0x48] sm:$0xff] %vm225_vm0, %v5831_v5 }
 0x3ec   : > { %v2159_v35 = vadd.f32 %v5739_v63, %v2158_v14 }
 0x3ed   : > { %v2131_v54 = vpop.f32.mrf.mxu0 }
 0x3ee   : > { %v2218_v58 = vmax.f32 %v2159_v35, 0.0  ;;  %v2132_v61 = vadd.f32 %v5739_v63, %v2131_v54 }
 0x3ef   : > { %v5842_v33 = vld [vmem:[#allocation3 + $0xe0] sm:$0xff] }
 0x3f0   : > { %2294 = vst.msk [vmem:[#allocation3 + $0xf1] sm:$0xff] %vm225_vm0, %v2218_v58  ;;  %v2209_v13 = vmax.f32 %v2132_v61, 0.0 }
 0x3f1   : > { %v5844_v26 = vld [vmem:[#allocation3 + $0x79] sm:$0xff]  ;;  %2359 = vst.msk [vmem:[#allocation4 + $0x98] sm:$0xff] %vm225_vm0, %v5842_v33 }
 0x3f2   : > { %v5846_v11 = vld [vmem:[#allocation3 + $0x78] sm:$0xff]  ;;  %2285 = vst.msk [vmem:[#allocation3 + $0x81] sm:$0xff] %vm225_vm0, %v2209_v13  ;;  %2456 = vrot.lane.b32.xlu2 %v5844_v26, %s4462_s20 }
 0x3f3   : > { %v2161_v18 = vpop.f32.mrf.mxu2  ;;  %2350 = vst.msk [vmem:[#allocation4 + $0x50] sm:$0xff] %vm225_vm0, %v5846_v11 }
 0x3f4   : > { %v2162_v32 = vadd.f32 %v5739_v63, %v2161_v18 }
 0x3f5   : > { %v2134_v20 = vpop.f32.mrf.mxu0 }
 0x3f6   : > { %v2219_v15 = vmax.f32 %v2162_v32, 0.0  ;;  %v2135_v7 = vadd.f32 %v5739_v63, %v2134_v20 }
 0x3f7   : > { %v5867_v45 = vld [vmem:[#allocation3 + $0xf0] sm:$0xff] }
 0x3f8   : > { %2295 = vst.msk [vmem:[#allocation3 + $0xf9] sm:$0xff] %vm225_vm0, %v2219_v15  ;;  %v2210_v27 = vmax.f32 %v2135_v7, 0.0 }
 0x3f9   : > { %v5858_v38 = vld [vmem:[#allocation3 + $0x81] sm:$0xff]  ;;  %2360 = vst.msk [vmem:[#allocation4 + $0xa0] sm:$0xff] %vm225_vm0, %v5867_v45 }
 0x3fa   : > { %v5861_v31 = vld [vmem:[#allocation3 + $0x80] sm:$0xff]  ;;  %2286 = vst.msk [vmem:[#allocation3 + $0x91] sm:$0xff] %vm225_vm0, %v2210_v27  ;;  %2458 = vrot.lane.b32.xlu0 %v5858_v38, %s4462_s20 }
 0x3fb   : > { %v2164_v49 = vpop.f32.mrf.mxu2  ;;  %2351 = vst.msk [vmem:[#allocation4 + $0x58] sm:$0xff] %vm225_vm0, %v5861_v31 }
 0x3fc   : > { %v2165_v43 = vadd.f32 %v5739_v63, %v2164_v49 }
 0x3fd   : > { %v2137_v17 = vpop.f32.mrf.mxu0 }
 0x3fe   : > { %v2220_v23 = vmax.f32 %v2165_v43, 0.0  ;;  %v2138_v56 = vadd.f32 %v5739_v63, %v2137_v17 }
 0x3ff   : > { %v5877_v59 = vld [vmem:[#allocation3 + $0xf8] sm:$0xff] }
 0x400   : > { %2296 = vst.msk [vmem:[#allocation3 + $0x109] sm:$0xff] %vm225_vm0, %v2220_v23  ;;  %v2211_v29 = vmax.f32 %v2138_v56, 0.0 }
 0x401   : > { %v5879_v46 = vld [vmem:[#allocation3 + $0x91] sm:$0xff]  ;;  %2361 = vst.msk [vmem:[#allocation4 + $0xa8] sm:$0xff] %vm225_vm0, %v5877_v59 }
 0x402   : > { %v5881_v1 = vld [vmem:[#allocation3 + $0x90] sm:$0xff]  ;;  %2287 = vst.msk [vmem:[#allocation3 + $0x99] sm:$0xff] %vm225_vm0, %v2211_v29  ;;  %2460 = vrot.lane.b32.xlu1 %v5879_v46, %s4462_s20 }
 0x403   : > { %v2167_v34 = vpop.f32.mrf.mxu2  ;;  %2352 = vst.msk [vmem:[#allocation4 + $0x60] sm:$0xff] %vm225_vm0, %v5881_v1 }
 0x404   : > { %v2168_v55 = vadd.f32 %v5739_v63, %v2167_v34 }
 0x405   : > { %v2140_v22 = vpop.f32.mrf.mxu0 }
 0x406   : > { %v2221_v62 = vmax.f32 %v2168_v55, 0.0  ;;  %v2141_v47 = vadd.f32 %v5739_v63, %v2140_v22  ;;  %v5947_v55 = vld [vmem:[#allocation3 + $0xd9] sm:$0xff] }
 0x407   : > { %v5901_v51 = vld [vmem:[#allocation3 + $0x108] sm:$0xff] }
 0x408   : > { %2297 = vst.msk [vmem:[#allocation3 + $0x111] sm:$0xff] %vm225_vm0, %v2221_v62  ;;  %v2212_v21 = vmax.f32 %v2141_v47, 0.0 }
 0x409   : > { %v5893_v60 = vld [vmem:[#allocation3 + $0x99] sm:$0xff]  ;;  %2362 = vst.msk [vmem:[#allocation4 + $0xb0] sm:$0xff] %vm225_vm0, %v5901_v51 }
 0x40a   : > { %v5896_v3 = vld [vmem:[#allocation3 + $0x98] sm:$0xff]  ;;  %2288 = vst.msk [vmem:[#allocation3 + $0xa9] sm:$0xff] %vm225_vm0, %v2212_v21  ;;  %2462 = vrot.lane.b32.xlu2 %v5893_v60, %s4462_s20 }
 0x40b   : > { %v2170_v8 = vpop.f32.mrf.mxu2  ;;  %2353 = vst.msk [vmem:[#allocation4 + $0x68] sm:$0xff] %vm225_vm0, %v5896_v3 }
 0x40c   : > { %v2171_v2 = vadd.f32 %v5739_v63, %v2170_v8 }
 0x40d   : > { %v2143_v12 = vpop.f32.mrf.mxu0 }
 0x40e   : > { %v2222_v10 = vmax.f32 %v2171_v2, 0.0  ;;  %v2144_v14 = vadd.f32 %v5739_v63, %v2143_v12  ;;  %v5966_v2 = vld [vmem:[#allocation3 + $0xf9] sm:$0xff] }
 0x40f   : > { %v5911_v36 = vld [vmem:[#allocation3 + $0x110] sm:$0xff] }
 0x410   : > { %2298 = vst.msk [vmem:[#allocation3 + $0x121] sm:$0xff] %vm225_vm0, %v2222_v10  ;;  %v2213_v35 = vmax.f32 %v2144_v14, 0.0  ;;  %v5975_v10 = vld [vmem:[#allocation3 + $0xe1] sm:$0xff] }
 0x411   : > { %v5913_v54 = vld [vmem:[#allocation3 + $0xa9] sm:$0xff]  ;;  %2363 = vst.msk [vmem:[#allocation4 + $0xb8] sm:$0xff] %vm225_vm0, %v5911_v36 }
 0x412   : > { %v5915_v58 = vld [vmem:[#allocation3 + $0xa8] sm:$0xff]  ;;  %2289 = vst.msk [vmem:[#allocation3 + $0xb1] sm:$0xff] %vm225_vm0, %v2213_v35  ;;  %2464 = vrot.lane.b32.xlu0 %v5913_v54, %s4462_s20 }
 0x413   : > { %v2173_v61 = vpop.f32.mrf.mxu2  ;;  %2354 = vst.msk [vmem:[#allocation4 + $0x70] sm:$0xff] %vm225_vm0, %v5915_v58 }
 0x414   : > { %v2174_v13 = vadd.f32 %v5739_v63, %v2173_v61  ;;  %v1975_v61 = vld [vmem:[#allocation4 + $0xf0] sm:$0xff] }
 0x415   : > { %v2146_v18 = vpop.f32.mrf.mxu0  ;;  %4385 = vmatmul.msk.f32.gmra.mxu2 %vm1986_vm12, %v1975_v61 }
 0x416   : > { %v2223_v32 = vmax.f32 %v2174_v13, 0.0  ;;  %v2147_v20 = vadd.f32 %v5739_v63, %v2146_v18 }
 0x417   : > { %v5926_v15 = vld [vmem:[#allocation3 + $0x120] sm:$0xff] }
 0x418   : > { %2299 = vst.msk [vmem:[#allocation3 + $0x129] sm:$0xff] %vm225_vm0, %v2223_v32  ;;  %v2214_v7 = vmax.f32 %v2147_v20, 0.0  ;;  %v5990_v20 = vld [vmem:[#allocation3 + $0x121] sm:$0xff] }
 0x419   : > { %v5929_v27 = vld [vmem:[#allocation3 + $0xb1] sm:$0xff]  ;;  %2364 = vst.msk [vmem:[#allocation4 + $0xc0] sm:$0xff] %vm225_vm0, %v5926_v15 }
 0x41a   : > { %2290 = vst.msk [vmem:[#allocation3 + $0xc1] sm:$0xff] %vm225_vm0, %v2214_v7  ;;  %2466 = vrot.lane.b32.xlu1 %v5929_v27, %s4462_s20  ;;  %v5936_v24 = vld [vmem:[#allocation3 + $0xb0] sm:$0xff] }
 0x41b   : > { %v2176_v37 = vpop.f32.mrf.mxu2  ;;  %v2441_v49 = vpop.permute.xlu0 %2440  ;;  %2355 = vst.msk [vmem:[#allocation4 + $0x78] sm:$0xff] %vm225_vm0, %v5936_v24  ;;  %v5992_v7 = vld [vmem:[#allocation3 + $0xf1] sm:$0xff] }
 0x41c   : > { %v2177_v43 = vadd.f32 %v5739_v63, %v2176_v37  ;;  %v2445_v53 = vpop.permute.xlu2 %2444  ;;  %2534 = vst.msk [vmem:[#allocation4 + $0x10] sm:$0xff] %vm560_vm3, %v2441_v49  ;;  %v6000_v37 = vld [vmem:[#allocation3 + $0x109] sm:$0xff] }
 0x41d   : > { %2536 = vst.msk [vmem:[#allocation4 + $0x20] sm:$0xff] %vm560_vm3, %v2445_v53  ;;  %v2149_v17 = vpop.f32.mrf.mxu0 }
 0x41e   : > { %v2224_v23 = vmax.f32 %v2177_v43, 0.0  ;;  %v2150_v56 = vadd.f32 %v5739_v63, %v2149_v17  ;;  %v1976_v43 = vld [vmem:[#allocation4 + $0xf8] sm:$0xff] }
 0x41f   : > { %v5945_v34 = vld [vmem:[#allocation3 + $0x128] sm:$0xff]  ;;  %4386 = vmatmul.msk.f32.gmra.mxu2 %vm1986_vm12, %v1976_v43 }
 0x420   : > { %2300 = vst.msk [vmem:[#allocation3 + $0x139] sm:$0xff] %vm225_vm0, %v2224_v23  ;;  %v2215_v29 = vmax.f32 %v2150_v56, 0.0 }
 0x421   : > { %v5949_v22 = vld [vmem:[#allocation3 + $0xc1] sm:$0xff]  ;;  %2365 = vst.msk [vmem:[#allocation4 + $0xc8] sm:$0xff] %vm225_vm0, %v5945_v34 }
 0x422   : > { %v5951_v62 = vld [vmem:[#allocation3 + $0xc0] sm:$0xff]  ;;  %2291 = vst.msk [vmem:[#allocation3 + $0xc9] sm:$0xff] %vm225_vm0, %v2215_v29  ;;  %2472 = vrot.lane.b32.xlu1 %v5947_v55, %s4462_s20  ;;  %2468 = vrot.lane.b32.xlu2 %v5949_v22, %s4462_s20 }
 0x423   : > { %v2179_v47 = vpop.f32.mrf.mxu2  ;;  %2356 = vst.msk [vmem:[#allocation4 + $0x80] sm:$0xff] %vm225_vm0, %v5951_v62 }
 0x424   : > { %v2180_v21 = vadd.f32 %v5739_v63, %v2179_v47  ;;  %v6012_v47 = vld [vmem:[#allocation3 + $0x111] sm:$0xff] }
 0x426   : > { %v2225_v28 = vmax.f32 %v2180_v21, 0.0  ;;  %v6020_v21 = vld [vmem:[#allocation3 + $0x129] sm:$0xff] }
 0x427   : > { %v5963_v19 = vld [vmem:[#allocation3 + $0x138] sm:$0xff] }
 0x428   : > { %2301 = vst.msk [vmem:[#allocation3 + $0x141] sm:$0xff] %vm225_vm0, %v2225_v28  ;;  %v2443_v8 = vpop.permute.xlu1 %2442 }
 0x429   : > { %v5968_v12 = vld [vmem:[#allocation3 + $0xc9] sm:$0xff]  ;;  %2535 = vst.msk [vmem:[#allocation4 + $0x18] sm:$0xff] %vm560_vm3, %v2443_v8 }
 0x42a   : > { %2478 = vrot.lane.b32.xlu1 %v5966_v2, %s4462_s20  ;;  %2470 = vrot.lane.b32.xlu0 %v5968_v12, %s4462_s20  ;;  %v5977_v14 = vld [vmem:[#allocation3 + $0xc8] sm:$0xff]  ;;  %2366 = vst.msk [vmem:[#allocation4 + $0xd0] sm:$0xff] %vm225_vm0, %v5963_v19 }
 0x42b   : > { %2474 = vrot.lane.b32.xlu2 %v5975_v10, %s4462_s20  ;;  %v2182_v35 = vpop.f32.mrf.mxu2  ;;  %2357 = vst.msk [vmem:[#allocation4 + $0x88] sm:$0xff] %vm225_vm0, %v5977_v14 }
 0x42c   : > { %v2183_v13 = vadd.f32 %v5739_v63, %v2182_v35 }
 0x42e   : > { %v2226_v18 = vmax.f32 %v2183_v13, 0.0 }
 0x42f   : > { %v5988_v32 = vld [vmem:[#allocation3 + $0x140] sm:$0xff] }
 0x430   : > { %2302 = vst.msk [vmem:[#allocation3 + $0x151] sm:$0xff] %vm225_vm0, %v2226_v18  ;;  %v6010_v29 = vld [vmem:[#allocation3 + $0x141] sm:$0xff]  ;;  %v6029_v18 = vld [vmem:[#allocation3 + $0x139] sm:$0xff] }
 0x431   : > { %2367 = vst.msk [vmem:[#allocation4 + $0xd8] sm:$0xff] %vm225_vm0, %v5988_v32 }
 0x432   : > { %2484 = vrot.lane.b32.xlu1 %v5990_v20, %s4462_s20  ;;  %2476 = vrot.lane.b32.xlu0 %v5992_v7, %s4462_s20  ;;  %7046 = vst [vmem:[#allocation5_spill] sm:$0xff] %v6010_v29 }
 0x433   : > { %2480 = vrot.lane.b32.xlu2 %v6000_v37, %s4462_s20  ;;  %v2185_v49 = vpop.f32.mrf.mxu2 }
 0x434   : > { %v2186_v53 = vadd.f32 %v5739_v63, %v2185_v49  ;;  %v2451_v17 = vpop.permute.xlu2 %2450 }
 0x435   : > { %2539 = vst.msk [vmem:[#allocation4 + $0x38] sm:$0xff] %vm560_vm3, %v2451_v17 }
 0x436   : > { %v2227_v23 = vmax.f32 %v2186_v53, 0.0 }
 0x437   : > { %v6007_v56 = vld [vmem:[#allocation3 + $0x150] sm:$0xff] }
 0x438   : > { %2303 = vst.msk [vmem:[#allocation3 + $0x159] sm:$0xff] %vm225_vm0, %v2227_v23  ;;  %v6035_v49 = vld [vmem:[#allocation3 + $0x151] sm:$0xff] }
 0x439   : > { %2368 = vst.msk [vmem:[#allocation4 + $0xe0] sm:$0xff] %vm225_vm0, %v6007_v56 }
 0x43a   : > { %2490 = vrot.lane.b32.xlu1 %v6010_v29, %s4462_s20  ;;  %2482 = vrot.lane.b32.xlu0 %v6012_v47, %s4462_s20  ;;  %7047 = vst [vmem:[#allocation10_spill] sm:$0xff] %v6035_v49  ;;  %v6147_v29 = vld [vmem:[#allocation3 + $0xf2] sm:$0xff] }
 0x43b   : > { %2486 = vrot.lane.b32.xlu2 %v6020_v21, %s4462_s20  ;;  %v2188_v28 = vpop.f32.mrf.mxu2  ;;  %7070 = vst [vmem:[#allocation34_spill] sm:$0xff] %v6147_v29 }
 0x43c   : > { %v2189_v8 = vadd.f32 %v5739_v63, %v2188_v28  ;;  %v2447_v35 = vpop.permute.xlu0 %2446 }
 0x43d   : > { %2537 = vst.msk [vmem:[#allocation4 + $0x28] sm:$0xff] %vm560_vm3, %v2447_v35 }
 0x43e   : > { %v2228_v61 = vmax.f32 %v2189_v8, 0.0 }
 0x43f   : > { %v6027_v13 = vld [vmem:[#allocation3 + $0x158] sm:$0xff] }
 0x440   : > { %2304 = vst.msk [vmem:[#allocation3 + $0x169] sm:$0xff] %vm225_vm0, %v2228_v61  ;;  %v6048_v35 = vld [vmem:[#allocation3 + $0x159] sm:$0xff] }
 0x441   : > { %2369 = vst.msk [vmem:[#allocation4 + $0xe8] sm:$0xff] %vm225_vm0, %v6027_v13 }
 0x442   : > { %2488 = vrot.lane.b32.xlu0 %v6029_v18, %s4462_s20  ;;  %7049 = vst [vmem:[#allocation13_spill] sm:$0xff] %v6048_v35 }
 0x443   : > { %2492 = vrot.lane.b32.xlu2 %v6035_v49, %s4462_s20  ;;  %v2191_v43 = vpop.f32.mrf.mxu2  ;;  %v6068_v49 = vld [vmem:[#allocation3 + $0x1a] sm:$0xff] }
 0x444   : > { %v2192_v53 = vadd.f32 %v5739_v63, %v2191_v43  ;;  %v2449_v17 = vpop.permute.xlu1 %2448  ;;  %v2565_v43 = vld [vmem:[#allocation3 + $0xa] sm:$0xff]  ;;  %7052 = vst [vmem:[#allocation16_spill] sm:$0xff] %v6068_v49 }
 0x445   : > { %2538 = vst.msk [vmem:[#allocation4 + $0x30] sm:$0xff] %vm560_vm3, %v2449_v17  ;;  %v2564_v17 = vld [vmem:[#allocation3 + $0x2] sm:$0xff] }
 0x446   : > { %v2229_v23 = vmax.f32 %v2192_v53, 0.0 }
 0x447   : > { %v6041_v28 = vld [vmem:[#allocation3 + $0x169] sm:$0xff] }
 0x448   : > { %7048 = vst [vmem:[#allocation6_spill] sm:$0xff] %v6041_v28  ;;  %v6043_v8 = vld [vmem:[#allocation3 + $0x168] sm:$0xff]  ;;  %2496 = vrot.lane.b32.xlu1 %v6041_v28, %s4462_s20 }
 0x449   : > { %2305 = vst.msk [vmem:[#allocation3 + $0x171] sm:$0xff] %vm225_vm0, %v2229_v23 }
 0x44a   : > { %2370 = vst.msk [vmem:[#allocation4 + $0xf0] sm:$0xff] %vm225_vm0, %v6043_v8  ;;  %2494 = vrot.lane.b32.xlu0 %v6048_v35, %s4462_s20  ;;  %v2593_v35 = vld [vmem:[#allocation3 + $0x15a] sm:$0xff] }
 0x44c   : > { %v2457_v61 = vpop.permute.xlu2 %2456 }
 0x44d   : > { %2542 = vst.msk [vmem:[#allocation4 + $0x50] sm:$0xff] %vm560_vm3, %v2457_v61  ;;  %v6066_v61 = vld [vmem:[#allocation3 + $0x32] sm:$0xff] }
 0x44e   : > { %7051 = vst [vmem:[#allocation7_spill] sm:$0xff] %v6066_v61 }
 0x450   : > { %v6055_v53 = vld [vmem:[#allocation3 + $0x171] sm:$0xff]  ;;  %2630 = vrot.lane.b32.xlu1 %v2565_v43, %s4463_s25  ;;  %v6074_v43 = vld [vmem:[#allocation3 + $0x22] sm:$0xff] }
 0x451   : > { %7050 = vst [vmem:[#allocation8_spill] sm:$0xff] %v6055_v53  ;;  %2498 = vrot.lane.b32.xlu2 %v6055_v53, %s4462_s20  ;;  %v6060_v23 = vld [vmem:[#allocation3 + $0x170] sm:$0xff] }
 0x452   : > { %2371 = vst.msk [vmem:[#allocation4 + $0xf8] sm:$0xff] %vm225_vm0, %v6060_v23  ;;  %2628 = vrot.lane.b32.xlu0 %v2564_v17, %s4463_s25  ;;  %v6079_v17 = vld [vmem:[#allocation3 + $0x52] sm:$0xff] }
 0x453   : > { %7053 = vst [vmem:[#allocation11_spill] sm:$0xff] %v6074_v43 }
 0x454   : > { %v2453_v28 = vpop.permute.xlu0 %2452  ;;  %7054 = vst [vmem:[#allocation9_spill] sm:$0xff] %v6079_v17 }
 0x455   : > { %2540 = vst.msk [vmem:[#allocation4 + $0x40] sm:$0xff] %vm560_vm3, %v2453_v28  ;;  %v6081_v28 = vld [vmem:[#allocation3 + $0x3a] sm:$0xff] }
 0x456   : > { %7055 = vst [vmem:[#allocation19_spill] sm:$0xff] %v6081_v28 }
 0x458   : > { %2636 = vrot.lane.b32.xlu1 %v6066_v61, %s4463_s25  ;;  %v6087_v61 = vld [vmem:[#allocation3 + $0x4a] sm:$0xff] }
 0x459   : > { %2632 = vrot.lane.b32.xlu2 %v6068_v49, %s4463_s25  ;;  %7056 = vst [vmem:[#allocation14_spill] sm:$0xff] %v6087_v61 }
 0x45a   : > { %2634 = vrot.lane.b32.xlu0 %v6074_v43, %s4463_s25  ;;  %v6092_v43 = vld [vmem:[#allocation3 + $0x7a] sm:$0xff] }
 0x45b   : > { %7057 = vst [vmem:[#allocation12_spill] sm:$0xff] %v6092_v43 }
 0x45c   : > { %v2455_v53 = vpop.permute.xlu1 %2454 }
 0x45d   : > { %2541 = vst.msk [vmem:[#allocation4 + $0x48] sm:$0xff] %vm560_vm3, %v2455_v53  ;;  %v6094_v53 = vld [vmem:[#allocation3 + $0x62] sm:$0xff] }
 0x45e   : > { %7058 = vst [vmem:[#allocation22_spill] sm:$0xff] %v6094_v53 }
 0x460   : > { %2642 = vrot.lane.b32.xlu1 %v6079_v17, %s4463_s25  ;;  %v6100_v17 = vld [vmem:[#allocation3 + $0x6a] sm:$0xff] }
 0x461   : > { %2638 = vrot.lane.b32.xlu2 %v6081_v28, %s4463_s25  ;;  %7059 = vst [vmem:[#allocation17_spill] sm:$0xff] %v6100_v17 }
 0x462   : > { %2640 = vrot.lane.b32.xlu0 %v6087_v61, %s4463_s25  ;;  %v6105_v61 = vld [vmem:[#allocation3 + $0x9a] sm:$0xff] }
 0x463   : > { %7060 = vst [vmem:[#allocation15_spill] sm:$0xff] %v6105_v61 }
 0x464   : > { %v2463_v49 = vpop.permute.xlu2 %2462 }
 0x465   : > { %2545 = vst.msk [vmem:[#allocation4 + $0x68] sm:$0xff] %vm560_vm3, %v2463_v49  ;;  %v6107_v49 = vld [vmem:[#allocation3 + $0x82] sm:$0xff] }
 0x466   : > { %7061 = vst [vmem:[#allocation25_spill] sm:$0xff] %v6107_v49 }
 0x468   : > { %2648 = vrot.lane.b32.xlu1 %v6092_v43, %s4463_s25  ;;  %v6113_v43 = vld [vmem:[#allocation3 + $0x92] sm:$0xff] }
 0x469   : > { %2644 = vrot.lane.b32.xlu2 %v6094_v53, %s4463_s25  ;;  %7062 = vst [vmem:[#allocation20_spill] sm:$0xff] %v6113_v43 }
 0x46a   : > { %2646 = vrot.lane.b32.xlu0 %v6100_v17, %s4463_s25  ;;  %v6118_v17 = vld [vmem:[#allocation3 + $0xc2] sm:$0xff] }
 0x46b   : > { %7063 = vst [vmem:[#allocation18_spill] sm:$0xff] %v6118_v17 }
 0x46c   : > { %v2459_v28 = vpop.permute.xlu0 %2458 }
 0x46d   : > { %2543 = vst.msk [vmem:[#allocation4 + $0x58] sm:$0xff] %vm560_vm3, %v2459_v28  ;;  %v6120_v28 = vld [vmem:[#allocation3 + $0xaa] sm:$0xff] }
 0x46e   : > { %7064 = vst [vmem:[#allocation28_spill] sm:$0xff] %v6120_v28 }
 0x470   : > { %2654 = vrot.lane.b32.xlu1 %v6105_v61, %s4463_s25  ;;  %v6126_v61 = vld [vmem:[#allocation3 + $0xb2] sm:$0xff] }
 0x471   : > { %2650 = vrot.lane.b32.xlu2 %v6107_v49, %s4463_s25  ;;  %7065 = vst [vmem:[#allocation23_spill] sm:$0xff] %v6126_v61 }
 0x472   : > { %2652 = vrot.lane.b32.xlu0 %v6113_v43, %s4463_s25  ;;  %v6131_v43 = vld [vmem:[#allocation3 + $0xe2] sm:$0xff] }
 0x473   : > { %7066 = vst [vmem:[#allocation21_spill] sm:$0xff] %v6131_v43 }
 0x474   : > { %v2461_v53 = vpop.permute.xlu1 %2460 }
 0x475   : > { %2544 = vst.msk [vmem:[#allocation4 + $0x60] sm:$0xff] %vm560_vm3, %v2461_v53  ;;  %v6133_v53 = vld [vmem:[#allocation3 + $0xca] sm:$0xff] }
 0x476   : > { %7067 = vst [vmem:[#allocation31_spill] sm:$0xff] %v6133_v53 }
 0x478   : > { %2660 = vrot.lane.b32.xlu1 %v6118_v17, %s4463_s25  ;;  %v6139_v17 = vld [vmem:[#allocation3 + $0xda] sm:$0xff] }
 0x479   : > { %2656 = vrot.lane.b32.xlu2 %v6120_v28, %s4463_s25  ;;  %7068 = vst [vmem:[#allocation26_spill] sm:$0xff] %v6139_v17 }
 0x47a   : > { %2658 = vrot.lane.b32.xlu0 %v6126_v61, %s4463_s25 }
 0x47c   : > { %v2469_v49 = vpop.permute.xlu2 %2468 }
 0x47d   : > { %2548 = vst.msk [vmem:[#allocation4 + $0x80] sm:$0xff] %vm560_vm3, %v2469_v49  ;;  %v6145_v49 = vld [vmem:[#allocation3 + $0x10a] sm:$0xff] }
 0x47e   : > { %7069 = vst [vmem:[#allocation24_spill] sm:$0xff] %v6145_v49 }
 0x480   : > { %2666 = vrot.lane.b32.xlu1 %v6131_v43, %s4463_s25  ;;  %v6153_v43 = vld [vmem:[#allocation3 + $0xfa] sm:$0xff] }
 0x481   : > { %2662 = vrot.lane.b32.xlu2 %v6133_v53, %s4463_s25  ;;  %7071 = vst [vmem:[#allocation29_spill] sm:$0xff] %v6153_v43 }
 0x482   : > { %2664 = vrot.lane.b32.xlu0 %v6139_v17, %s4463_s25  ;;  %v6161_v17 = vld [vmem:[#allocation3 + $0x112] sm:$0xff] }
 0x483   : > { %7073 = vst [vmem:[#allocation32_spill] sm:$0xff] %v6161_v17 }
 0x484   : > { %v2465_v28 = vpop.permute.xlu0 %2464 }
 0x485   : > { %2546 = vst.msk [vmem:[#allocation4 + $0x70] sm:$0xff] %vm560_vm3, %v2465_v28  ;;  %v2475_v61 = vpop.permute.xlu2 %2474 }
 0x486   : > { %2551 = vst.msk [vmem:[#allocation4 + $0x98] sm:$0xff] %vm560_vm3, %v2475_v61  ;;  %v6159_v61 = vld [vmem:[#allocation3 + $0x12a] sm:$0xff] }
 0x487   : > { %7072 = vst [vmem:[#allocation27_spill] sm:$0xff] %v6159_v61 }
 0x488   : > { %2672 = vrot.lane.b32.xlu1 %v6145_v49, %s4463_s25  ;;  %v6167_v49 = vld [vmem:[#allocation3 + $0x122] sm:$0xff] }
 0x489   : > { %2668 = vrot.lane.b32.xlu2 %v6147_v29, %s4463_s25  ;;  %7074 = vst [vmem:[#allocation30_spill] sm:$0xff] %v6167_v49 }
 0x48a   : > { %2670 = vrot.lane.b32.xlu0 %v6153_v43, %s4463_s25  ;;  %v6173_v43 = vld [vmem:[#allocation3 + $0x13a] sm:$0xff] }
 0x48b   : > { %7075 = vst [vmem:[#allocation35_spill] sm:$0xff] %v6173_v43 }
 0x48c   : > { %v2467_v53 = vpop.permute.xlu1 %2466 }
 0x48d   : > { %2547 = vst.msk [vmem:[#allocation4 + $0x78] sm:$0xff] %vm560_vm3, %v2467_v53  ;;  %v2481_v28 = vpop.permute.xlu2 %2480 }
 0x48e   : > { %2554 = vst.msk [vmem:[#allocation4 + $0xb0] sm:$0xff] %vm560_vm3, %v2481_v28  ;;  %v2592_v28 = vld [vmem:[#allocation3 + $0x152] sm:$0xff] }
 0x490   : > { %2678 = vrot.lane.b32.xlu1 %v6159_v61, %s4463_s25  ;;  %v6178_v61 = vld [vmem:[#allocation3 + $0x142] sm:$0xff] }
 0x491   : > { %2674 = vrot.lane.b32.xlu2 %v6161_v17, %s4463_s25  ;;  %7076 = vst [vmem:[#allocation33_spill] sm:$0xff] %v6178_v61 }
 0x492   : > { %2676 = vrot.lane.b32.xlu0 %v6167_v49, %s4463_s25 }
 0x494   : > { %v2473_v29 = vpop.permute.xlu1 %2472 }
 0x495   : > { %2550 = vst.msk [vmem:[#allocation4 + $0x90] sm:$0xff] %vm560_vm3, %v2473_v29  ;;  %v2487_v53 = vpop.permute.xlu2 %2486 }
 0x496   : > { %2557 = vst.msk [vmem:[#allocation4 + $0xc8] sm:$0xff] %vm560_vm3, %v2487_v53  ;;  %v2595_v53 = vld [vmem:[#allocation3 + $0x172] sm:$0xff] }
 0x498   : > { %2684 = vrot.lane.b32.xlu1 %v2592_v28, %s4463_s25  ;;  %v2594_v28 = vld [vmem:[#allocation3 + $0x16a] sm:$0xff] }
 0x499   : > { %2680 = vrot.lane.b32.xlu2 %v6173_v43, %s4463_s25 }
 0x49a   : > { %2682 = vrot.lane.b32.xlu0 %v6178_v61, %s4463_s25 }
 0x49c   : > { %v2479_v17 = vpop.permute.xlu1 %2478  ;;  %v2471_v49 = vpop.permute.xlu0 %2470 }
 0x49d   : > { %2553 = vst.msk [vmem:[#allocation4 + $0xa8] sm:$0xff] %vm560_vm3, %v2479_v17  ;;  %v2493_v29 = vpop.permute.xlu2 %2492 }
 0x49e   : > { %2549 = vst.msk [vmem:[#allocation4 + $0x88] sm:$0xff] %vm560_vm3, %v2471_v49 }
 0x49f   : > { %2560 = vst.msk [vmem:[#allocation4 + $0xe0] sm:$0xff] %vm560_vm3, %v2493_v29 }
 0x4a0   : > { %2690 = vrot.lane.b32.xlu1 %v2595_v53, %s4463_s25 }
 0x4a1   : > { %2686 = vrot.lane.b32.xlu2 %v2593_v35, %s4463_s25 }
 0x4a2   : > { %2688 = vrot.lane.b32.xlu0 %v2594_v28, %s4463_s25 }
 0x4a4   : > { %v2485_v43 = vpop.permute.xlu1 %2484  ;;  %v2477_v61 = vpop.permute.xlu0 %2476 }
 0x4a5   : > { %2556 = vst.msk [vmem:[#allocation4 + $0xc0] sm:$0xff] %vm560_vm3, %v2485_v43 }
 0x4a6   : > { %2552 = vst.msk [vmem:[#allocation4 + $0xa0] sm:$0xff] %vm560_vm3, %v2477_v61 }
 0x4a8   : > { %2824 = vrot.lane.b32.xlu1 %v5773_v48, %s4464_s26 }
 0x4a9   : > { %2820 = vrot.lane.b32.xlu2 %v5749_v30, %s4464_s26 }
 0x4aa   : > { %2822 = vrot.lane.b32.xlu0 %v5760_v39, %s4464_s26 }
 0x4ab   : > { %v2499_v17 = vpop.permute.xlu2 %2498 }
 0x4ac   : > { %2563 = vst.msk [vmem:[#allocation4 + $0xf8] sm:$0xff] %vm560_vm3, %v2499_v17  ;;  %v2491_v35 = vpop.permute.xlu1 %2490  ;;  %v2483_v49 = vpop.permute.xlu0 %2482 }
 0x4ad   : > { %2559 = vst.msk [vmem:[#allocation4 + $0xd8] sm:$0xff] %vm560_vm3, %v2491_v35 }
 0x4ae   : > { %2555 = vst.msk [vmem:[#allocation4 + $0xb8] sm:$0xff] %vm560_vm3, %v2483_v49 }
 0x4b0   : > { %2830 = vrot.lane.b32.xlu1 %v5804_v42, %s4464_s26  ;;  %v2194_v42 = vpop.f32.mrf.mxu2 }
 0x4b1   : > { %2826 = vrot.lane.b32.xlu2 %v5783_v40, %s4464_s26  ;;  %v2195_v43 = vadd.f32 %v5739_v63, %v2194_v42 }
 0x4b2   : > { %2828 = vrot.lane.b32.xlu0 %v5793_v57, %s4464_s26 }
 0x4b3   : > { %v2633_v30 = vpop.permute.xlu2 %2632 }
 0x4b4   : > { %2726 = vst.msk [vmem:[#allocation4 + $0x10] sm:$0xff] %vm753_vm4, %v2633_v30  ;;  %v2489_v39 = vpop.permute.xlu0 %2488 }
 0x4b5   : > { %2558 = vst.msk [vmem:[#allocation4 + $0xd0] sm:$0xff] %vm560_vm3, %v2489_v39 }
 0x4b8   : > { %2836 = vrot.lane.b32.xlu1 %v5846_v11, %s4464_s26  ;;  %v2197_v29 = vpop.f32.mrf.mxu2 }
 0x4b9   : > { %2832 = vrot.lane.b32.xlu2 %v5815_v16, %s4464_s26  ;;  %v2230_v16 = vmax.f32 %v2195_v43, 0.0  ;;  %v7077_v43 = vld [vmem:[#allocation13_spill] sm:$0xff] }
 0x4ba   : > { %v2497_v48 = vpop.permute.xlu1 %2496  ;;  %2834 = vrot.lane.b32.xlu0 %v5831_v5, %s4464_s26 }
 0x4bb   : > { %v2639_v40 = vpop.permute.xlu2 %2638  ;;  %2562 = vst.msk [vmem:[#allocation4 + $0xf0] sm:$0xff] %vm560_vm3, %v2497_v48 }
 0x4bc   : > { %2729 = vst.msk [vmem:[#allocation4 + $0x28] sm:$0xff] %vm753_vm4, %v2639_v40  ;;  %v2495_v57 = vpop.permute.xlu0 %2494 }
 0x4bd   : > { %2561 = vst.msk [vmem:[#allocation4 + $0xe8] sm:$0xff] %vm560_vm3, %v2495_v57 }
 0x4be   : > { %2306 = vst.msk [vmem:[#allocation3 + $0x181] sm:$0xff] %vm225_vm0, %v2230_v16 }
 0x4c0   : > { %2842 = vrot.lane.b32.xlu1 %v5896_v3, %s4464_s26  ;;  %v2198_v3 = vadd.f32 %v5739_v63, %v2197_v29  ;;  %v7081_v29 = vld [vmem:[#allocation8_spill] sm:$0xff] }
 0x4c1   : > { %2838 = vrot.lane.b32.xlu2 %v5861_v31, %s4464_s26 }
 0x4c2   : > { %v2631_v11 = vpop.permute.xlu1 %2630  ;;  %2840 = vrot.lane.b32.xlu0 %v5881_v1, %s4464_s26  ;;  %v2231_v31 = vmax.f32 %v2198_v3, 0.0 }
 0x4c3   : > { %v2645_v5 = vpop.permute.xlu2 %2644  ;;  %2725 = vst.msk [vmem:[#allocation4 + $0x8] sm:$0xff] %vm753_vm4, %v2631_v11 }
 0x4c4   : > { %2732 = vst.msk [vmem:[#allocation4 + $0x40] sm:$0xff] %vm753_vm4, %v2645_v5  ;;  %v2629_v61 = vpop.permute.xlu0 %2628 }
 0x4c5   : > { %2724 = vst.msk [vmem:[#allocation4] sm:$0xff] %vm753_vm4, %v2629_v61  ;;  %v2786_v48 = vld [vmem:[#allocation3 + $0x180] sm:$0xff]  ;;  %v7080_v61 = vld [vmem:[#allocation6_spill] sm:$0xff] }
 0x4c6   : > { %2307 = vst.msk [vmem:[#allocation3 + $0x189] sm:$0xff] %vm225_vm0, %v2231_v31  ;;  %v6371_v5 = vld [vmem:[#allocation3 + $0x181] sm:$0xff] }
 0x4c8   : > { %2848 = vrot.lane.b32.xlu1 %v5951_v62, %s4464_s26 }
 0x4c9   : > { %2844 = vrot.lane.b32.xlu2 %v5915_v58, %s4464_s26 }
 0x4ca   : > { %2846 = vrot.lane.b32.xlu0 %v5936_v24, %s4464_s26  ;;  %v2637_v1 = vpop.permute.xlu1 %2636 }
 0x4cb   : > { %v2651_v53 = vpop.permute.xlu2 %2650  ;;  %2728 = vst.msk [vmem:[#allocation4 + $0x20] sm:$0xff] %vm753_vm4, %v2637_v1 }
 0x4cc   : > { %2735 = vst.msk [vmem:[#allocation4 + $0x58] sm:$0xff] %vm753_vm4, %v2651_v53  ;;  %v2635_v28 = vpop.permute.xlu0 %2634 }
 0x4cd   : > { %2727 = vst.msk [vmem:[#allocation4 + $0x18] sm:$0xff] %vm753_vm4, %v2635_v28  ;;  %v6382_v53 = vld [vmem:[#allocation3 + $0x189] sm:$0xff]  ;;  %v7082_v28 = vld [vmem:[#allocation11_spill] sm:$0xff] }
 0x4d0   : > { %2854 = vrot.lane.b32.xlu1 %v5842_v33, %s4464_s26 }
 0x4d1   : > { %2850 = vrot.lane.b32.xlu2 %v5977_v14, %s4464_s26 }
 0x4d2   : > { %2852 = vrot.lane.b32.xlu0 %v5822_v41, %s4464_s26  ;;  %v2643_v63 = vpop.permute.xlu1 %2642 }
 0x4d3   : > { %v2657_v58 = vpop.permute.xlu2 %2656  ;;  %2731 = vst.msk [vmem:[#allocation4 + $0x38] sm:$0xff] %vm753_vm4, %v2643_v63  ;;  %v7083_v63 = vld [vmem:[#allocation16_spill] sm:$0xff] }
 0x4d4   : > { %2738 = vst.msk [vmem:[#allocation4 + $0x70] sm:$0xff] %vm753_vm4, %v2657_v58  ;;  %v2641_v24 = vpop.permute.xlu0 %2640 }
 0x4d5   : > { %2730 = vst.msk [vmem:[#allocation4 + $0x30] sm:$0xff] %vm753_vm4, %v2641_v24 }
 0x4d8   : > { %2860 = vrot.lane.b32.xlu1 %v5901_v51, %s4464_s26 }
 0x4d9   : > { %2856 = vrot.lane.b32.xlu2 %v5867_v45, %s4464_s26 }
 0x4da   : > { %2858 = vrot.lane.b32.xlu0 %v5877_v59, %s4464_s26  ;;  %v2649_v33 = vpop.permute.xlu1 %2648 }
 0x4db   : > { %v2663_v41 = vpop.permute.xlu2 %2662  ;;  %2734 = vst.msk [vmem:[#allocation4 + $0x50] sm:$0xff] %vm753_vm4, %v2649_v33 }
 0x4dc   : > { %2741 = vst.msk [vmem:[#allocation4 + $0x88] sm:$0xff] %vm753_vm4, %v2663_v41  ;;  %v2647_v62 = vpop.permute.xlu0 %2646  ;;  %v7084_v41 = vld [vmem:[#allocation14_spill] sm:$0xff] }
 0x4dd   : > { %2733 = vst.msk [vmem:[#allocation4 + $0x48] sm:$0xff] %vm753_vm4, %v2647_v62  ;;  %v7085_v62 = vld [vmem:[#allocation7_spill] sm:$0xff] }
 0x4e0   : > { %2866 = vrot.lane.b32.xlu1 %v5945_v34, %s4464_s26 }
 0x4e1   : > { %2862 = vrot.lane.b32.xlu2 %v5911_v36, %s4464_s26 }
 0x4e2   : > { %2864 = vrot.lane.b32.xlu0 %v5926_v15, %s4464_s26  ;;  %v2655_v14 = vpop.permute.xlu1 %2654 }
 0x4e3   : > { %v2669_v17 = vpop.permute.xlu2 %2668  ;;  %2737 = vst.msk [vmem:[#allocation4 + $0x68] sm:$0xff] %vm753_vm4, %v2655_v14  ;;  %v7086_v14 = vld [vmem:[#allocation19_spill] sm:$0xff] }
 0x4e4   : > { %2744 = vst.msk [vmem:[#allocation4 + $0xa0] sm:$0xff] %vm753_vm4, %v2669_v17  ;;  %v2653_v35 = vpop.permute.xlu0 %2652 }
 0x4e5   : > { %2736 = vst.msk [vmem:[#allocation4 + $0x60] sm:$0xff] %vm753_vm4, %v2653_v35 }
 0x4e8   : > { %2872 = vrot.lane.b32.xlu1 %v6007_v56, %s4464_s26 }
 0x4e9   : > { %2868 = vrot.lane.b32.xlu2 %v5963_v19, %s4464_s26 }
 0x4ea   : > { %2870 = vrot.lane.b32.xlu0 %v5988_v32, %s4464_s26  ;;  %v2661_v34 = vpop.permute.xlu1 %2660 }
 0x4eb   : > { %v2675_v49 = vpop.permute.xlu2 %2674  ;;  %2740 = vst.msk [vmem:[#allocation4 + $0x80] sm:$0xff] %vm753_vm4, %v2661_v34 }
 0x4ec   : > { %2747 = vst.msk [vmem:[#allocation4 + $0xb8] sm:$0xff] %vm753_vm4, %v2675_v49  ;;  %v2659_v30 = vpop.permute.xlu0 %2658  ;;  %v7087_v49 = vld [vmem:[#allocation17_spill] sm:$0xff] }
 0x4ed   : > { %2739 = vst.msk [vmem:[#allocation4 + $0x78] sm:$0xff] %vm753_vm4, %v2659_v30  ;;  %v7088_v30 = vld [vmem:[#allocation9_spill] sm:$0xff] }
 0x4f0   : > { %2878 = vrot.lane.b32.xlu1 %v6060_v23, %s4464_s26  ;;  %v2787_v23 = vld [vmem:[#allocation3 + $0x188] sm:$0xff] }
 0x4f1   : > { %2874 = vrot.lane.b32.xlu2 %v6027_v13, %s4464_s26 }
 0x4f2   : > { %2876 = vrot.lane.b32.xlu0 %v6043_v8, %s4464_s26  ;;  %v2667_v56 = vpop.permute.xlu1 %2666 }
 0x4f3   : > { %v2681_v32 = vpop.permute.xlu2 %2680  ;;  %2743 = vst.msk [vmem:[#allocation4 + $0x98] sm:$0xff] %vm753_vm4, %v2667_v56  ;;  %v7089_v56 = vld [vmem:[#allocation22_spill] sm:$0xff] }
 0x4f4   : > { %2750 = vst.msk [vmem:[#allocation4 + $0xd0] sm:$0xff] %vm753_vm4, %v2681_v32  ;;  %v2665_v39 = vpop.permute.xlu0 %2664 }
 0x4f5   : > { %2742 = vst.msk [vmem:[#allocation4 + $0x90] sm:$0xff] %vm753_vm4, %v2665_v39 }
 0x4f8   : > { %3012 = vrot.lane.b32.xlu1 %v5747_v4, %s4465_s27 }
 0x4f9   : > { %2880 = vrot.lane.b32.xlu2 %v2786_v48, %s4464_s26 }
 0x4fa   : > { %2882 = vrot.lane.b32.xlu0 %v2787_v23, %s4464_s26  ;;  %v2673_v13 = vpop.permute.xlu1 %2672  ;;  %v7090_v23 = vld [vmem:[#allocation20_spill] sm:$0xff] }
 0x4fb   : > { %v2687_v8 = vpop.permute.xlu2 %2686  ;;  %2746 = vst.msk [vmem:[#allocation4 + $0xb0] sm:$0xff] %vm753_vm4, %v2673_v13  ;;  %v7091_v13 = vld [vmem:[#allocation12_spill] sm:$0xff] }
 0x4fc   : > { %2753 = vst.msk [vmem:[#allocation4 + $0xe8] sm:$0xff] %vm753_vm4, %v2687_v8  ;;  %v2671_v40 = vpop.permute.xlu0 %2670  ;;  %v7092_v8 = vld [vmem:[#allocation25_spill] sm:$0xff] }
 0x4fd   : > { %2745 = vst.msk [vmem:[#allocation4 + $0xa8] sm:$0xff] %vm753_vm4, %v2671_v40 }
 0x500   : > { %3018 = vrot.lane.b32.xlu1 %v5781_v52, %s4465_s27 }
 0x501   : > { %3014 = vrot.lane.b32.xlu2 %v5758_v44, %s4465_s27 }
 0x502   : > { %3016 = vrot.lane.b32.xlu0 %v5771_v50, %s4465_s27  ;;  %v2679_v4 = vpop.permute.xlu1 %2678 }
 0x503   : > { %v2821_v57 = vpop.permute.xlu2 %2820  ;;  %2749 = vst.msk [vmem:[#allocation4 + $0xc8] sm:$0xff] %vm753_vm4, %v2679_v4 }
 0x504   : > { %2916 = vst.msk [vmem:[#allocation4] sm:$0xff] %vm946_vm5, %v2821_v57  ;;  %v2677_v42 = vpop.permute.xlu0 %2676 }
 0x505   : > { %2748 = vst.msk [vmem:[#allocation4 + $0xc0] sm:$0xff] %vm753_vm4, %v2677_v42  ;;  %v7093_v42 = vld [vmem:[#allocation23_spill] sm:$0xff] }
 0x508   : > { %3024 = vrot.lane.b32.xlu1 %v5813_v25, %s4465_s27 }
 0x509   : > { %3020 = vrot.lane.b32.xlu2 %v5791_v0, %s4465_s27 }
 0x50a   : > { %3022 = vrot.lane.b32.xlu0 %v5802_v9, %s4465_s27  ;;  %v2685_v44 = vpop.permute.xlu1 %2684 }
 0x50b   : > { %v2827_v50 = vpop.permute.xlu2 %2826  ;;  %2752 = vst.msk [vmem:[#allocation4 + $0xe0] sm:$0xff] %vm753_vm4, %v2685_v44  ;;  %v7094_v44 = vld [vmem:[#allocation15_spill] sm:$0xff] }
 0x50c   : > { %2919 = vst.msk [vmem:[#allocation4 + $0x18] sm:$0xff] %vm946_vm5, %v2827_v50  ;;  %v2683_v52 = vpop.permute.xlu0 %2682  ;;  %v7095_v50 = vld [vmem:[#allocation28_spill] sm:$0xff] }
 0x50d   : > { %2751 = vst.msk [vmem:[#allocation4 + $0xd8] sm:$0xff] %vm753_vm4, %v2683_v52 }
 0x510   : > { %3030 = vrot.lane.b32.xlu1 %v5858_v38, %s4465_s27 }
 0x511   : > { %3026 = vrot.lane.b32.xlu2 %v5829_v6, %s4465_s27 }
 0x512   : > { %3028 = vrot.lane.b32.xlu0 %v5844_v26, %s4465_s27  ;;  %v2691_v0 = vpop.permute.xlu1 %2690 }
 0x513   : > { %v2833_v9 = vpop.permute.xlu2 %2832  ;;  %2755 = vst.msk [vmem:[#allocation4 + $0xf8] sm:$0xff] %vm753_vm4, %v2691_v0 }
 0x514   : > { %2922 = vst.msk [vmem:[#allocation4 + $0x30] sm:$0xff] %vm946_vm5, %v2833_v9  ;;  %v2689_v25 = vpop.permute.xlu0 %2688 }
 0x515   : > { %2754 = vst.msk [vmem:[#allocation4 + $0xf0] sm:$0xff] %vm753_vm4, %v2689_v25  ;;  %v7096_v25 = vld [vmem:[#allocation26_spill] sm:$0xff] }
 0x518   : > { %3036 = vrot.lane.b32.xlu1 %v5913_v54, %s4465_s27 }
 0x519   : > { %3032 = vrot.lane.b32.xlu2 %v5879_v46, %s4465_s27 }
 0x51a   : > { %3034 = vrot.lane.b32.xlu0 %v5893_v60, %s4465_s27  ;;  %v2825_v6 = vpop.permute.xlu1 %2824 }
 0x51b   : > { %v2839_v26 = vpop.permute.xlu2 %2838  ;;  %2918 = vst.msk [vmem:[#allocation4 + $0x10] sm:$0xff] %vm946_vm5, %v2825_v6  ;;  %v7097_v6 = vld [vmem:[#allocation18_spill] sm:$0xff] }
 0x51c   : > { %2925 = vst.msk [vmem:[#allocation4 + $0x48] sm:$0xff] %vm946_vm5, %v2839_v26  ;;  %v2823_v38 = vpop.permute.xlu0 %2822  ;;  %v7098_v26 = vld [vmem:[#allocation31_spill] sm:$0xff] }
 0x51d   : > { %2917 = vst.msk [vmem:[#allocation4 + $0x8] sm:$0xff] %vm946_vm5, %v2823_v38 }
 0x520   : > { %3042 = vrot.lane.b32.xlu1 %v5968_v12, %s4465_s27 }
 0x521   : > { %3038 = vrot.lane.b32.xlu2 %v5929_v27, %s4465_s27 }
 0x522   : > { %3040 = vrot.lane.b32.xlu0 %v5949_v22, %s4465_s27  ;;  %v2831_v46 = vpop.permute.xlu1 %2830 }
 0x523   : > { %v2845_v60 = vpop.permute.xlu2 %2844  ;;  %2921 = vst.msk [vmem:[#allocation4 + $0x28] sm:$0xff] %vm946_vm5, %v2831_v46 }
 0x524   : > { %2928 = vst.msk [vmem:[#allocation4 + $0x60] sm:$0xff] %vm946_vm5, %v2845_v60  ;;  %v2829_v54 = vpop.permute.xlu0 %2828 }
 0x525   : > { %2920 = vst.msk [vmem:[#allocation4 + $0x20] sm:$0xff] %vm946_vm5, %v2829_v54  ;;  %v7099_v54 = vld [vmem:[#allocation29_spill] sm:$0xff] }
 0x528   : > { %3048 = vrot.lane.b32.xlu1 %v5992_v7, %s4465_s27 }
 0x529   : > { %3044 = vrot.lane.b32.xlu2 %v5947_v55, %s4465_s27 }
 0x52a   : > { %3046 = vrot.lane.b32.xlu0 %v5975_v10, %s4465_s27  ;;  %v2837_v27 = vpop.permute.xlu1 %2836 }
 0x52b   : > { %v2851_v22 = vpop.permute.xlu2 %2850  ;;  %2924 = vst.msk [vmem:[#allocation4 + $0x40] sm:$0xff] %vm946_vm5, %v2837_v27  ;;  %v7100_v27 = vld [vmem:[#allocation21_spill] sm:$0xff] }
 0x52c   : > { %2931 = vst.msk [vmem:[#allocation4 + $0x78] sm:$0xff] %vm946_vm5, %v2851_v22  ;;  %v2835_v12 = vpop.permute.xlu0 %2834  ;;  %v7101_v22 = vld [vmem:[#allocation34_spill] sm:$0xff] }
 0x52d   : > { %2923 = vst.msk [vmem:[#allocation4 + $0x38] sm:$0xff] %vm946_vm5, %v2835_v12 }
 0x530   : > { %3054 = vrot.lane.b32.xlu1 %v6012_v47, %s4465_s27 }
 0x531   : > { %3050 = vrot.lane.b32.xlu2 %v5966_v2, %s4465_s27 }
 0x532   : > { %3052 = vrot.lane.b32.xlu0 %v6000_v37, %s4465_s27  ;;  %v2843_v55 = vpop.permute.xlu1 %2842 }
 0x533   : > { %v2857_v10 = vpop.permute.xlu2 %2856  ;;  %2927 = vst.msk [vmem:[#allocation4 + $0x58] sm:$0xff] %vm946_vm5, %v2843_v55 }
 0x534   : > { %2934 = vst.msk [vmem:[#allocation4 + $0x90] sm:$0xff] %vm946_vm5, %v2857_v10  ;;  %v2841_v7 = vpop.permute.xlu0 %2840 }
 0x535   : > { %2926 = vst.msk [vmem:[#allocation4 + $0x50] sm:$0xff] %vm946_vm5, %v2841_v7  ;;  %v7102_v7 = vld [vmem:[#allocation30_spill] sm:$0xff] }
 0x538   : > { %3060 = vrot.lane.b32.xlu1 %v6029_v18, %s4465_s27  ;;  %v7078_v18 = vld [vmem:[#allocation5_spill] sm:$0xff] }
 0x539   : > { %3056 = vrot.lane.b32.xlu2 %v5990_v20, %s4465_s27  ;;  %v7079_v20 = vld [vmem:[#allocation10_spill] sm:$0xff] }
 0x53a   : > { %3058 = vrot.lane.b32.xlu0 %v6020_v21, %s4465_s27  ;;  %v2849_v2 = vpop.permute.xlu1 %2848 }
 0x53b   : > { %v2863_v37 = vpop.permute.xlu2 %2862  ;;  %2930 = vst.msk [vmem:[#allocation4 + $0x70] sm:$0xff] %vm946_vm5, %v2849_v2  ;;  %v7103_v2 = vld [vmem:[#allocation24_spill] sm:$0xff] }
 0x53c   : > { %2937 = vst.msk [vmem:[#allocation4 + $0xa8] sm:$0xff] %vm946_vm5, %v2863_v37  ;;  %v2847_v47 = vpop.permute.xlu0 %2846  ;;  %v7104_v37 = vld [vmem:[#allocation32_spill] sm:$0xff] }
 0x53d   : > { %2929 = vst.msk [vmem:[#allocation4 + $0x68] sm:$0xff] %vm946_vm5, %v2847_v47 }
 0x540   : > { %3066 = vrot.lane.b32.xlu1 %v7077_v43, %s4465_s27 }
 0x541   : > { %3062 = vrot.lane.b32.xlu2 %v7078_v18, %s4465_s27 }
 0x542   : > { %3064 = vrot.lane.b32.xlu0 %v7079_v20, %s4465_s27  ;;  %v2855_v16 = vpop.permute.xlu1 %2854  ;;  %v7105_v20 = vld [vmem:[#allocation33_spill] sm:$0xff] }
 0x543   : > { %v2869_v21 = vpop.permute.xlu2 %2868  ;;  %2933 = vst.msk [vmem:[#allocation4 + $0x88] sm:$0xff] %vm946_vm5, %v2855_v16  ;;  %v7106_v16 = vld [vmem:[#allocation27_spill] sm:$0xff] }
 0x544   : > { %2940 = vst.msk [vmem:[#allocation4 + $0xc0] sm:$0xff] %vm946_vm5, %v2869_v21  ;;  %v2853_v11 = vpop.permute.xlu0 %2852  ;;  %v7107_v21 = vld [vmem:[#allocation35_spill] sm:$0xff] }
 0x545   : > { %2932 = vst.msk [vmem:[#allocation4 + $0x80] sm:$0xff] %vm946_vm5, %v2853_v11 }
 0x548   : > { %3072 = vrot.lane.b32.xlu1 %v6371_v5, %s4465_s27 }
 0x549   : > { %3068 = vrot.lane.b32.xlu2 %v7080_v61, %s4465_s27 }
 0x54a   : > { %3070 = vrot.lane.b32.xlu0 %v7081_v29, %s4465_s27  ;;  %v2861_v3 = vpop.permute.xlu1 %2860 }
 0x54b   : > { %v2875_v31 = vpop.permute.xlu2 %2874  ;;  %2936 = vst.msk [vmem:[#allocation4 + $0xa0] sm:$0xff] %vm946_vm5, %v2861_v3  ;;  %v3541_v3 = vld [vmem:[#allocation3 + $0xf1] sm:$0xff] }
 0x54c   : > { %2943 = vst.msk [vmem:[#allocation4 + $0xd8] sm:$0xff] %vm946_vm5, %v2875_v31  ;;  %v2859_v1 = vpop.permute.xlu0 %2858 }
 0x54d   : > { %2935 = vst.msk [vmem:[#allocation4 + $0x98] sm:$0xff] %vm946_vm5, %v2859_v1 }
 0x550   : > { %3206 = vrot.lane.b32.xlu1 %v7082_v28, %s4466_s28 }
 0x551   : > { %3074 = vrot.lane.b32.xlu2 %v6382_v53, %s4465_s27 }
 0x552   : > { %3204 = vrot.lane.b32.xlu0 %v7083_v63, %s4466_s28  ;;  %v2867_v58 = vpop.permute.xlu1 %2866  ;;  %v3333_v63 = vld [vmem:[#allocation3 + $0x30] sm:$0xff] }
 0x553   : > { %v2881_v24 = vpop.permute.xlu2 %2880  ;;  %2939 = vst.msk [vmem:[#allocation4 + $0xb8] sm:$0xff] %vm946_vm5, %v2867_v58  ;;  %v3525_v58 = vld [vmem:[#allocation3 + $0x31] sm:$0xff] }
 0x554   : > { %2946 = vst.msk [vmem:[#allocation4 + $0xf0] sm:$0xff] %vm946_vm5, %v2881_v24  ;;  %v2865_v33 = vpop.permute.xlu0 %2864 }
 0x555   : > { %2938 = vst.msk [vmem:[#allocation4 + $0xb0] sm:$0xff] %vm946_vm5, %v2865_v33 }
 0x558   : > { %3212 = vrot.lane.b32.xlu1 %v7084_v41, %s4466_s28  ;;  %v3717_v41 = vld [vmem:[#allocation3 + $0x32] sm:$0xff] }
 0x559   : > { %3208 = vrot.lane.b32.xlu2 %v7085_v62, %s4466_s28 }
 0x55a   : > { %3210 = vrot.lane.b32.xlu0 %v7086_v14, %s4466_s28  ;;  %v2873_v17 = vpop.permute.xlu1 %2872 }
 0x55b   : > { %v3015_v35 = vpop.permute.xlu2 %3014  ;;  %2942 = vst.msk [vmem:[#allocation4 + $0xd0] sm:$0xff] %vm946_vm5, %v2873_v17 }
 0x55c   : > { %3109 = vst.msk [vmem:[#allocation4 + $0x8] sm:$0xff] %vm1139_vm6, %v3015_v35  ;;  %v2871_v34 = vpop.permute.xlu0 %2870  ;;  %v3334_v35 = vld [vmem:[#allocation3 + $0x38] sm:$0xff] }
 0x55d   : > { %2941 = vst.msk [vmem:[#allocation4 + $0xc8] sm:$0xff] %vm946_vm5, %v2871_v34  ;;  %v3526_v34 = vld [vmem:[#allocation3 + $0x39] sm:$0xff] }
 0x560   : > { %3218 = vrot.lane.b32.xlu1 %v7087_v49, %s4466_s28 }
 0x561   : > { %3214 = vrot.lane.b32.xlu2 %v7088_v30, %s4466_s28 }
 0x562   : > { %3216 = vrot.lane.b32.xlu0 %v7089_v56, %s4466_s28  ;;  %v2879_v32 = vpop.permute.xlu1 %2878 }
 0x563   : > { %v3021_v39 = vpop.permute.xlu2 %3020  ;;  %2945 = vst.msk [vmem:[#allocation4 + $0xe8] sm:$0xff] %vm946_vm5, %v2879_v32  ;;  %v3718_v32 = vld [vmem:[#allocation3 + $0x3a] sm:$0xff] }
 0x564   : > { %3112 = vst.msk [vmem:[#allocation4 + $0x20] sm:$0xff] %vm1139_vm6, %v3021_v39  ;;  %v2877_v48 = vpop.permute.xlu0 %2876 }
 0x565   : > { %2944 = vst.msk [vmem:[#allocation4 + $0xe0] sm:$0xff] %vm946_vm5, %v2877_v48 }
 0x568   : > { %3224 = vrot.lane.b32.xlu1 %v7090_v23, %s4466_s28 }
 0x569   : > { %3220 = vrot.lane.b32.xlu2 %v7091_v13, %s4466_s28  ;;  %v3335_v13 = vld [vmem:[#allocation3 + $0x48] sm:$0xff] }
 0x56a   : > { %3222 = vrot.lane.b32.xlu0 %v7092_v8, %s4466_s28  ;;  %v3013_v40 = vpop.permute.xlu1 %3012  ;;  %v3527_v8 = vld [vmem:[#allocation3 + $0x49] sm:$0xff] }
 0x56b   : > { %v3027_v4 = vpop.permute.xlu2 %3026  ;;  %3108 = vst.msk [vmem:[#allocation4] sm:$0xff] %vm1139_vm6, %v3013_v40 }
 0x56c   : > { %3115 = vst.msk [vmem:[#allocation4 + $0x38] sm:$0xff] %vm1139_vm6, %v3027_v4  ;;  %v2883_v57 = vpop.permute.xlu0 %2882 }
 0x56d   : > { %2947 = vst.msk [vmem:[#allocation4 + $0xf8] sm:$0xff] %vm946_vm5, %v2883_v57 }
 0x570   : > { %3230 = vrot.lane.b32.xlu1 %v7093_v42, %s4466_s28  ;;  %v3719_v42 = vld [vmem:[#allocation3 + $0x4a] sm:$0xff] }
 0x571   : > { %3226 = vrot.lane.b32.xlu2 %v7094_v44, %s4466_s28 }
 0x572   : > { %3228 = vrot.lane.b32.xlu0 %v7095_v50, %s4466_s28  ;;  %v3019_v52 = vpop.permute.xlu1 %3018 }
 0x573   : > { %v3033_v0 = vpop.permute.xlu2 %3032  ;;  %3111 = vst.msk [vmem:[#allocation4 + $0x18] sm:$0xff] %vm1139_vm6, %v3019_v52 }
 0x574   : > { %3118 = vst.msk [vmem:[#allocation4 + $0x50] sm:$0xff] %vm1139_vm6, %v3033_v0  ;;  %v3017_v9 = vpop.permute.xlu0 %3016  ;;  %v3336_v0 = vld [vmem:[#allocation3 + $0x50] sm:$0xff] }
 0x575   : > { %3110 = vst.msk [vmem:[#allocation4 + $0x10] sm:$0xff] %vm1139_vm6, %v3017_v9  ;;  %v3528_v9 = vld [vmem:[#allocation3 + $0x51] sm:$0xff] }
 0x578   : > { %3236 = vrot.lane.b32.xlu1 %v7096_v25, %s4466_s28 }
 0x579   : > { %3232 = vrot.lane.b32.xlu2 %v7097_v6, %s4466_s28 }
 0x57a   : > { %3234 = vrot.lane.b32.xlu0 %v7098_v26, %s4466_s28  ;;  %v3025_v38 = vpop.permute.xlu1 %3024 }
 0x57b   : > { %v3039_v46 = vpop.permute.xlu2 %3038  ;;  %3114 = vst.msk [vmem:[#allocation4 + $0x30] sm:$0xff] %vm1139_vm6, %v3025_v38  ;;  %v3737_v38 = vld [vmem:[#allocation3 + $0x122] sm:$0xff] }
 0x57c   : > { %3121 = vst.msk [vmem:[#allocation4 + $0x68] sm:$0xff] %vm1139_vm6, %v3039_v46  ;;  %v3023_v60 = vpop.permute.xlu0 %3022  ;;  %v3720_v46 = vld [vmem:[#allocation3 + $0x52] sm:$0xff] }
 0x57d   : > { %3113 = vst.msk [vmem:[#allocation4 + $0x28] sm:$0xff] %vm1139_vm6, %v3023_v60 }
 0x580   : > { %3242 = vrot.lane.b32.xlu1 %v7099_v54, %s4466_s28 }
 0x581   : > { %3238 = vrot.lane.b32.xlu2 %v7100_v27, %s4466_s28 }
 0x582   : > { %3240 = vrot.lane.b32.xlu0 %v7101_v22, %s4466_s28  ;;  %v3031_v12 = vpop.permute.xlu1 %3030 }
 0x583   : > { %v3045_v55 = vpop.permute.xlu2 %3044  ;;  %3117 = vst.msk [vmem:[#allocation4 + $0x48] sm:$0xff] %vm1139_vm6, %v3031_v12  ;;  %v3337_v12 = vld [vmem:[#allocation3 + $0x60] sm:$0xff] }
 0x584   : > { %3124 = vst.msk [vmem:[#allocation4 + $0x80] sm:$0xff] %vm1139_vm6, %v3045_v55  ;;  %v3029_v10 = vpop.permute.xlu0 %3028  ;;  %v3529_v55 = vld [vmem:[#allocation3 + $0x61] sm:$0xff] }
 0x585   : > { %3116 = vst.msk [vmem:[#allocation4 + $0x40] sm:$0xff] %vm1139_vm6, %v3029_v10 }
 0x588   : > { %3248 = vrot.lane.b32.xlu1 %v7102_v7, %s4466_s28 }
 0x589   : > { %3244 = vrot.lane.b32.xlu2 %v7103_v2, %s4466_s28 }
 0x58a   : > { %3246 = vrot.lane.b32.xlu0 %v7104_v37, %s4466_s28  ;;  %v3037_v47 = vpop.permute.xlu1 %3036 }
 0x58b   : > { %v3051_v43 = vpop.permute.xlu2 %3050  ;;  %3120 = vst.msk [vmem:[#allocation4 + $0x60] sm:$0xff] %vm1139_vm6, %v3037_v47  ;;  %v3721_v47 = vld [vmem:[#allocation3 + $0x62] sm:$0xff] }
 0x58c   : > { %3127 = vst.msk [vmem:[#allocation4 + $0x98] sm:$0xff] %vm1139_vm6, %v3051_v43  ;;  %v3035_v18 = vpop.permute.xlu0 %3034  ;;  %v3546_v43 = vld [vmem:[#allocation3 + $0x129] sm:$0xff] }
 0x58d   : > { %3119 = vst.msk [vmem:[#allocation4 + $0x58] sm:$0xff] %vm1139_vm6, %v3035_v18 }
 0x590   : > { %3254 = vrot.lane.b32.xlu1 %v7105_v20, %s4466_s28 }
 0x591   : > { %3250 = vrot.lane.b32.xlu2 %v7106_v16, %s4466_s28 }
 0x592   : > { %3252 = vrot.lane.b32.xlu0 %v7107_v21, %s4466_s28  ;;  %v3043_v11 = vpop.permute.xlu1 %3042  ;;  %v3945_v21 = vld [vmem:[%s6915_s3 + $0x20] sm:$0xf] }
 0x593   : > { %v3057_v61 = vpop.permute.xlu2 %3056  ;;  %3123 = vst.msk [vmem:[#allocation4 + $0x78] sm:$0xff] %vm1139_vm6, %v3043_v11  ;;  %v3944_v11 = vld [vmem:[%s6915_s3 + $0x18] sm:$0xff]  ;;  %4429 = vmatpush.msk.msra.mxu3 %vm2083_vm10, %v3945_v21  ;;  %4387 = vmatpush.msk.msra.mxu1 %vm2083_vm10, %v3945_v21 }
 0x594   : > { %3130 = vst.msk [vmem:[#allocation4 + $0xb0] sm:$0xff] %vm1139_vm6, %v3057_v61  ;;  %v3041_v29 = vpop.permute.xlu0 %3040  ;;  %v3338_v61 = vld [vmem:[#allocation3 + $0x68] sm:$0xff] }
 0x595   : > { %3122 = vst.msk [vmem:[#allocation4 + $0x70] sm:$0xff] %vm1139_vm6, %v3041_v29  ;;  %v3943_v29 = vld [vmem:[%s6915_s3 + $0x10] sm:$0xff]  ;;  %4430 = vmatpush.msra.mxu3 %v3944_v11  ;;  %4061 = vmatpush.msra.mxu1 %v3944_v11  ;;  %v3551_v21 = vld [vmem:[#allocation3 + $0x169] sm:$0xff] }
 0x596   : > { %v3359_v11 = vld [vmem:[#allocation3 + $0x168] sm:$0xff] }
 0x597   : > { %4431 = vmatpush.msra.mxu3 %v3943_v29  ;;  %4062 = vmatpush.msra.mxu1 %v3943_v29 }
 0x598   : > { %3813 = vrot.lane.b32.xlu1 %v7101_v22, %s4469_s6  ;;  %v3354_v22 = vld [vmem:[#allocation3 + $0x128] sm:$0xff] }
 0x599   : > { %3429 = vrot.lane.b32.xlu2 %v5867_v45, %s4467_s29 }
 0x59a   : > { %3621 = vrot.lane.b32.xlu0 %v3541_v3, %s4468_s30  ;;  %v3049_v31 = vpop.permute.xlu1 %3048  ;;  %v3530_v3 = vld [vmem:[#allocation3 + $0x69] sm:$0xff] }
 0x59b   : > { %v3063_v1 = vpop.permute.xlu2 %3062  ;;  %3126 = vst.msk [vmem:[#allocation4 + $0x90] sm:$0xff] %vm1139_vm6, %v3049_v31 }
 0x59c   : > { %3133 = vst.msk [vmem:[#allocation4 + $0xc8] sm:$0xff] %vm1139_vm6, %v3063_v1  ;;  %v3047_v28 = vpop.permute.xlu0 %3046 }
 0x59d   : > { %3125 = vst.msk [vmem:[#allocation4 + $0x88] sm:$0xff] %vm1139_vm6, %v3047_v28 }
 0x5a0   : > { %3431 = vrot.lane.b32.xlu1 %v5877_v59, %s4467_s29  ;;  %v3542_v59 = vld [vmem:[#allocation3 + $0xf9] sm:$0xff] }
 0x5a1   : > { %3397 = vrot.lane.b32.xlu2 %v3333_v63, %s4467_s29  ;;  %v3941_v63 = vld [vmem:[%s6915_s3] sm:$0xff] }
 0x5a2   : > { %3589 = vrot.lane.b32.xlu0 %v3525_v58, %s4468_s30  ;;  %v3055_v45 = vpop.permute.xlu1 %3054  ;;  %v3739_v58 = vld [vmem:[#allocation3 + $0x13a] sm:$0xff] }
 0x5a3   : > { %v3069_v24 = vpop.permute.xlu2 %3068  ;;  %3129 = vst.msk [vmem:[#allocation4 + $0xa8] sm:$0xff] %vm1139_vm6, %v3055_v45  ;;  %v3722_v45 = vld [vmem:[#allocation3 + $0x6a] sm:$0xff] }
 0x5a4   : > { %3136 = vst.msk [vmem:[#allocation4 + $0xe0] sm:$0xff] %vm1139_vm6, %v3069_v24  ;;  %v3053_v33 = vpop.permute.xlu0 %3052  ;;  %v3547_v24 = vld [vmem:[#allocation3 + $0x139] sm:$0xff] }
 0x5a5   : > { %3128 = vst.msk [vmem:[#allocation4 + $0xa0] sm:$0xff] %vm1139_vm6, %v3053_v33 }
 0x5a8   : > { %3815 = vrot.lane.b32.xlu1 %v7099_v54, %s4469_s6 }
 0x5a9   : > { %3781 = vrot.lane.b32.xlu2 %v3717_v41, %s4469_s6 }
 0x5aa   : > { %3623 = vrot.lane.b32.xlu0 %v3542_v59, %s4468_s30  ;;  %v3061_v62 = vpop.permute.xlu1 %3060 }
 0x5ab   : > { %v3075_v14 = vpop.permute.xlu2 %3074  ;;  %3132 = vst.msk [vmem:[#allocation4 + $0xc0] sm:$0xff] %vm1139_vm6, %v3061_v62  ;;  %v3356_v62 = vld [vmem:[#allocation3 + $0x140] sm:$0xff] }
 0x5ac   : > { %3139 = vst.msk [vmem:[#allocation4 + $0xf8] sm:$0xff] %vm1139_vm6, %v3075_v14  ;;  %v3059_v17 = vpop.permute.xlu0 %3058  ;;  %v3339_v14 = vld [vmem:[#allocation3 + $0x78] sm:$0xff] }
 0x5ad   : > { %3131 = vst.msk [vmem:[#allocation4 + $0xb8] sm:$0xff] %vm1139_vm6, %v3059_v17  ;;  %v3531_v17 = vld [vmem:[#allocation3 + $0x79] sm:$0xff] }
 0x5b0   : > { %3433 = vrot.lane.b32.xlu1 %v5901_v51, %s4467_s29  ;;  %v3543_v51 = vld [vmem:[#allocation3 + $0x109] sm:$0xff] }
 0x5b1   : > { %3399 = vrot.lane.b32.xlu2 %v3334_v35, %s4467_s29 }
 0x5b2   : > { %3591 = vrot.lane.b32.xlu0 %v3526_v34, %s4468_s30  ;;  %v3067_v49 = vpop.permute.xlu1 %3066 }
 0x5b3   : > { %v3209_v30 = vpop.permute.xlu2 %3208  ;;  %3135 = vst.msk [vmem:[#allocation4 + $0xd8] sm:$0xff] %vm1139_vm6, %v3067_v49 }
 0x5b4   : > { %3302 = vst.msk [vmem:[#allocation4 + $0x10] sm:$0xff] %vm1332_vm7, %v3209_v30  ;;  %v3065_v56 = vpop.permute.xlu0 %3064  ;;  %v3740_v30 = vld [vmem:[#allocation3 + $0x142] sm:$0xff] }
 0x5b5   : > { %3134 = vst.msk [vmem:[#allocation4 + $0xd0] sm:$0xff] %vm1139_vm6, %v3065_v56  ;;  %v3723_v56 = vld [vmem:[#allocation3 + $0x7a] sm:$0xff] }
 0x5b8   : > { %3817 = vrot.lane.b32.xlu1 %v7103_v2, %s4469_s6 }
 0x5b9   : > { %3783 = vrot.lane.b32.xlu2 %v3718_v32, %s4469_s6  ;;  %v3548_v32 = vld [vmem:[#allocation3 + $0x141] sm:$0xff] }
 0x5ba   : > { %3625 = vrot.lane.b32.xlu0 %v3543_v51, %s4468_s30  ;;  %v3073_v39 = vpop.permute.xlu1 %3072 }
 0x5bb   : > { %v3215_v48 = vpop.permute.xlu2 %3214  ;;  %3138 = vst.msk [vmem:[#allocation4 + $0xf0] sm:$0xff] %vm1139_vm6, %v3073_v39 }
 0x5bc   : > { %3305 = vst.msk [vmem:[#allocation4 + $0x28] sm:$0xff] %vm1332_vm7, %v3215_v48  ;;  %v3071_v23 = vpop.permute.xlu0 %3070 }
 0x5bd   : > { %3137 = vst.msk [vmem:[#allocation4 + $0xe8] sm:$0xff] %vm1139_vm6, %v3071_v23  ;;  %v3357_v23 = vld [vmem:[#allocation3 + $0x150] sm:$0xff] }
 0x5c0   : > { %3435 = vrot.lane.b32.xlu1 %v5911_v36, %s4467_s29  ;;  %v3544_v36 = vld [vmem:[#allocation3 + $0x111] sm:$0xff] }
 0x5c1   : > { %3401 = vrot.lane.b32.xlu2 %v3335_v13, %s4467_s29  ;;  %v3340_v13 = vld [vmem:[#allocation3 + $0x80] sm:$0xff] }
 0x5c2   : > { %3593 = vrot.lane.b32.xlu0 %v3527_v8, %s4468_s30  ;;  %v3207_v40 = vpop.permute.xlu1 %3206  ;;  %v3532_v8 = vld [vmem:[#allocation3 + $0x81] sm:$0xff] }
 0x5c3   : > { %v3221_v4 = vpop.permute.xlu2 %3220  ;;  %3301 = vst.msk [vmem:[#allocation4 + $0x8] sm:$0xff] %vm1332_vm7, %v3207_v40 }
 0x5c4   : > { %3308 = vst.msk [vmem:[#allocation4 + $0x40] sm:$0xff] %vm1332_vm7, %v3221_v4  ;;  %v3205_v57 = vpop.permute.xlu0 %3204 }
 0x5c5   : > { %3300 = vst.msk [vmem:[#allocation4] sm:$0xff] %vm1332_vm7, %v3205_v57 }
 0x5c8   : > { %3819 = vrot.lane.b32.xlu1 %v7104_v37, %s4469_s6  ;;  %v3738_v37 = vld [vmem:[#allocation3 + $0x12a] sm:$0xff] }
 0x5c9   : > { %3785 = vrot.lane.b32.xlu2 %v3719_v42, %s4469_s6 }
 0x5ca   : > { %3627 = vrot.lane.b32.xlu0 %v3544_v36, %s4468_s30  ;;  %v3213_v44 = vpop.permute.xlu1 %3212  ;;  %v3741_v36 = vld [vmem:[#allocation3 + $0x152] sm:$0xff] }
 0x5cb   : > { %v3227_v50 = vpop.permute.xlu2 %3226  ;;  %3304 = vst.msk [vmem:[#allocation4 + $0x20] sm:$0xff] %vm1332_vm7, %v3213_v44  ;;  %v3724_v44 = vld [vmem:[#allocation3 + $0x82] sm:$0xff] }
 0x5cc   : > { %3311 = vst.msk [vmem:[#allocation4 + $0x58] sm:$0xff] %vm1332_vm7, %v3227_v50  ;;  %v3211_v52 = vpop.permute.xlu0 %3210  ;;  %v3549_v50 = vld [vmem:[#allocation3 + $0x151] sm:$0xff] }
 0x5cd   : > { %3303 = vst.msk [vmem:[#allocation4 + $0x18] sm:$0xff] %vm1332_vm7, %v3211_v52 }
 0x5d0   : > { %3437 = vrot.lane.b32.xlu1 %v5926_v15, %s4467_s29  ;;  %v3545_v15 = vld [vmem:[#allocation3 + $0x121] sm:$0xff] }
 0x5d1   : > { %3403 = vrot.lane.b32.xlu2 %v3336_v0, %s4467_s29 }
 0x5d2   : > { %3595 = vrot.lane.b32.xlu0 %v3528_v9, %s4468_s30  ;;  %v3219_v25 = vpop.permute.xlu1 %3218 }
 0x5d3   : > { %v3233_v6 = vpop.permute.xlu2 %3232  ;;  %3307 = vst.msk [vmem:[#allocation4 + $0x38] sm:$0xff] %vm1332_vm7, %v3219_v25 }
 0x5d4   : > { %3314 = vst.msk [vmem:[#allocation4 + $0x70] sm:$0xff] %vm1332_vm7, %v3233_v6  ;;  %v3217_v26 = vpop.permute.xlu0 %3216  ;;  %v3358_v6 = vld [vmem:[#allocation3 + $0x158] sm:$0xff] }
 0x5d5   : > { %3306 = vst.msk [vmem:[#allocation4 + $0x30] sm:$0xff] %vm1332_vm7, %v3217_v26  ;;  %v3341_v26 = vld [vmem:[#allocation3 + $0x90] sm:$0xff] }
 0x5d8   : > { %3821 = vrot.lane.b32.xlu1 %v3737_v38, %s4469_s6  ;;  %v3533_v38 = vld [vmem:[#allocation3 + $0x91] sm:$0xff] }
 0x5d9   : > { %3787 = vrot.lane.b32.xlu2 %v3720_v46, %s4469_s6 }
 0x5da   : > { %3629 = vrot.lane.b32.xlu0 %v3545_v15, %s4468_s30  ;;  %v3225_v60 = vpop.permute.xlu1 %3224 }
 0x5db   : > { %v3239_v54 = vpop.permute.xlu2 %3238  ;;  %3310 = vst.msk [vmem:[#allocation4 + $0x50] sm:$0xff] %vm1332_vm7, %v3225_v60 }
 0x5dc   : > { %3317 = vst.msk [vmem:[#allocation4 + $0x88] sm:$0xff] %vm1332_vm7, %v3239_v54  ;;  %v3223_v27 = vpop.permute.xlu0 %3222 }
 0x5dd   : > { %3309 = vst.msk [vmem:[#allocation4 + $0x48] sm:$0xff] %vm1332_vm7, %v3223_v27  ;;  %v3742_v27 = vld [vmem:[#allocation3 + $0x15a] sm:$0xff] }
 0x5e0   : > { %3439 = vrot.lane.b32.xlu1 %v3354_v22, %s4467_s29  ;;  %v3725_v22 = vld [vmem:[#allocation3 + $0x92] sm:$0xff] }
 0x5e1   : > { %3405 = vrot.lane.b32.xlu2 %v3337_v12, %s4467_s29  ;;  %v3550_v12 = vld [vmem:[#allocation3 + $0x159] sm:$0xff] }
 0x5e2   : > { %3597 = vrot.lane.b32.xlu0 %v3529_v55, %s4468_s30  ;;  %v3231_v10 = vpop.permute.xlu1 %3230 }
 0x5e3   : > { %v3245_v7 = vpop.permute.xlu2 %3244  ;;  %3313 = vst.msk [vmem:[#allocation4 + $0x68] sm:$0xff] %vm1332_vm7, %v3231_v10 }
 0x5e4   : > { %3320 = vst.msk [vmem:[#allocation4 + $0xa0] sm:$0xff] %vm1332_vm7, %v3245_v7  ;;  %v3229_v2 = vpop.permute.xlu0 %3228 }
 0x5e5   : > { %3312 = vst.msk [vmem:[#allocation4 + $0x60] sm:$0xff] %vm1332_vm7, %v3229_v2 }
 0x5e8   : > { %3823 = vrot.lane.b32.xlu1 %v3738_v37, %s4469_s6  ;;  %v3534_v37 = vld [vmem:[#allocation3 + $0x99] sm:$0xff] }
 0x5e9   : > { %3789 = vrot.lane.b32.xlu2 %v3721_v47, %s4469_s6  ;;  %v3342_v47 = vld [vmem:[#allocation3 + $0x98] sm:$0xff] }
 0x5ea   : > { %3631 = vrot.lane.b32.xlu0 %v3546_v43, %s4468_s30  ;;  %v3237_v18 = vpop.permute.xlu1 %3236 }
 0x5eb   : > { %v3251_v20 = vpop.permute.xlu2 %3250  ;;  %3316 = vst.msk [vmem:[#allocation4 + $0x80] sm:$0xff] %vm1332_vm7, %v3237_v18 }
 0x5ec   : > { %3323 = vst.msk [vmem:[#allocation4 + $0xb8] sm:$0xff] %vm1332_vm7, %v3251_v20  ;;  %v3235_v16 = vpop.permute.xlu0 %3234 }
 0x5ed   : > { %3315 = vst.msk [vmem:[#allocation4 + $0x78] sm:$0xff] %vm1332_vm7, %v3235_v16 }
 0x5f0   : > { %3441 = vrot.lane.b32.xlu1 %v5963_v19, %s4467_s29  ;;  %v3942_v19 = vld [vmem:[%s6915_s3 + $0x8] sm:$0xff] }
 0x5f1   : > { %3407 = vrot.lane.b32.xlu2 %v3338_v61, %s4467_s29  ;;  %4432 = vmatpush.msra.mxu3 %v3942_v19  ;;  %v3726_v61 = vld [vmem:[#allocation3 + $0x9a] sm:$0xff] }
 0x5f2   : > { %3599 = vrot.lane.b32.xlu0 %v3530_v3, %s4468_s30  ;;  %v3243_v31 = vpop.permute.xlu1 %3242  ;;  %4063 = vmatpush.msra.mxu1 %v3942_v19  ;;  %v3743_v19 = vld [vmem:[#allocation3 + $0x16a] sm:$0xff] }
 0x5f3   : > { %v3430_v1 = vpop.permute.xlu2 %3429  ;;  %3319 = vst.msk [vmem:[#allocation4 + $0x98] sm:$0xff] %vm1332_vm7, %v3243_v31  ;;  %4433 = vmatpush.msra.mxu3 %v3941_v63 }
 0x5f4   : > { %3509 = vst.msk [vmem:[#allocation4 + $0x80] sm:$0xff] %vm1526_vm8, %v3430_v1  ;;  %v3241_v28 = vpop.permute.xlu0 %3240  ;;  %4064 = vmatpush.msra.mxu1 %v3941_v63 }
 0x5f5   : > { %3318 = vst.msk [vmem:[#allocation4 + $0x90] sm:$0xff] %vm1332_vm7, %v3241_v28  ;;  %v3343_v28 = vld [vmem:[#allocation3 + $0xa8] sm:$0xff] }
 0x5f8   : > { %3825 = vrot.lane.b32.xlu1 %v3739_v58, %s4469_s6 }
 0x5f9   : > { %3791 = vrot.lane.b32.xlu2 %v3722_v45, %s4469_s6 }
 0x5fa   : > { %3633 = vrot.lane.b32.xlu0 %v3547_v24, %s4468_s30  ;;  %v3249_v33 = vpop.permute.xlu1 %3248 }
 0x5fb   : > { %v3398_v41 = vpop.permute.xlu2 %3397  ;;  %3322 = vst.msk [vmem:[#allocation4 + $0xb0] sm:$0xff] %vm1332_vm7, %v3249_v33  ;;  %v3727_v33 = vld [vmem:[#allocation3 + $0xaa] sm:$0xff] }
 0x5fc   : > { %3493 = vst.msk [vmem:[#allocation4] sm:$0xff] %vm1526_vm8, %v3398_v41  ;;  %v3247_v59 = vpop.permute.xlu0 %3246  ;;  %v3535_v41 = vld [vmem:[#allocation3 + $0xa9] sm:$0xff] }
 0x5fd   : > { %3321 = vst.msk [vmem:[#allocation4 + $0xa8] sm:$0xff] %vm1332_vm7, %v3247_v59  ;;  %v3360_v59 = vld [vmem:[#allocation3 + $0x170] sm:$0xff] }
 0x600   : > { %3443 = vrot.lane.b32.xlu1 %v3356_v62, %s4467_s29 }
 0x601   : > { %3409 = vrot.lane.b32.xlu2 %v3339_v14, %s4467_s29 }
 0x602   : > { %3601 = vrot.lane.b32.xlu0 %v3531_v17, %s4468_s30  ;;  %v3255_v35 = vpop.permute.xlu1 %3254 }
 0x603   : > { %v3782_v34 = vpop.permute.xlu2 %3781  ;;  %3325 = vst.msk [vmem:[#allocation4 + $0xc8] sm:$0xff] %vm1332_vm7, %v3255_v35 }
 0x604   : > { %v3253_v49 = vpop.permute.xlu0 %3252 }
 0x605   : > { %3324 = vst.msk [vmem:[#allocation4 + $0xc0] sm:$0xff] %vm1332_vm7, %v3253_v49  ;;  %v3552_v49 = vld [vmem:[#allocation3 + $0x171] sm:$0xff] }
 0x608   : > { %3827 = vrot.lane.b32.xlu1 %v3740_v30, %s4469_s6  ;;  %v3744_v30 = vld [vmem:[#allocation3 + $0x172] sm:$0xff] }
 0x609   : > { %3793 = vrot.lane.b32.xlu2 %v3723_v56, %s4469_s6 }
 0x60a   : > { %3635 = vrot.lane.b32.xlu0 %v3548_v32, %s4468_s30  ;;  %v3814_v51 = vpop.permute.xlu1 %3813 }
 0x60b   : > { %v3400_v39 = vpop.permute.xlu2 %3399 }
 0x60c   : > { %3494 = vst.msk [vmem:[#allocation4 + $0x8] sm:$0xff] %vm1526_vm8, %v3400_v39  ;;  %v3622_v48 = vpop.permute.xlu0 %3621 }
 0x60d   : > { %3701 = vst.msk [vmem:[#allocation4 + $0x80] sm:$0xff] %vm1719_vm9, %v3622_v48  ;;  %v3361_v48 = vld [vmem:[#allocation3 + $0x180] sm:$0xff] }
 0x60e   : > { %3893 = vst.msk [vmem:[#allocation4 + $0x80] sm:$0xff] %vm1912_vm11, %v3814_v51 }
 0x610   : > { %3445 = vrot.lane.b32.xlu1 %v3357_v23, %s4467_s29  ;;  %v3536_v23 = vld [vmem:[#allocation3 + $0xb1] sm:$0xff] }
 0x611   : > { %3411 = vrot.lane.b32.xlu2 %v3340_v13, %s4467_s29 }
 0x612   : > { %3603 = vrot.lane.b32.xlu0 %v3532_v8, %s4468_s30  ;;  %v3432_v40 = vpop.permute.xlu1 %3431 }
 0x613   : > { %v3784_v4 = vpop.permute.xlu2 %3783  ;;  %3510 = vst.msk [vmem:[#allocation4 + $0x88] sm:$0xff] %vm1526_vm8, %v3432_v40 }
 0x614   : > { %v3590_v57 = vpop.permute.xlu0 %3589 }
 0x615   : > { %3685 = vst.msk [vmem:[#allocation4] sm:$0xff] %vm1719_vm9, %v3590_v57  ;;  %v3925_v42 = vld [vmem:[#allocation4 + $0x80] sm:$0xff]  ;;  %v3745_v57 = vld [vmem:[#allocation3 + $0x182] sm:$0xff] }
 0x616   : > { %3877 = vst.msk [vmem:[#allocation4] sm:$0xff] %vm1912_vm11, %v3782_v34  ;;  %4404 = vmatmul.msk.f32.vlgmr.msra.gmra.mxu3 %vm1986_vm12, %v3925_v42  ;;  %v3344_v34 = vld [vmem:[#allocation3 + $0xb0] sm:$0xff] }
 0x617   : > { %v3728_v42 = vld [vmem:[#allocation3 + $0xb2] sm:$0xff] }
 0x618   : > { %3829 = vrot.lane.b32.xlu1 %v3741_v36, %s4469_s6 }
 0x619   : > { %3795 = vrot.lane.b32.xlu2 %v3724_v44, %s4469_s6 }
 0x61a   : > { %3637 = vrot.lane.b32.xlu0 %v3549_v50, %s4468_s30  ;;  %v3816_v52 = vpop.permute.xlu1 %3815 }
 0x61b   : > { %v3402_v0 = vpop.permute.xlu2 %3401 }
 0x61c   : > { %3495 = vst.msk [vmem:[#allocation4 + $0x10] sm:$0xff] %vm1526_vm8, %v3402_v0  ;;  %v3624_v9 = vpop.permute.xlu0 %3623  ;;  %v3537_v0 = vld [vmem:[#allocation3 + $0xc1] sm:$0xff] }
 0x61d   : > { %3702 = vst.msk [vmem:[#allocation4 + $0x88] sm:$0xff] %vm1719_vm9, %v3624_v9  ;;  %v3909_v25 = vld [vmem:[#allocation4] sm:$0xff]  ;;  %v3345_v9 = vld [vmem:[#allocation3 + $0xc0] sm:$0xff] }
 0x61e   : > { %3894 = vst.msk [vmem:[#allocation4 + $0x88] sm:$0xff] %vm1912_vm11, %v3816_v52  ;;  %4388 = vmatmul.msk.f32.vlgmr.msra.gmra.mxu1 %vm1986_vm12, %v3909_v25 }
 0x620   : > { %3447 = vrot.lane.b32.xlu1 %v3358_v6, %s4467_s29 }
 0x621   : > { %3413 = vrot.lane.b32.xlu2 %v3341_v26, %s4467_s29 }
 0x622   : > { %3605 = vrot.lane.b32.xlu0 %v3533_v38, %s4468_s30  ;;  %v3434_v46 = vpop.permute.xlu1 %3433  ;;  %v3362_v38 = vld [vmem:[#allocation3 + $0x188] sm:$0xff] }
 0x623   : > { %v3786_v15 = vpop.permute.xlu2 %3785  ;;  %3511 = vst.msk [vmem:[#allocation4 + $0x90] sm:$0xff] %vm1526_vm8, %v3434_v46  ;;  %v3729_v46 = vld [vmem:[#allocation3 + $0xc2] sm:$0xff] }
 0x624   : > { %v3592_v60 = vpop.permute.xlu0 %3591 }
 0x625   : > { %3686 = vst.msk [vmem:[#allocation4 + $0x8] sm:$0xff] %vm1719_vm9, %v3592_v60  ;;  %v3926_v54 = vld [vmem:[#allocation4 + $0x88] sm:$0xff] }
 0x626   : > { %3878 = vst.msk [vmem:[#allocation4 + $0x8] sm:$0xff] %vm1912_vm11, %v3784_v4  ;;  %4405 = vmatmul.msk.f32.gmra.mxu3 %vm1986_vm12, %v3926_v54 }
 0x628   : > { %3831 = vrot.lane.b32.xlu1 %v3742_v27, %s4469_s6 }
 0x629   : > { %3797 = vrot.lane.b32.xlu2 %v3725_v22, %s4469_s6  ;;  %v3746_v22 = vld [vmem:[#allocation3 + $0x18a] sm:$0xff] }
 0x62a   : > { %3639 = vrot.lane.b32.xlu0 %v3550_v12, %s4468_s30  ;;  %v3818_v55 = vpop.permute.xlu1 %3817 }
 0x62b   : > { %v3404_v10 = vpop.permute.xlu2 %3403 }
 0x62c   : > { %3496 = vst.msk [vmem:[#allocation4 + $0x18] sm:$0xff] %vm1526_vm8, %v3404_v10  ;;  %v3626_v7 = vpop.permute.xlu0 %3625 }
 0x62d   : > { %3703 = vst.msk [vmem:[#allocation4 + $0x90] sm:$0xff] %vm1719_vm9, %v3626_v7  ;;  %v3910_v2 = vld [vmem:[#allocation4 + $0x8] sm:$0xff] }
 0x62e   : > { %3895 = vst.msk [vmem:[#allocation4 + $0x90] sm:$0xff] %vm1912_vm11, %v3818_v55  ;;  %4389 = vmatmul.msk.f32.gmra.mxu1 %vm1986_vm12, %v3910_v2  ;;  %v3730_v2 = vld [vmem:[#allocation3 + $0xca] sm:$0xff] }
 0x630   : > { %3607 = vrot.lane.b32.xlu1 %v3534_v37, %s4468_s30  ;;  %v3538_v37 = vld [vmem:[#allocation3 + $0xc9] sm:$0xff] }
 0x631   : > { %3415 = vrot.lane.b32.xlu2 %v3342_v47, %s4467_s29  ;;  %v3363_v47 = vld [vmem:[#allocation3 + $0x198] sm:$0xff] }
 0x632   : > { %3256 = vrot.lane.b32.xlu0 %v3741_v36, %s4466_s28  ;;  %v3436_v43 = vpop.permute.xlu1 %3435 }
 0x633   : > { %v3788_v18 = vpop.permute.xlu2 %3787  ;;  %3512 = vst.msk [vmem:[#allocation4 + $0x98] sm:$0xff] %vm1526_vm8, %v3436_v43 }
 0x634   : > { %v3594_v20 = vpop.permute.xlu0 %3593 }
 0x635   : > { %3687 = vst.msk [vmem:[#allocation4 + $0x10] sm:$0xff] %vm1719_vm9, %v3594_v20  ;;  %v3927_v16 = vld [vmem:[#allocation4 + $0x90] sm:$0xff] }
 0x636   : > { %3879 = vst.msk [vmem:[#allocation4 + $0x10] sm:$0xff] %vm1912_vm11, %v3786_v15  ;;  %4406 = vmatmul.msk.f32.gmra.mxu3 %vm1986_vm12, %v3927_v16 }
 0x638   : > { %3641 = vrot.lane.b32.xlu1 %v3551_v21, %s4468_s30  ;;  %v3555_v21 = vld [vmem:[#allocation3 + $0x199] sm:$0xff] }
 0x639   : > { %3449 = vrot.lane.b32.xlu2 %v3359_v11, %s4467_s29  ;;  %v3347_v11 = vld [vmem:[#allocation3 + $0xd8] sm:$0xff] }
 0x63a   : > { %3799 = vrot.lane.b32.xlu0 %v3726_v61, %s4469_s6  ;;  %v3820_v29 = vpop.permute.xlu1 %3819  ;;  %v3747_v61 = vld [vmem:[#allocation3 + $0x19a] sm:$0xff] }
 0x63b   : > { %v3406_v3 = vpop.permute.xlu2 %3405 }
 0x63c   : > { %3497 = vst.msk [vmem:[#allocation4 + $0x20] sm:$0xff] %vm1526_vm8, %v3406_v3  ;;  %v3628_v31 = vpop.permute.xlu0 %3627 }
 0x63d   : > { %3704 = vst.msk [vmem:[#allocation4 + $0x98] sm:$0xff] %vm1719_vm9, %v3628_v31  ;;  %v3911_v1 = vld [vmem:[#allocation4 + $0x10] sm:$0xff] }
 0x63e   : > { %3896 = vst.msk [vmem:[#allocation4 + $0x98] sm:$0xff] %vm1912_vm11, %v3820_v29  ;;  %4390 = vmatmul.msk.f32.gmra.mxu1 %vm1986_vm12, %v3911_v1 }
 0x640   : > { %3258 = vrot.lane.b32.xlu1 %v3742_v27, %s4466_s28 }
 0x641   : > { %3833 = vrot.lane.b32.xlu2 %v3743_v19, %s4469_s6 }
 0x642   : > { %3417 = vrot.lane.b32.xlu0 %v3343_v28, %s4467_s29  ;;  %v3438_v63 = vpop.permute.xlu1 %3437  ;;  %v3539_v28 = vld [vmem:[#allocation3 + $0xd9] sm:$0xff] }
 0x643   : > { %v3790_v58 = vpop.permute.xlu2 %3789  ;;  %3513 = vst.msk [vmem:[#allocation4 + $0xa0] sm:$0xff] %vm1526_vm8, %v3438_v63 }
 0x644   : > { %v3596_v45 = vpop.permute.xlu0 %3595 }
 0x645   : > { %3688 = vst.msk [vmem:[#allocation4 + $0x18] sm:$0xff] %vm1719_vm9, %v3596_v45  ;;  %v3928_v24 = vld [vmem:[#allocation4 + $0x98] sm:$0xff] }
 0x646   : > { %3880 = vst.msk [vmem:[#allocation4 + $0x18] sm:$0xff] %vm1912_vm11, %v3788_v18  ;;  %4407 = vmatmul.msk.f32.gmra.mxu3 %vm1986_vm12, %v3928_v24 }
 0x648   : > { %3801 = vrot.lane.b32.xlu1 %v3727_v33, %s4469_s6  ;;  %v3748_v33 = vld [vmem:[#allocation3 + $0x1a2] sm:$0xff] }
 0x649   : > { %3609 = vrot.lane.b32.xlu2 %v3535_v41, %s4468_s30  ;;  %v6705_v41 = vld [vmem:[%s6916_s4] ss:$0 sm:$0xff] }
 0x64a   : > { %3451 = vrot.lane.b32.xlu0 %v3360_v59, %s4467_s29  ;;  %v3822_v62 = vpop.permute.xlu1 %3821  ;;  %v3731_v59 = vld [vmem:[#allocation3 + $0xda] sm:$0xff] }
 0x64b   : > { %v3408_v14 = vpop.permute.xlu2 %3407 }
 0x64c   : > { %3498 = vst.msk [vmem:[#allocation4 + $0x28] sm:$0xff] %vm1526_vm8, %v3408_v14  ;;  %v3630_v17 = vpop.permute.xlu0 %3629 }
 0x64d   : > { %3705 = vst.msk [vmem:[#allocation4 + $0xa0] sm:$0xff] %vm1719_vm9, %v3630_v17  ;;  %v3912_v35 = vld [vmem:[#allocation4 + $0x18] sm:$0xff]  ;;  %v4178_v17 = vld [vmem:[%s4671_s24 + $0x80] sm:$0xff] }
 0x64e   : > { %3897 = vst.msk [vmem:[#allocation4 + $0xa0] sm:$0xff] %vm1912_vm11, %v3822_v62  ;;  %4391 = vmatmul.msk.f32.gmra.mxu1 %vm1986_vm12, %v3912_v35  ;;  %v3556_v62 = vld [vmem:[#allocation3 + $0x1a1] sm:$0xff] }
 0x650   : > { %3419 = vrot.lane.b32.xlu1 %v3344_v34, %s4467_s29 }
 0x651   : > { %3643 = vrot.lane.b32.xlu2 %v3552_v49, %s4468_s30 }
 0x652   : > { %3835 = vrot.lane.b32.xlu0 %v3744_v30, %s4469_s6  ;;  %v3440_v56 = vpop.permute.xlu1 %3439 }
 0x653   : > { %v3792_v32 = vpop.permute.xlu2 %3791  ;;  %3514 = vst.msk [vmem:[#allocation4 + $0xa8] sm:$0xff] %vm1526_vm8, %v3440_v56  ;;  %v4162_v56 = vld [vmem:[%s4671_s24] sm:$0xff] }
 0x654   : > { %v3598_v51 = vpop.permute.xlu0 %3597 }
 0x655   : > { %3689 = vst.msk [vmem:[#allocation4 + $0x20] sm:$0xff] %vm1719_vm9, %v3598_v51  ;;  %v3929_v39 = vld [vmem:[#allocation4 + $0xa0] sm:$0xff] }
 0x656   : > { %3881 = vst.msk [vmem:[#allocation4 + $0x20] sm:$0xff] %vm1912_vm11, %v3790_v58  ;;  %4408 = vmatmul.msk.f32.gmra.mxu3 %vm1986_vm12, %v3929_v39 }
 0x658   : > { %3453 = vrot.lane.b32.xlu1 %v3361_v48, %s4467_s29 }
 0x659   : > { %3260 = vrot.lane.b32.xlu2 %v3743_v19, %s4466_s28  ;;  %v3364_v19 = vld [vmem:[#allocation3 + $0x1a0] sm:$0xff] }
 0x65a   : > { %3611 = vrot.lane.b32.xlu0 %v3536_v23, %s4468_s30  ;;  %v3824_v13 = vpop.permute.xlu1 %3823 }
 0x65b   : > { %v3410_v8 = vpop.permute.xlu2 %3409 }
 0x65c   : > { %3499 = vst.msk [vmem:[#allocation4 + $0x30] sm:$0xff] %vm1526_vm8, %v3410_v8  ;;  %v3632_v40 = vpop.permute.xlu0 %3631  ;;  %v3732_v8 = vld [vmem:[#allocation3 + $0xe2] sm:$0xff] }
 0x65d   : > { %3706 = vst.msk [vmem:[#allocation4 + $0xa8] sm:$0xff] %vm1719_vm9, %v3632_v40  ;;  %v3913_v4 = vld [vmem:[#allocation4 + $0x20] sm:$0xff]  ;;  %v3348_v40 = vld [vmem:[#allocation3 + $0xe0] sm:$0xff] }
 0x65e   : > { %3898 = vst.msk [vmem:[#allocation4 + $0xa8] sm:$0xff] %vm1912_vm11, %v3824_v13  ;;  %4392 = vmatmul.msk.f32.gmra.mxu1 %vm1986_vm12, %v3913_v4 }
 0x660   : > { %3837 = vrot.lane.b32.xlu1 %v3745_v57, %s4469_s6 }
 0x661   : > { %3803 = vrot.lane.b32.xlu2 %v3728_v42, %s4469_s6 }
 0x662   : > { %3645 = vrot.lane.b32.xlu0 %v6371_v5, %s4468_s30  ;;  %v3442_v36 = vpop.permute.xlu1 %3441 }
 0x663   : > { %v3794_v44 = vpop.permute.xlu2 %3793  ;;  %3515 = vst.msk [vmem:[#allocation4 + $0xb0] sm:$0xff] %vm1526_vm8, %v3442_v36 }
 0x664   : > { %v3600_v50 = vpop.permute.xlu0 %3599 }
 0x665   : > { %3690 = vst.msk [vmem:[#allocation4 + $0x28] sm:$0xff] %vm1719_vm9, %v3600_v50  ;;  %v3930_v52 = vld [vmem:[#allocation4 + $0xa8] sm:$0xff] }
 0x666   : > { %3882 = vst.msk [vmem:[#allocation4 + $0x28] sm:$0xff] %vm1912_vm11, %v3792_v32  ;;  %4409 = vmatmul.msk.f32.gmra.mxu3 %vm1986_vm12, %v3930_v52 }
 0x668   : > { %3613 = vrot.lane.b32.xlu1 %v3537_v0, %s4468_s30  ;;  %v4179_v0 = vld [vmem:[%s4671_s24 + $0x88] sm:$0xff] }
 0x669   : > { %3421 = vrot.lane.b32.xlu2 %v3345_v9, %s4467_s29 }
 0x66a   : > { %3262 = vrot.lane.b32.xlu0 %v3744_v30, %s4466_s28  ;;  %v3826_v5 = vpop.permute.xlu1 %3825 }
 0x66b   : > { %v3412_v25 = vpop.permute.xlu2 %3411 }
 0x66c   : > { %3500 = vst.msk [vmem:[#allocation4 + $0x38] sm:$0xff] %vm1526_vm8, %v3412_v25  ;;  %v3634_v6 = vpop.permute.xlu0 %3633 }
 0x66d   : > { %3707 = vst.msk [vmem:[#allocation4 + $0xb0] sm:$0xff] %vm1719_vm9, %v3634_v6  ;;  %v3914_v26 = vld [vmem:[#allocation4 + $0x28] sm:$0xff] }
 0x66e   : > { %3899 = vst.msk [vmem:[#allocation4 + $0xb0] sm:$0xff] %vm1912_vm11, %v3826_v5  ;;  %4393 = vmatmul.msk.f32.gmra.mxu1 %vm1986_vm12, %v3914_v26  ;;  %v4163_v26 = vld [vmem:[%s4671_s24 + $0x8] sm:$0xff] }
 0x670   : > { %3647 = vrot.lane.b32.xlu1 %v6382_v53, %s4468_s30  ;;  %v3346_v53 = vld [vmem:[#allocation3 + $0xc8] sm:$0xff] }
 0x671   : > { %3455 = vrot.lane.b32.xlu2 %v3362_v38, %s4467_s29 }
 0x672   : > { %3805 = vrot.lane.b32.xlu0 %v3729_v46, %s4469_s6  ;;  %v3444_v15 = vpop.permute.xlu1 %3443 }
 0x673   : > { %v3796_v60 = vpop.permute.xlu2 %3795  ;;  %3516 = vst.msk [vmem:[#allocation4 + $0xb8] sm:$0xff] %vm1526_vm8, %v3444_v15 }
 0x674   : > { %v3602_v54 = vpop.permute.xlu0 %3601 }
 0x675   : > { %3691 = vst.msk [vmem:[#allocation4 + $0x30] sm:$0xff] %vm1719_vm9, %v3602_v54  ;;  %v3931_v27 = vld [vmem:[#allocation4 + $0xb0] sm:$0xff] }
 0x676   : > { %3883 = vst.msk [vmem:[#allocation4 + $0x30] sm:$0xff] %vm1912_vm11, %v3794_v44  ;;  %4410 = vmatmul.msk.f32.gmra.mxu3 %vm1986_vm12, %v3931_v27 }
 0x678   : > { %3264 = vrot.lane.b32.xlu1 %v3745_v57, %s4466_s28  ;;  %v3540_v57 = vld [vmem:[#allocation3 + $0xe1] sm:$0xff] }
 0x679   : > { %3839 = vrot.lane.b32.xlu2 %v3746_v22, %s4469_s6 }
 0x67a   : > { %3423 = vrot.lane.b32.xlu0 %v3346_v53, %s4467_s29  ;;  %v3828_v12 = vpop.permute.xlu1 %3827 }
 0x67b   : > { %v3414_v55 = vpop.permute.xlu2 %3413 }
 0x67c   : > { %3501 = vst.msk [vmem:[#allocation4 + $0x40] sm:$0xff] %vm1526_vm8, %v3414_v55  ;;  %v3636_v10 = vpop.permute.xlu0 %3635 }
 0x67d   : > { %3708 = vst.msk [vmem:[#allocation4 + $0xb8] sm:$0xff] %vm1719_vm9, %v3636_v10  ;;  %v3915_v7 = vld [vmem:[#allocation4 + $0x30] sm:$0xff] }
 0x67e   : > { %3900 = vst.msk [vmem:[#allocation4 + $0xb8] sm:$0xff] %vm1912_vm11, %v3828_v12  ;;  %4394 = vmatmul.msk.f32.gmra.mxu1 %vm1986_vm12, %v3915_v7 }
 0x680   : > { %3807 = vrot.lane.b32.xlu1 %v3730_v2, %s4469_s6  ;;  %v4180_v2 = vld [vmem:[%s4671_s24 + $0x90] sm:$0xff] }
 0x681   : > { %3615 = vrot.lane.b32.xlu2 %v3538_v37, %s4468_s30 }
 0x682   : > { %3457 = vrot.lane.b32.xlu0 %v3363_v47, %s4467_s29  ;;  %v3446_v43 = vpop.permute.xlu1 %3445 }
 0x683   : > { %v3798_v18 = vpop.permute.xlu2 %3797  ;;  %3517 = vst.msk [vmem:[#allocation4 + $0xc0] sm:$0xff] %vm1526_vm8, %v3446_v43 }
 0x684   : > { %v3604_v20 = vpop.permute.xlu0 %3603 }
 0x685   : > { %3692 = vst.msk [vmem:[#allocation4 + $0x38] sm:$0xff] %vm1719_vm9, %v3604_v20  ;;  %v3932_v16 = vld [vmem:[#allocation4 + $0xb8] sm:$0xff]  ;;  %v4164_v20 = vld [vmem:[%s4671_s24 + $0x10] sm:$0xff] }
 0x686   : > { %3884 = vst.msk [vmem:[#allocation4 + $0x38] sm:$0xff] %vm1912_vm11, %v3796_v60  ;;  %4411 = vmatmul.msk.f32.gmra.mxu3 %vm1986_vm12, %v3932_v16 }
 0x688   : > { %3425 = vrot.lane.b32.xlu1 %v3347_v11, %s4467_s29 }
 0x689   : > { %3649 = vrot.lane.b32.xlu2 %v3555_v21, %s4468_s30 }
 0x68a   : > { %3841 = vrot.lane.b32.xlu0 %v3747_v61, %s4469_s6  ;;  %v3830_v29 = vpop.permute.xlu1 %3829 }
 0x68b   : > { %v3416_v3 = vpop.permute.xlu2 %3415 }
 0x68c   : > { %3502 = vst.msk [vmem:[#allocation4 + $0x48] sm:$0xff] %vm1526_vm8, %v3416_v3  ;;  %v3638_v31 = vpop.permute.xlu0 %3637 }
 0x68d   : > { %3709 = vst.msk [vmem:[#allocation4 + $0xc0] sm:$0xff] %vm1719_vm9, %v3638_v31  ;;  %v3916_v1 = vld [vmem:[#allocation4 + $0x38] sm:$0xff] }
 0x68e   : > { %3901 = vst.msk [vmem:[#allocation4 + $0xc0] sm:$0xff] %vm1912_vm11, %v3830_v29  ;;  %4395 = vmatmul.msk.f32.gmra.mxu1 %vm1986_vm12, %v3916_v1 }
 0x690   : > { %3459 = vrot.lane.b32.xlu1 %v3364_v19, %s4467_s29 }
 0x691   : > { %3266 = vrot.lane.b32.xlu2 %v3746_v22, %s4466_s28 }
 0x692   : > { %3617 = vrot.lane.b32.xlu0 %v3539_v28, %s4468_s30  ;;  %v3448_v63 = vpop.permute.xlu1 %3447 }
 0x693   : > { %v3450_v58 = vpop.permute.xlu2 %3449  ;;  %3518 = vst.msk [vmem:[#allocation4 + $0xc8] sm:$0xff] %vm1526_vm8, %v3448_v63 }
 0x694   : > { %v3606_v45 = vpop.permute.xlu0 %3605 }
 0x695   : > { %3693 = vst.msk [vmem:[#allocation4 + $0x40] sm:$0xff] %vm1719_vm9, %v3606_v45  ;;  %v3933_v24 = vld [vmem:[#allocation4 + $0xc0] sm:$0xff] }
 0x696   : > { %3885 = vst.msk [vmem:[#allocation4 + $0x40] sm:$0xff] %vm1912_vm11, %v3798_v18  ;;  %4412 = vmatmul.msk.f32.gmra.mxu3 %vm1986_vm12, %v3933_v24 }
 0x698   : > { %3843 = vrot.lane.b32.xlu1 %v3748_v33, %s4469_s6 }
 0x699   : > { %3809 = vrot.lane.b32.xlu2 %v3731_v59, %s4469_s6  ;;  %v4114_v14 = vpop.f32.mrf.mxu3 }
 0x69a   : > { %v4115_v35 = vadd.f32 %v6705_v41, %v4114_v14  ;;  %3651 = vrot.lane.b32.xlu0 %v3556_v62, %s4468_s30  ;;  %v3832_v34 = vpop.permute.xlu1 %3831  ;;  %v4165_v62 = vld [vmem:[%s4671_s24 + $0x18] sm:$0xff] }
 0x69b   : > { %v3834_v49 = vpop.permute.xlu2 %3833  ;;  %v4066_v30 = vpop.f32.mrf.mxu1 }
 0x69c   : > { %v4210_v32 = vadd.f32 %v4178_v17, %v4115_v35  ;;  %v4067_v51 = vadd.f32 %v6705_v41, %v4066_v30  ;;  %v3640_v39 = vpop.permute.xlu0 %3639 }
 0x69d   : > { %3710 = vst.msk [vmem:[#allocation4 + $0xc8] sm:$0xff] %vm1719_vm9, %v3640_v39  ;;  %v3917_v48 = vld [vmem:[#allocation4 + $0x40] sm:$0xff] }
 0x69e   : > { %v4242_v23 = vmax.f32 %v4210_v32, 0.0  ;;  %v4194_v13 = vadd.f32 %v4162_v56, %v4067_v51  ;;  %3902 = vst.msk [vmem:[#allocation4 + $0xc8] sm:$0xff] %vm1912_vm11, %v3832_v34  ;;  %4396 = vmatmul.msk.f32.gmra.mxu1 %vm1986_vm12, %v3917_v48 }
 0x6a0   : > { %4274 = vst.msk [vmem:[%s6719_s15 + $0x80] sm:$0xff] %vm225_vm0, %v4242_v23  ;;  %v4226_v4 = vmax.f32 %v4194_v13, 0.0  ;;  %3811 = vrot.lane.b32.xlu1 %v3732_v8, %s4469_s6  ;;  %v4182_v13 = vld [vmem:[%s4671_s24 + $0xa0] sm:$0xff] }
 0x6a1   : > { %3427 = vrot.lane.b32.xlu2 %v3348_v40, %s4467_s29 }
 0x6a2   : > { %4258 = vst.msk [vmem:[%s6719_s15] sm:$0xff] %vm225_vm0, %v4226_v4  ;;  %3619 = vrot.lane.b32.xlu0 %v3540_v57, %s4468_s30  ;;  %v3608_v42 = vpop.permute.xlu1 %3607 }
 0x6a3   : > { %v3610_v36 = vpop.permute.xlu2 %3609  ;;  %3694 = vst.msk [vmem:[#allocation4 + $0x48] sm:$0xff] %vm1719_vm9, %v3608_v42  ;;  %v4166_v42 = vld [vmem:[%s4671_s24 + $0x20] sm:$0xff] }
 0x6a4   : > { %v3257_v44 = vpop.permute.xlu0 %3256 }
 0x6a5   : > { %3326 = vst.msk [vmem:[#allocation4 + $0xd0] sm:$0xff] %vm1332_vm7, %v3257_v44  ;;  %v3934_v50 = vld [vmem:[#allocation4 + $0xc8] sm:$0xff] }
 0x6a6   : > { %3519 = vst.msk [vmem:[#allocation4 + $0xd0] sm:$0xff] %vm1526_vm8, %v3450_v58  ;;  %4413 = vmatmul.msk.f32.gmra.mxu3 %vm1986_vm12, %v3934_v50  ;;  %v4181_v58 = vld [vmem:[%s4671_s24 + $0x98] sm:$0xff] }
 0x6a9   : > { %v4117_v52 = vpop.f32.mrf.mxu3 }
 0x6aa   : > { %v4118_v9 = vadd.f32 %v6705_v41, %v4117_v52  ;;  %v3642_v5 = vpop.permute.xlu1 %3641 }
 0x6ab   : > { %v3644_v25 = vpop.permute.xlu2 %3643  ;;  %3711 = vst.msk [vmem:[#allocation4 + $0xd0] sm:$0xff] %vm1719_vm9, %v3642_v5  ;;  %v4069_v6 = vpop.f32.mrf.mxu1 }
 0x6ac   : > { %v4211_v38 = vadd.f32 %v4179_v0, %v4118_v9  ;;  %3903 = vst.msk [vmem:[#allocation4 + $0xd0] sm:$0xff] %vm1912_vm11, %v3834_v49  ;;  %v4070_v46 = vadd.f32 %v6705_v41, %v4069_v6  ;;  %v3800_v15 = vpop.permute.xlu0 %3799 }
 0x6ad   : > { %3886 = vst.msk [vmem:[#allocation4 + $0x48] sm:$0xff] %vm1912_vm11, %v3800_v15 }
 0x6ae   : > { %v4243_v60 = vmax.f32 %v4211_v38, 0.0  ;;  %v4195_v54 = vadd.f32 %v4163_v26, %v4070_v46  ;;  %v4183_v46 = vld [vmem:[%s4671_s24 + $0xa8] sm:$0xff] }
 0x6b0   : > { %4275 = vst.msk [vmem:[%s6719_s15 + $0x88] sm:$0xff] %vm225_vm0, %v4243_v60  ;;  %v4227_v27 = vmax.f32 %v4195_v54, 0.0 }
 0x6b2   : > { %4259 = vst.msk [vmem:[%s6719_s15 + $0x8] sm:$0xff] %vm225_vm0, %v4227_v27  ;;  %v3259_v22 = vpop.permute.xlu1 %3258 }
 0x6b3   : > { %v3261_v53 = vpop.permute.xlu2 %3260  ;;  %3327 = vst.msk [vmem:[#allocation4 + $0xd8] sm:$0xff] %vm1332_vm7, %v3259_v22  ;;  %v3935_v12 = vld [vmem:[#allocation4 + $0xd0] sm:$0xff]  ;;  %v4167_v22 = vld [vmem:[%s4671_s24 + $0x28] sm:$0xff] }
 0x6b4   : > { %3328 = vst.msk [vmem:[#allocation4 + $0xe0] sm:$0xff] %vm1332_vm7, %v3261_v53  ;;  %v3418_v55 = vpop.permute.xlu0 %3417  ;;  %4414 = vmatmul.msk.f32.gmra.mxu3 %vm1986_vm12, %v3935_v12  ;;  %v3918_v10 = vld [vmem:[#allocation4 + $0x48] sm:$0xff] }
 0x6b5   : > { %3503 = vst.msk [vmem:[#allocation4 + $0x50] sm:$0xff] %vm1526_vm8, %v3418_v55  ;;  %4397 = vmatmul.msk.f32.gmra.mxu1 %vm1986_vm12, %v3918_v10 }
 0x6b6   : > { %3695 = vst.msk [vmem:[#allocation4 + $0x50] sm:$0xff] %vm1719_vm9, %v3610_v36 }
 0x6b9   : > { %v4120_v7 = vpop.f32.mrf.mxu3 }
 0x6ba   : > { %v4121_v37 = vadd.f32 %v6705_v41, %v4120_v7  ;;  %v3802_v47 = vpop.permute.xlu1 %3801 }
 0x6bb   : > { %v3804_v43 = vpop.permute.xlu2 %3803  ;;  %3887 = vst.msk [vmem:[#allocation4 + $0x50] sm:$0xff] %vm1912_vm11, %v3802_v47  ;;  %v4072_v18 = vpop.f32.mrf.mxu1 }
 0x6bc   : > { %v4212_v16 = vadd.f32 %v4180_v2, %v4121_v37  ;;  %v4073_v21 = vadd.f32 %v6705_v41, %v4072_v18  ;;  %v3452_v11 = vpop.permute.xlu0 %3451 }
 0x6bd   : > { %3520 = vst.msk [vmem:[#allocation4 + $0xd8] sm:$0xff] %vm1526_vm8, %v3452_v11 }
 0x6be   : > { %v4244_v61 = vmax.f32 %v4212_v16, 0.0  ;;  %v4196_v29 = vadd.f32 %v4164_v20, %v4073_v21  ;;  %3712 = vst.msk [vmem:[#allocation4 + $0xd8] sm:$0xff] %vm1719_vm9, %v3644_v25  ;;  %v4184_v21 = vld [vmem:[%s4671_s24 + $0xb0] sm:$0xff] }
 0x6c0   : > { %4276 = vst.msk [vmem:[%s6719_s15 + $0x90] sm:$0xff] %vm225_vm0, %v4244_v61  ;;  %v4228_v3 = vmax.f32 %v4196_v29, 0.0 }
 0x6c2   : > { %4260 = vst.msk [vmem:[%s6719_s15 + $0x10] sm:$0xff] %vm225_vm0, %v4228_v3  ;;  %v3420_v31 = vpop.permute.xlu1 %3419  ;;  %v3919_v19 = vld [vmem:[#allocation4 + $0x50] sm:$0xff] }
 0x6c3   : > { %v3422_v1 = vpop.permute.xlu2 %3421  ;;  %3504 = vst.msk [vmem:[#allocation4 + $0x58] sm:$0xff] %vm1526_vm8, %v3420_v31  ;;  %4398 = vmatmul.msk.f32.gmra.mxu1 %vm1986_vm12, %v3919_v19 }
 0x6c4   : > { %3505 = vst.msk [vmem:[#allocation4 + $0x60] sm:$0xff] %vm1526_vm8, %v3422_v1  ;;  %v3836_v28 = vpop.permute.xlu0 %3835  ;;  %v4168_v1 = vld [vmem:[%s4671_s24 + $0x30] sm:$0xff] }
 0x6c5   : > { %3904 = vst.msk [vmem:[#allocation4 + $0xd8] sm:$0xff] %vm1912_vm11, %v3836_v28 }
 0x6c9   : > { %v4123_v63 = vpop.f32.mrf.mxu3 }
 0x6ca   : > { %v4124_v45 = vadd.f32 %v6705_v41, %v4123_v63  ;;  %v3454_v24 = vpop.permute.xlu1 %3453 }
 0x6cb   : > { %v3456_v33 = vpop.permute.xlu2 %3455  ;;  %3521 = vst.msk [vmem:[#allocation4 + $0xe0] sm:$0xff] %vm1526_vm8, %v3454_v24  ;;  %v4075_v59 = vpop.f32.mrf.mxu1 }
 0x6cc   : > { %v4213_v14 = vadd.f32 %v4181_v58, %v4124_v45  ;;  %v4076_v17 = vadd.f32 %v6705_v41, %v4075_v59  ;;  %v3612_v35 = vpop.permute.xlu0 %3611  ;;  %v3936_v34 = vld [vmem:[#allocation4 + $0xd8] sm:$0xff] }
 0x6cd   : > { %3696 = vst.msk [vmem:[#allocation4 + $0x58] sm:$0xff] %vm1719_vm9, %v3612_v35  ;;  %4415 = vmatmul.msk.f32.gmra.mxu3 %vm1986_vm12, %v3936_v34 }
 0x6ce   : > { %v4245_v49 = vmax.f32 %v4213_v14, 0.0  ;;  %v4197_v30 = vadd.f32 %v4165_v62, %v4076_v17  ;;  %3888 = vst.msk [vmem:[#allocation4 + $0x58] sm:$0xff] %vm1912_vm11, %v3804_v43  ;;  %v4185_v17 = vld [vmem:[%s4671_s24 + $0xb8] sm:$0xff] }
 0x6d0   : > { %4277 = vst.msk [vmem:[%s6719_s15 + $0x98] sm:$0xff] %vm225_vm0, %v4245_v49  ;;  %v4229_v56 = vmax.f32 %v4197_v30, 0.0  ;;  %v4169_v30 = vld [vmem:[%s4671_s24 + $0x38] sm:$0xff] }
 0x6d2   : > { %4261 = vst.msk [vmem:[%s6719_s15 + $0x18] sm:$0xff] %vm225_vm0, %v4229_v56  ;;  %v3838_v32 = vpop.permute.xlu1 %3837 }
 0x6d3   : > { %v3840_v51 = vpop.permute.xlu2 %3839 }
 0x6d4   : > { %v3646_v39 = vpop.permute.xlu0 %3645 }
 0x6d5   : > { %3713 = vst.msk [vmem:[#allocation4 + $0xe0] sm:$0xff] %vm1719_vm9, %v3646_v39  ;;  %v3920_v48 = vld [vmem:[#allocation4 + $0x58] sm:$0xff] }
 0x6d6   : > { %3905 = vst.msk [vmem:[#allocation4 + $0xe0] sm:$0xff] %vm1912_vm11, %v3838_v32  ;;  %4399 = vmatmul.msk.f32.gmra.mxu1 %vm1986_vm12, %v3920_v48 }
 0x6d9   : > { %v4126_v23 = vpop.f32.mrf.mxu3 }
 0x6da   : > { %v4127_v8 = vadd.f32 %v6705_v41, %v4126_v23  ;;  %v3614_v40 = vpop.permute.xlu1 %3613 }
 0x6db   : > { %v3616_v4 = vpop.permute.xlu2 %3615  ;;  %3697 = vst.msk [vmem:[#allocation4 + $0x60] sm:$0xff] %vm1719_vm9, %v3614_v40  ;;  %v4078_v57 = vpop.f32.mrf.mxu1 }
 0x6dc   : > { %v4214_v36 = vadd.f32 %v4182_v13, %v4127_v8  ;;  %v4079_v44 = vadd.f32 %v6705_v41, %v4078_v57  ;;  %v3263_v50 = vpop.permute.xlu0 %3262 }
 0x6dd   : > { %3329 = vst.msk [vmem:[#allocation4 + $0xe8] sm:$0xff] %vm1332_vm7, %v3263_v50  ;;  %v3937_v52 = vld [vmem:[#allocation4 + $0xe0] sm:$0xff] }
 0x6de   : > { %v4246_v0 = vmax.f32 %v4214_v36, 0.0  ;;  %v4198_v9 = vadd.f32 %v4166_v42, %v4079_v44  ;;  %3522 = vst.msk [vmem:[#allocation4 + $0xe8] sm:$0xff] %vm1526_vm8, %v3456_v33  ;;  %4416 = vmatmul.msk.f32.gmra.mxu3 %vm1986_vm12, %v3937_v52  ;;  %v4186_v42 = vld [vmem:[%s4671_s24 + $0xc0] sm:$0xff] }
 0x6df   : > { %v4170_v50 = vld [vmem:[%s4671_s24 + $0x40] sm:$0xff] }
 0x6e0   : > { %4278 = vst.msk [vmem:[%s6719_s15 + $0xa0] sm:$0xff] %vm225_vm0, %v4246_v0  ;;  %v4230_v5 = vmax.f32 %v4198_v9, 0.0 }
 0x6e2   : > { %4262 = vst.msk [vmem:[%s6719_s15 + $0x20] sm:$0xff] %vm225_vm0, %v4230_v5  ;;  %v3648_v25 = vpop.permute.xlu1 %3647 }
 0x6e3   : > { %v3650_v6 = vpop.permute.xlu2 %3649  ;;  %3714 = vst.msk [vmem:[#allocation4 + $0xe8] sm:$0xff] %vm1719_vm9, %v3648_v25 }
 0x6e4   : > { %3906 = vst.msk [vmem:[#allocation4 + $0xe8] sm:$0xff] %vm1912_vm11, %v3840_v51  ;;  %v3806_v26 = vpop.permute.xlu0 %3805 }
 0x6e5   : > { %3889 = vst.msk [vmem:[#allocation4 + $0x60] sm:$0xff] %vm1912_vm11, %v3806_v26 }
 0x6e9   : > { %v4129_v38 = vpop.f32.mrf.mxu3 }
 0x6ea   : > { %v4130_v15 = vadd.f32 %v6705_v41, %v4129_v38  ;;  %v3265_v60 = vpop.permute.xlu1 %3264  ;;  %v4187_v38 = vld [vmem:[%s4671_s24 + $0xc8] sm:$0xff] }
 0x6eb   : > { %v3267_v54 = vpop.permute.xlu2 %3266  ;;  %3330 = vst.msk [vmem:[#allocation4 + $0xf0] sm:$0xff] %vm1332_vm7, %v3265_v60  ;;  %v4081_v27 = vpop.f32.mrf.mxu1  ;;  %v3938_v53 = vld [vmem:[#allocation4 + $0xe8] sm:$0xff] }
 0x6ec   : > { %v4215_v12 = vadd.f32 %v4183_v46, %v4130_v15  ;;  %3331 = vst.msk [vmem:[#allocation4 + $0xf8] sm:$0xff] %vm1332_vm7, %v3267_v54  ;;  %v4082_v55 = vadd.f32 %v6705_v41, %v4081_v27  ;;  %v3424_v10 = vpop.permute.xlu0 %3423  ;;  %4417 = vmatmul.msk.f32.gmra.mxu3 %vm1986_vm12, %v3938_v53  ;;  %v3921_v7 = vld [vmem:[#allocation4 + $0x60] sm:$0xff]  ;;  %v4171_v27 = vld [vmem:[%s4671_s24 + $0x48] sm:$0xff] }
 0x6ed   : > { %3506 = vst.msk [vmem:[#allocation4 + $0x68] sm:$0xff] %vm1526_vm8, %v3424_v10  ;;  %4400 = vmatmul.msk.f32.gmra.mxu1 %vm1986_vm12, %v3921_v7  ;;  %v4188_v10 = vld [vmem:[%s4671_s24 + $0xd0] sm:$0xff] }
 0x6ee   : > { %v4247_v2 = vmax.f32 %v4215_v12, 0.0  ;;  %v4199_v37 = vadd.f32 %v4167_v22, %v4082_v55  ;;  %3698 = vst.msk [vmem:[#allocation4 + $0x68] sm:$0xff] %vm1719_vm9, %v3616_v4 }
 0x6f0   : > { %4279 = vst.msk [vmem:[%s6719_s15 + $0xa8] sm:$0xff] %vm225_vm0, %v4247_v2  ;;  %v4231_v47 = vmax.f32 %v4199_v37, 0.0 }
 0x6f2   : > { %4263 = vst.msk [vmem:[%s6719_s15 + $0x28] sm:$0xff] %vm225_vm0, %v4231_v47  ;;  %v3808_v43 = vpop.permute.xlu1 %3807 }
 0x6f3   : > { %v3810_v18 = vpop.permute.xlu2 %3809  ;;  %3890 = vst.msk [vmem:[#allocation4 + $0x68] sm:$0xff] %vm1912_vm11, %v3808_v43  ;;  %v4172_v43 = vld [vmem:[%s4671_s24 + $0x50] sm:$0xff] }
 0x6f4   : > { %v3458_v20 = vpop.permute.xlu0 %3457 }
 0x6f5   : > { %3523 = vst.msk [vmem:[#allocation4 + $0xf0] sm:$0xff] %vm1526_vm8, %v3458_v20 }
 0x6f6   : > { %3715 = vst.msk [vmem:[#allocation4 + $0xf0] sm:$0xff] %vm1719_vm9, %v3650_v6 }
 0x6f9   : > { %v4132_v16 = vpop.f32.mrf.mxu3 }
 0x6fa   : > { %v4133_v11 = vadd.f32 %v6705_v41, %v4132_v16  ;;  %v3426_v61 = vpop.permute.xlu1 %3425  ;;  %v3922_v3 = vld [vmem:[#allocation4 + $0x68] sm:$0xff] }
 0x6fb   : > { %v3428_v29 = vpop.permute.xlu2 %3427  ;;  %3507 = vst.msk [vmem:[#allocation4 + $0x70] sm:$0xff] %vm1526_vm8, %v3426_v61  ;;  %v4084_v31 = vpop.f32.mrf.mxu1  ;;  %4401 = vmatmul.msk.f32.gmra.mxu1 %vm1986_vm12, %v3922_v3 }
 0x6fc   : > { %v4216_v19 = vadd.f32 %v4184_v21, %v4133_v11  ;;  %3508 = vst.msk [vmem:[#allocation4 + $0x78] sm:$0xff] %vm1526_vm8, %v3428_v29  ;;  %v4085_v28 = vadd.f32 %v6705_v41, %v4084_v31  ;;  %v3842_v63 = vpop.permute.xlu0 %3841  ;;  %v4189_v11 = vld [vmem:[%s4671_s24 + $0xd8] sm:$0xff] }
 0x6fd   : > { %3907 = vst.msk [vmem:[#allocation4 + $0xf0] sm:$0xff] %vm1912_vm11, %v3842_v63  ;;  %v4173_v31 = vld [vmem:[%s4671_s24 + $0x58] sm:$0xff] }
 0x6fe   : > { %v4248_v58 = vmax.f32 %v4216_v19, 0.0  ;;  %v4200_v45 = vadd.f32 %v4168_v1, %v4085_v28 }
 0x700   : > { %4280 = vst.msk [vmem:[%s6719_s15 + $0xb0] sm:$0xff] %vm225_vm0, %v4248_v58  ;;  %v4232_v24 = vmax.f32 %v4200_v45, 0.0  ;;  %v4190_v45 = vld [vmem:[%s4671_s24 + $0xe0] sm:$0xff] }
 0x702   : > { %4264 = vst.msk [vmem:[%s6719_s15 + $0x30] sm:$0xff] %vm225_vm0, %v4232_v24  ;;  %v3460_v33 = vpop.permute.xlu1 %3459 }
 0x703   : > { %3524 = vst.msk [vmem:[#allocation4 + $0xf8] sm:$0xff] %vm1526_vm8, %v3460_v33 }
 0x704   : > { %v3618_v59 = vpop.permute.xlu0 %3617  ;;  %v3939_v62 = vld [vmem:[#allocation4 + $0xf0] sm:$0xff] }
 0x705   : > { %3699 = vst.msk [vmem:[#allocation4 + $0x70] sm:$0xff] %vm1719_vm9, %v3618_v59  ;;  %4418 = vmatmul.msk.f32.gmra.mxu3 %vm1986_vm12, %v3939_v62 }
 0x706   : > { %3891 = vst.msk [vmem:[#allocation4 + $0x70] sm:$0xff] %vm1912_vm11, %v3810_v18 }
 0x709   : > { %v4135_v14 = vpop.f32.mrf.mxu3 }
 0x70a   : > { %v4136_v35 = vadd.f32 %v6705_v41, %v4135_v14  ;;  %v3844_v34 = vpop.permute.xlu1 %3843  ;;  %v4174_v14 = vld [vmem:[%s4671_s24 + $0x60] sm:$0xff] }
 0x70b   : > { %v4087_v49 = vpop.f32.mrf.mxu1 }
 0x70c   : > { %v4217_v56 = vadd.f32 %v4185_v17, %v4136_v35  ;;  %v4088_v32 = vadd.f32 %v6705_v41, %v4087_v49  ;;  %v3652_v51 = vpop.permute.xlu0 %3651 }
 0x70d   : > { %3716 = vst.msk [vmem:[#allocation4 + $0xf8] sm:$0xff] %vm1719_vm9, %v3652_v51  ;;  %v3923_v39 = vld [vmem:[#allocation4 + $0x70] sm:$0xff] }
 0x70e   : > { %v4249_v48 = vmax.f32 %v4217_v56, 0.0  ;;  %v4201_v23 = vadd.f32 %v4169_v30, %v4088_v32  ;;  %3908 = vst.msk [vmem:[#allocation4 + $0xf8] sm:$0xff] %vm1912_vm11, %v3844_v34  ;;  %4402 = vmatmul.msk.f32.gmra.mxu1 %vm1986_vm12, %v3923_v39  ;;  %v4191_v30 = vld [vmem:[%s4671_s24 + $0xe8] sm:$0xff] }
 0x710   : > { %4281 = vst.msk [vmem:[%s6719_s15 + $0xb8] sm:$0xff] %vm225_vm0, %v4249_v48  ;;  %v4233_v13 = vmax.f32 %v4201_v23, 0.0  ;;  %v4175_v48 = vld [vmem:[%s4671_s24 + $0x68] sm:$0xff] }
 0x712   : > { %4265 = vst.msk [vmem:[%s6719_s15 + $0x38] sm:$0xff] %vm225_vm0, %v4233_v13  ;;  %v3812_v40 = vpop.permute.xlu1 %3811 }
 0x714   : > { %v3620_v8 = vpop.permute.xlu0 %3619 }
 0x715   : > { %3700 = vst.msk [vmem:[#allocation4 + $0x78] sm:$0xff] %vm1719_vm9, %v3620_v8  ;;  %v3940_v4 = vld [vmem:[#allocation4 + $0xf8] sm:$0xff] }
 0x716   : > { %3892 = vst.msk [vmem:[#allocation4 + $0x78] sm:$0xff] %vm1912_vm11, %v3812_v40  ;;  %4419 = vmatmul.msk.f32.gmra.mxu3 %vm1986_vm12, %v3940_v4  ;;  %v4192_v4 = vld [vmem:[%s4671_s24 + $0xf0] sm:$0xff] }
 0x719   : > { %v4138_v57 = vpop.f32.mrf.mxu3 }
 0x71a   : > { %v4139_v36 = vadd.f32 %v6705_v41, %v4138_v57 }
 0x71b   : > { %v4090_v44 = vpop.f32.mrf.mxu1 }
 0x71c   : > { %v4218_v52 = vadd.f32 %v4186_v42, %v4139_v36  ;;  %v4091_v0 = vadd.f32 %v6705_v41, %v4090_v44  ;;  %v4176_v44 = vld [vmem:[%s4671_s24 + $0x70] sm:$0xff] }
 0x71d   : > { %v3924_v9 = vld [vmem:[#allocation4 + $0x78] sm:$0xff] }
 0x71e   : > { %v4250_v5 = vmax.f32 %v4218_v52, 0.0  ;;  %v4202_v25 = vadd.f32 %v4170_v50, %v4091_v0  ;;  %4403 = vmatmul.msk.f32.gmra.mxu1 %vm1986_vm12, %v3924_v9 }
 0x720   : > { %4282 = vst.msk [vmem:[%s6719_s15 + $0xc0] sm:$0xff] %vm225_vm0, %v4250_v5  ;;  %v4234_v6 = vmax.f32 %v4202_v25, 0.0  ;;  %v4193_v25 = vld [vmem:[%s4671_s24 + $0xf8] sm:$0xff] }
 0x722   : > { %4266 = vst.msk [vmem:[%s6719_s15 + $0x40] sm:$0xff] %vm225_vm0, %v4234_v6 }
 0x729   : > { %v4141_v26 = vpop.f32.mrf.mxu3 }
 0x72a   : > { %v4142_v46 = vadd.f32 %v6705_v41, %v4141_v26 }
 0x72c   : > { %v4219_v15 = vadd.f32 %v4187_v38, %v4142_v46  ;;  %v4177_v38 = vld [vmem:[%s4671_s24 + $0x78] sm:$0xff] }
 0x72e   : > { %v4251_v60 = vmax.f32 %v4219_v15, 0.0 }
 0x730   : > { %4283 = vst.msk [vmem:[%s6719_s15 + $0xc8] sm:$0xff] %vm225_vm0, %v4251_v60 }
 0x732   : > { %v4093_v54 = vpop.f32.mrf.mxu1 }
 0x733   : > { %v4094_v22 = vadd.f32 %v6705_v41, %v4093_v54 }
 0x735   : > { %v4203_v53 = vadd.f32 %v4171_v27, %v4094_v22 }
 0x737   : > { %v4235_v12 = vmax.f32 %v4203_v53, 0.0  ;;  %v4144_v55 = vpop.f32.mrf.mxu3 }
 0x738   : > { %v4145_v7 = vadd.f32 %v6705_v41, %v4144_v55 }
 0x739   : > { %4267 = vst.msk [vmem:[%s6719_s15 + $0x48] sm:$0xff] %vm225_vm0, %v4235_v12 }
 0x73a   : > { %v4220_v2 = vadd.f32 %v4188_v10, %v4145_v7 }
 0x73c   : > { %v4252_v37 = vmax.f32 %v4220_v2, 0.0 }
 0x73e   : > { %4284 = vst.msk [vmem:[%s6719_s15 + $0xd0] sm:$0xff] %vm225_vm0, %v4252_v37 }
 0x740   : > { %v4096_v47 = vpop.f32.mrf.mxu1 }
 0x741   : > { %v4097_v18 = vadd.f32 %v6705_v41, %v4096_v47 }
 0x743   : > { %v4204_v20 = vadd.f32 %v4172_v43, %v4097_v18 }
 0x745   : > { %v4236_v16 = vmax.f32 %v4204_v20, 0.0 }
 0x747   : > { %4268 = vst.msk [vmem:[%s6719_s15 + $0x50] sm:$0xff] %vm225_vm0, %v4236_v16 }
 0x750   : > { %v4147_v21 = vpop.f32.mrf.mxu3 }
 0x751   : > { %v4148_v61 = vadd.f32 %v6705_v41, %v4147_v21 }
 0x753   : > { %v4221_v29 = vadd.f32 %v4189_v11, %v4148_v61  ;;  %v4099_v3 = vpop.f32.mrf.mxu1 }
 0x754   : > { %v4100_v1 = vadd.f32 %v6705_v41, %v4099_v3 }
 0x755   : > { %v4253_v19 = vmax.f32 %v4221_v29, 0.0 }
 0x756   : > { %v4205_v28 = vadd.f32 %v4173_v31, %v4100_v1 }
 0x757   : > { %4285 = vst.msk [vmem:[%s6719_s15 + $0xd8] sm:$0xff] %vm225_vm0, %v4253_v19 }
 0x758   : > { %v4237_v63 = vmax.f32 %v4205_v28, 0.0 }
 0x75a   : > { %4269 = vst.msk [vmem:[%s6719_s15 + $0x58] sm:$0xff] %vm225_vm0, %v4237_v63 }
 0x761   : > { %v4150_v58 = vpop.f32.mrf.mxu3 }
 0x762   : > { %v4151_v24 = vadd.f32 %v6705_v41, %v4150_v58 }
 0x764   : > { %v4222_v33 = vadd.f32 %v4190_v45, %v4151_v24 }
 0x766   : > { %v4254_v59 = vmax.f32 %v4222_v33, 0.0 }
 0x768   : > { %4286 = vst.msk [vmem:[%s6719_s15 + $0xe0] sm:$0xff] %vm225_vm0, %v4254_v59 }
 0x76a   : > { %v4102_v62 = vpop.f32.mrf.mxu1 }
 0x76b   : > { %v4103_v17 = vadd.f32 %v6705_v41, %v4102_v62 }
 0x76d   : > { %v4206_v35 = vadd.f32 %v4174_v14, %v4103_v17 }
 0x76f   : > { %v4238_v34 = vmax.f32 %v4206_v35, 0.0  ;;  %v4153_v49 = vpop.f32.mrf.mxu3 }
 0x770   : > { %v4154_v56 = vadd.f32 %v6705_v41, %v4153_v49 }
 0x771   : > { %4270 = vst.msk [vmem:[%s6719_s15 + $0x60] sm:$0xff] %vm225_vm0, %v4238_v34 }
 0x772   : > { %v4223_v32 = vadd.f32 %v4191_v30, %v4154_v56 }
 0x774   : > { %v4255_v51 = vmax.f32 %v4223_v32, 0.0 }
 0x776   : > { %4287 = vst.msk [vmem:[%s6719_s15 + $0xe8] sm:$0xff] %vm225_vm0, %v4255_v51 }
 0x778   : > { %v4105_v39 = vpop.f32.mrf.mxu1 }
 0x779   : > { %v4106_v23 = vadd.f32 %v6705_v41, %v4105_v39 }
 0x77b   : > { %v4207_v13 = vadd.f32 %v4175_v48, %v4106_v23 }
 0x77d   : > { %v4239_v8 = vmax.f32 %v4207_v13, 0.0 }
 0x77f   : > { %4271 = vst.msk [vmem:[%s6719_s15 + $0x68] sm:$0xff] %vm225_vm0, %v4239_v8 }
 0x788   : > { %v4156_v40 = vpop.f32.mrf.mxu3 }
 0x789   : > { %v4157_v57 = vadd.f32 %v6705_v41, %v4156_v40 }
 0x78b   : > { %v4224_v42 = vadd.f32 %v4192_v4, %v4157_v57  ;;  %v4108_v36 = vpop.f32.mrf.mxu1 }
 0x78c   : > { %v4109_v50 = vadd.f32 %v6705_v41, %v4108_v36 }
 0x78d   : > { %v4256_v52 = vmax.f32 %v4224_v42, 0.0 }
 0x78e   : > { %v4208_v0 = vadd.f32 %v4176_v44, %v4109_v50 }
 0x78f   : > { %4288 = vst.msk [vmem:[%s6719_s15 + $0xf0] sm:$0xff] %vm225_vm0, %v4256_v52 }
 0x790   : > { %v4240_v9 = vmax.f32 %v4208_v0, 0.0 }
 0x792   : > { %4272 = vst.msk [vmem:[%s6719_s15 + $0x70] sm:$0xff] %vm225_vm0, %v4240_v9 }
 0x799   : > { %v4159_v5 = vpop.f32.mrf.mxu3 }
 0x79a   : > { %v4160_v6 = vadd.f32 %v6705_v41, %v4159_v5 }
 0x79b   : > { %v4111_v26 = vpop.f32.mrf.mxu1 }
 0x79c   : > { %v4225_v46 = vadd.f32 %v4193_v25, %v4160_v6  ;;  %v4112_v15 = vadd.f32 %v6705_v41, %v4111_v26 }
 0x79e   : > { %v4257_v60 = vmax.f32 %v4225_v46, 0.0  ;;  %v4209_v54 = vadd.f32 %v4177_v38, %v4112_v15 }
 0x7a0   : > { %4289 = vst.msk [vmem:[%s6719_s15 + $0xf8] sm:$0xff] %vm225_vm0, %v4257_v60  ;;  %v4241_v27 = vmax.f32 %v4209_v54, 0.0 }
 0x7a2   : > { %4273 = vst.msk [vmem:[%s6719_s15 + $0x78] sm:$0xff] %vm225_vm0, %v4241_v27 }
 0x7a3 PF: > { %s15_s18 = sadd.s32 1, %s4459_s18  }
 0x7a4   : > { %p12_p4 = scmp.ge.s32.totalorder %s15_s18, 4  }
 0x7a6   :  { %14 = sbr.rel (!%p12_p4) target bundleno = 1 (0x1), region = 76 }

</bundles_post_ra>
